<compile_context>
chip_gen: v5e
topology: v5e:2x2
jax: 0.10.0
libtpu: 0.0.40
codegen_flags: <defaults>
</compile_context>

<pallas_src>
import inspect

import jax
import jax.numpy as jnp
import numpy as np
from jax import lax
from jax.experimental import pallas as pl
from jax.experimental.pallas import tpu as pltpu

F32 = jnp.float32
BF16 = jnp.bfloat16


# ----------------------------------------------------------------------------
# Per-generation tuning (v5e/v6e: 128 MiB VMEM, v7x: 64 MiB per TensorCore)
# ----------------------------------------------------------------------------
def _tpu_vmem_capacity_bytes():
    try:
        return int(pltpu.get_tpu_info().vmem_capacity_bytes)
    except Exception:
        return 64 * 1024 * 1024  # conservative default (v7x per-TC)


_VMEM_CAP = _tpu_vmem_capacity_bytes()
_BIG_VMEM = _VMEM_CAP >= 100 * 1024 * 1024       # v5e / v6e
VMEM_LIMIT = (96 if _BIG_VMEM else 48) * 1024 * 1024
DF_MAX_TILE = 1024 if _BIG_VMEM else 512          # DenseFusion row tile
HEAD_MAX_TILE = 512 if _BIG_VMEM else 256         # fused-heads row tile (bounds f32 intermediates)


def _supports_single_buffering():
    try:
        return (hasattr(pl, "Buffered")
                and "pipeline_mode" in inspect.signature(pl.BlockSpec).parameters)
    except Exception:
        return False


_SINGLE_BUF = _supports_single_buffering()


def _resident_spec(shape):
    """Grid-invariant (weight) block: full extent, constant index_map, single-buffered."""
    nd = len(shape)
    index_map = lambda *_: (0,) * nd
    if _SINGLE_BUF:
        return pl.BlockSpec(shape, index_map, pipeline_mode=pl.Buffered(1))
    return pl.BlockSpec(shape, index_map)


def _pick_tile(n, max_tile):
    """Largest divisor of n that is a multiple of 8 and <= max_tile."""
    best = None
    for t in range(8, min(n, max_tile) + 1, 8):
        if n % t == 0:
            best = t
    return best if best is not None else n


# ----------------------------------------------------------------------------
# Pallas kernel 1: DenseFusion (final_fusion_layer), tiled over (B, N//TN)
#   inputs : feat1 = [rgb|cld]  [B, N, 128]  (bf16)
#   outputs: rgbd640 = [feat1 | relu(conv2_rgb) | relu(conv2_cld)]  [B, N, 640] (bf16)
#            ap_part = per-tile (8,1024) partial sums of relu(conv4(relu(conv3(feat1))))
#                      -> reduced to the AvgPool in the wrapper.
#   wm merges conv2_rgb/conv2_cld (block-diagonal) and conv3 into one K=128 matmul.
# ----------------------------------------------------------------------------
def dense_fusion_kernel(x_ref, wm_ref, bm_ref, w4_ref, b4_ref, out_ref, ap_ref):
    feat1 = x_ref[0]                                                     # [TN, 128] bf16
    tn = feat1.shape[0]

    # [r2 | c2 | h3] = relu(feat1 @ Wm + bm)   -- one MXU pass, K=128
    h = jnp.maximum(
        jnp.dot(feat1, wm_ref[...], preferred_element_type=F32) + bm_ref[...], 0.0)  # [TN,1024] f32

    # h4 = relu(conv4(h3))
    h4 = jnp.maximum(
        jnp.dot(h[:, 512:1024].astype(BF16), w4_ref[...],
                preferred_element_type=F32) + b4_ref[...], 0.0)          # [TN, 1024] f32

    # rgbd_emb (640 ch): two lane-aligned, unmasked sub-range stores (no concat temp).
    out_ref[0, :, 0:128] = feat1.astype(out_ref.dtype)
    out_ref[0, :, 128:640] = h[:, 0:512].astype(out_ref.dtype)

    # AvgPool1d(num_points): per-tile VPU group-sums into an (8,1024) slab.
    # Final 8->1 reduce and 1/N scale happen in the wrapper (keeps both grid axes parallel).
    ap_ref[0, 0] = jnp.sum(h4.reshape(tn // 8, 8, 1024), axis=0)


def dense_fusion_pallas(feat1_bf16, df_params, tn):
    B, N, _ = feat1_bf16.shape
    p = df_params
    n_tiles = N // tn

    # Merge conv2_rgb / conv2_cld (block-diagonal) with conv3 -> one [128,1024] weight.
    wm = jnp.zeros((128, 1024), F32)
    wm = wm.at[0:64, 0:256].set(p["w2r"])
    wm = wm.at[64:128, 256:512].set(p["w2c"])
    wm = wm.at[:, 512:1024].set(p["w3"])
    bm = jnp.concatenate([p["b2r"], p["b2c"], p["b3"]], axis=-1)          # [1, 1024]

    weights = [wm.astype(BF16), bm.astype(F32),
               p["w4"].astype(BF16), p["b4"].astype(F32)]

    rgbd, ap_part = pl.pallas_call(
        dense_fusion_kernel,
        out_shape=(jax.ShapeDtypeStruct((B, N, 640), BF16),
                   jax.ShapeDtypeStruct((B, n_tiles, 8, 1024), F32)),
        grid=(B, n_tiles),
        in_specs=[pl.BlockSpec((1, tn, 128), lambda b, n: (b, n, 0))]
                 + [_resident_spec(w.shape) for w in weights],
        out_specs=(pl.BlockSpec((1, tn, 640), lambda b, n: (b, n, 0)),
                   pl.BlockSpec((1, 1, 8, 1024), lambda b, n: (b, n, 0, 0))),
        compiler_params=pltpu.CompilerParams(
            dimension_semantics=("parallel", "parallel"),
            vmem_limit_bytes=VMEM_LIMIT),
    )(feat1_bf16, *weights)

    ap = jnp.sum(ap_part, axis=(1, 2)) * (1.0 / N)                        # [B, 1024] f32
    return rgbd, ap


# ----------------------------------------------------------------------------
# Pallas kernel 2: all five prediction heads fused, tiled over (B, N//TM).
#   Each head: relu(x@W1 + bias1) -> relu(.@W2 + t2) -> relu(.@W3 + t3),
#   then ALL heads' final projections run as ONE block-diagonal [5*128, OC_PAD] matmul
#   producing a single lane-dense [TM, OC_PAD] f32 output (sigmoid applied to the
#   score-head column range in-kernel; per-head slicing in the wrapper).
#   W1 only has the 640 rgbd rows; the ap contribution + BN shift is pre-folded into
#   bias1[B,1,1024].  BN scales folded into W1/W2/W3 columns host-side.
# ----------------------------------------------------------------------------
def make_fused_heads_kernel(n_heads, sig_lo, sig_hi):
    def kernel(x_ref, *refs):
        wrefs = refs[:6 * n_heads]
        w4_ref = refs[6 * n_heads]
        b4_ref = refs[6 * n_heads + 1]
        o_ref = refs[6 * n_heads + 2]

        x = x_ref[0]                                                     # [TM, 640] bf16
        h3s = []
        for hi in range(n_heads):
            w1, b1, w2, t2, w3, t3 = wrefs[6 * hi: 6 * hi + 6]
            h1 = jnp.maximum(
                jnp.dot(x, w1[...], preferred_element_type=F32) + b1[0], 0.0)
            h2 = jnp.maximum(
                jnp.dot(h1.astype(BF16), w2[...], preferred_element_type=F32) + t2[...], 0.0)
            h3 = jnp.maximum(
                jnp.dot(h2.astype(BF16), w3[...], preferred_element_type=F32) + t3[...], 0.0)
            h3s.append(h3.astype(BF16))

        hcat = jnp.concatenate(h3s, axis=-1)                             # [TM, 128*n_heads] bf16
        o = jnp.dot(hcat, w4_ref[...], preferred_element_type=F32) + b4_ref[...]  # [TM, OC_PAD]
        if sig_hi > sig_lo:
            col = lax.broadcasted_iota(jnp.int32, o.shape, 1)
            o = jnp.where((col >= sig_lo) & (col < sig_hi), jax.nn.sigmoid(o), o)
        o_ref[0] = o.astype(o_ref.dtype)
    return kernel


def fused_heads_pallas(rgbd640, head_args, out_chs, sigmoid_flags, tm):
    """head_args[hi] = (w1[640,1024] bf16, b1[B,1,1024] f32, w2, t2, w3, t3, w4[128,oc] f32, b4[1,oc] f32)."""
    B, N, C = rgbd640.shape
    n_heads = len(out_chs)

    offs = [0]
    for oc in out_chs:
        offs.append(offs[-1] + int(oc))
    total = offs[-1]
    oc_pad = ((total + 127) // 128) * 128

    # Sigmoid heads must form a contiguous column range (ctr_score, kp_score are last).
    sig_ranges = [(offs[i], offs[i + 1]) for i in range(n_heads) if sigmoid_flags[i]]
    if sig_ranges:
        sig_lo, sig_hi = sig_ranges[0][0], sig_ranges[-1][1]
        for k in range(len(sig_ranges) - 1):
            assert sig_ranges[k][1] == sig_ranges[k + 1][0], "sigmoid heads must be contiguous"
        for i in range(n_heads):
            if not sigmoid_flags[i]:
                assert offs[i + 1] <= sig_lo or offs[i] >= sig_hi
    else:
        sig_lo = sig_hi = 0

    # Block-diagonal final projection [128*n_heads, oc_pad] -> one MXU pass, one lane-dense store.
    w4_all = jnp.zeros((128 * n_heads, oc_pad), F32)
    b4_all = jnp.zeros((1, oc_pad), F32)
    for hi in range(n_heads):
        w4_all = w4_all.at[128 * hi:128 * (hi + 1), offs[hi]:offs[hi + 1]].set(head_args[hi][6])
        b4_all = b4_all.at[:, offs[hi]:offs[hi + 1]].set(head_args[hi][7])

    flat_args = []
    in_specs = [pl.BlockSpec((1, tm, C), lambda b, m: (b, m, 0))]
    for hi in range(n_heads):
        w1, b1, w2, t2, w3, t3, _, _ = head_args[hi]
        flat_args += [w1, b1, w2, t2, w3, t3]
        in_specs += [_resident_spec(w1.shape),
                     pl.BlockSpec((1, 1, 1024), lambda b, m: (b, 0, 0)),   # batch-dependent bias
                     _resident_spec(w2.shape), _resident_spec(t2.shape),
                     _resident_spec(w3.shape), _resident_spec(t3.shape)]
    flat_args += [w4_all.astype(BF16), b4_all.astype(F32)]
    in_specs += [_resident_spec((128 * n_heads, oc_pad)),
                 _resident_spec((1, oc_pad))]

    out = pl.pallas_call(
        make_fused_heads_kernel(n_heads, sig_lo, sig_hi),
        out_shape=jax.ShapeDtypeStruct((B, N, oc_pad), F32),
        grid=(B, N // tm),
        in_specs=in_specs,
        out_specs=pl.BlockSpec((1, tm, oc_pad), lambda b, m: (b, m, 0)),
        compiler_params=pltpu.CompilerParams(
            dimension_semantics=("parallel", "parallel"),
            vmem_limit_bytes=VMEM_LIMIT),
    )(rgbd640, *flat_args)

    return [out[..., offs[hi]:offs[hi + 1]] for hi in range(n_heads)]


# ----------------------------------------------------------------------------
# Deterministic parameter init
# ----------------------------------------------------------------------------
def _w(key, cin, cout):
    return (jax.random.normal(key, (cin, cout), F32) / np.sqrt(cin)).astype(F32)


def init_dense_fusion_params(key):
    ks = jax.random.split(key, 8)
    return {
        "w2r": _w(ks[0], 64, 256),   "b2r": 0.01 * jax.random.normal(ks[1], (1, 256), F32),
        "w2c": _w(ks[2], 64, 256),   "b2c": 0.01 * jax.random.normal(ks[3], (1, 256), F32),
        "w3":  _w(ks[4], 128, 512),  "b3":  0.01 * jax.random.normal(ks[5], (1, 512), F32),
        "w4":  _w(ks[6], 512, 1024), "b4":  0.01 * jax.random.normal(ks[7], (1, 1024), F32),
    }


def init_head_params(key, out_ch, in_ch=1664):
    dims = [(in_ch, 1024), (1024, 512), (512, 128)]
    ks = jax.random.split(key, 3 * 3 + 2)
    params = []
    for li, (ci, co) in enumerate(dims):
        kw, ksc, ksh = ks[3 * li], ks[3 * li + 1], ks[3 * li + 2]
        params.append(_w(kw, ci, co))                                      # conv weight
        params.append(1.0 + 0.05 * jax.random.normal(ksc, (1, co), F32))   # folded BN scale
        params.append(0.05 * jax.random.normal(ksh, (1, co), F32))         # folded BN shift
    params.append(_w(ks[-2], 128, out_ch))                                 # final conv weight
    params.append(0.01 * jax.random.normal(ks[-1], (1, out_ch), F32))      # final conv bias
    return params


# ----------------------------------------------------------------------------
# Pure-JAX references for validation (full PyTorch semantics, f32, 1664 channels)
# ----------------------------------------------------------------------------
def ref_dense_fusion(rgb, cld, p):
    r2 = jax.nn.relu(rgb @ p["w2r"] + p["b2r"])
    c2 = jax.nn.relu(cld @ p["w2c"] + p["b2c"])
    feat1 = jnp.concatenate([rgb, cld], axis=-1)
    h4 = jax.nn.relu(jax.nn.relu(feat1 @ p["w3"] + p["b3"]) @ p["w4"] + p["b4"])
    ap = jnp.mean(h4, axis=1, keepdims=True)                    # avg over points
    ap = jnp.broadcast_to(ap, (rgb.shape[0], rgb.shape[1], 1024))
    return jnp.concatenate([rgb, cld, r2, c2, ap], axis=-1)


def ref_head(x2d, params, apply_sigmoid):
    w1, s1, t1, w2, s2, t2, w3, s3, t3, w4, b4 = params
    h = jax.nn.relu(x2d @ w1 * s1 + t1)
    h = jax.nn.relu(h @ w2 * s2 + t2)
    h = jax.nn.relu(h @ w3 * s3 + t3)
    o = h @ w4 + b4
    return jax.nn.sigmoid(o) if apply_sigmoid else o


# ----------------------------------------------------------------------------
# FFB6D head forward
# ----------------------------------------------------------------------------
def ffb6d_head_forward(rgb_feat, p_emb, choose, df_params, head_params,
                       n_classes, n_kps):
    B, di, H, W = rgb_feat.shape
    N = p_emb.shape[2]
    assert N % 8 == 0, "n_pts must be a multiple of 8 for sublane-aligned tiles"

    # rgb_emb_c = gather(rgb_emb.view(bs, di, -1), 2, choose)        (glue)
    rgb_flat = rgb_feat.reshape(B, di, H * W)
    choose_emb = jnp.broadcast_to(choose.reshape(B, 1, N), (B, di, N))
    rgb_emb_c = jnp.take_along_axis(rgb_flat, choose_emb, axis=2)    # [B, di, N]

    rgb_c = jnp.transpose(rgb_emb_c, (0, 2, 1)).astype(F32)
    cld_c = jnp.transpose(p_emb, (0, 2, 1)).astype(F32)
    feat1 = jnp.concatenate([rgb_c, cld_c], axis=-1).astype(BF16)    # [B, N, 128]

    tn = _pick_tile(N, DF_MAX_TILE)
    tm = _pick_tile(N, HEAD_MAX_TILE)

    # final_fusion_layer (DenseFusion), 640-ch output + pooled ap    (Pallas)
    rgbd640, ap = dense_fusion_pallas(feat1, df_params, tn)          # bf16 [B,N,640], f32 [B,1024]

    # Fold BN scale into weight columns and the ap contribution into the
    # first-layer bias of every head (wrapper-side, f32, tiny matmul).
    head_order = [("seg", n_classes, False),
                  ("kp", n_kps * 3, False),
                  ("ctr", 3, False),
                  ("ctr_sc", 1, True),
                  ("kp_sc", n_kps, True)]
    head_args, out_chs, sig_flags = [], [], []
    for name, oc, sig in head_order:
        w1, s1, t1, w2, s2, t2, w3, s3, t3, w4, b4 = head_params[name]
        w1f = w1 * s1                                                          # [1664,1024]
        bias1 = (ap @ w1f[640:, :] + t1).reshape(B, 1, 1024).astype(F32)       # ap folded in
        head_args.append((
            w1f[:640, :].astype(BF16), bias1,
            (w2 * s2).astype(BF16), t2.astype(F32),
            (w3 * s3).astype(BF16), t3.astype(F32),
            w4.astype(F32), b4.astype(F32)))
        out_chs.append(oc)
        sig_flags.append(sig)

    # all 5 prediction heads in one fused, row-tiled pallas_call     (Pallas)
    seg, kp, ctr, ctr_sc, kp_sc = fused_heads_pallas(
        rgbd640, head_args, out_chs, sig_flags, tm)

    end_points = {
        "pred_rgbd_segs":     seg.transpose(0, 2, 1),                               # [B, n_cls, N]
        "pred_kp_ofs":        kp.reshape(B, N, n_kps, 3).transpose(0, 2, 1, 3),     # [B, n_kps, N, 3]
        "pred_ctr_ofs":       ctr.reshape(B, N, 1, 3).transpose(0, 2, 1, 3),        # [B, 1, N, 3]
        "pred_ctr_ofs_score": ctr_sc.reshape(B, N, 1, 1).transpose(0, 2, 1, 3),     # [B, 1, N, 1]
        "pred_kp_ofs_score":  kp_sc.reshape(B, N, n_kps, 1).transpose(0, 2, 1, 3),  # [B, n_kps, N, 1]
    }
    return end_points, rgbd640, ap


# ----------------------------------------------------------------------------
if __name__ == "__main__":
    key = jax.random.PRNGKey(0)
    B, N = 2, 128                 # batch, n_pts (small test shapes)
    H, W = 16, 16                 # small feature map for the `choose` gather
    C_EMB = 64                    # DenseFusion requires 64-ch rgb and point embeddings
    N_CLASSES, N_KPS = 4, 8

    k_in, k_df, k_h = jax.random.split(key, 3)
    k_rgb, k_p, k_ch = jax.random.split(k_in, 3)

    # Synthetic stand-ins for the (unimplemented) backbone outputs.
    rgb_feat = jax.random.normal(k_rgb, (B, C_EMB, H, W), F32)    # cnn_up_stages output
    p_emb = jax.random.normal(k_p, (B, C_EMB, N), F32)            # rndla_up_stages output
    choose = jax.random.randint(k_ch, (B, 1, N), 0, H * W, jnp.int32)  # inputs['choose']

    df_params = init_dense_fusion_params(k_df)
    kh = jax.random.split(k_h, 5)
    head_params = {
        "seg":    init_head_params(kh[0], N_CLASSES),
        "kp":     init_head_params(kh[1], N_KPS * 3),
        "ctr":    init_head_params(kh[2], 3),
        "ctr_sc": init_head_params(kh[3], 1),
        "kp_sc":  init_head_params(kh[4], N_KPS),
    }

    end_points, rgbd640, ap = ffb6d_head_forward(
        rgb_feat, p_emb, choose, df_params, head_params, N_CLASSES, N_KPS)
    jax.block_until_ready(end_points)

    # --- correctness checks against pure-JAX f32 references ---
    rgb_c = jnp.transpose(
        jnp.take_along_axis(rgb_feat.reshape(B, C_EMB, H * W),
                            jnp.broadcast_to(choose.reshape(B, 1, N), (B, C_EMB, N)),
                            axis=2), (0, 2, 1))
    cld_c = jnp.transpose(p_emb, (0, 2, 1))
    rgbd_ref = ref_dense_fusion(rgb_c, cld_c, df_params)          # [B, N, 1664]

    assert jnp.allclose(rgbd640.astype(F32), rgbd_ref[..., :640],
                        rtol=5e-2, atol=5e-2), "DenseFusion (640-ch) mismatch"
    assert jnp.allclose(ap, rgbd_ref[:, 0, 640:],
                        rtol=5e-2, atol=5e-2), "DenseFusion pooled ap mismatch"

    x2d_ref = rgbd_ref.reshape(B * N, 1664)
    seg_ref = ref_head(x2d_ref, head_params["seg"], False)
    seg_ref = seg_ref.reshape(B, N, N_CLASSES).transpose(0, 2, 1)
    assert jnp.allclose(end_points["pred_rgbd_segs"], seg_ref,
                        rtol=5e-2, atol=5e-2), "seg head mismatch"

    kps_ref = ref_head(x2d_ref, head_params["kp_sc"], True)
    kps_ref = kps_ref.reshape(B, N, N_KPS, 1).transpose(0, 2, 1, 3)
    assert jnp.allclose(end_points["pred_kp_ofs_score"], kps_ref,
                        rtol=5e-2, atol=5e-2), "kp score head mismatch"

    kp_ref = ref_head(x2d_ref, head_params["kp"], False)
    kp_ref = kp_ref.reshape(B, N, N_KPS, 3).transpose(0, 2, 1, 3)
    assert jnp.allclose(end_points["pred_kp_ofs"], kp_ref,
                        rtol=5e-2, atol=5e-2), "kp offset head mismatch"

    assert end_points["pred_rgbd_segs"].shape == (B, N_CLASSES, N)
    assert end_points["pred_kp_ofs"].shape == (B, N_KPS, N, 3)
    assert end_points["pred_ctr_ofs"].shape == (B, 1, N, 3)
    assert end_points["pred_ctr_ofs_score"].shape == (B, 1, N, 1)
    assert end_points["pred_kp_ofs_score"].shape == (B, N_KPS, N, 1)
    for v in end_points.values():
        assert bool(jnp.all(jnp.isfinite(v)))

    print("KERNEL_OK")
</pallas_src>

<mosaic_0001>
module attributes {stable_mosaic.version = 11 : i64} {
  func.func @dense_fusion_kernel(%arg0: i32, %arg1: i32, %arg2: memref<1x128x128xbf16, #tpu.memory_space<vmem>>, %arg3: memref<128x1024xbf16, #tpu.memory_space<vmem>>, %arg4: memref<1x1024xf32, #tpu.memory_space<vmem>>, %arg5: memref<512x1024xbf16, #tpu.memory_space<vmem>>, %arg6: memref<1x1024xf32, #tpu.memory_space<vmem>>, %arg7: memref<1x128x640xbf16, #tpu.memory_space<vmem>>, %arg8: memref<1x1x8x1024xf32, #tpu.memory_space<vmem>>) attributes {dimension_semantics = [#tpu.dimension_semantics<parallel>, #tpu.dimension_semantics<parallel>], iteration_bounds = array<i64: 2, 1>, scalar_prefetch = 0 : i64, scratch_operands = 0 : i64, tpu.core_type = #tpu.core_type<tc>, window_params = [{transform_indices = @transform_0, window_bounds = array<i64: 1, 128, 128>}, {pipeline_mode = #tpu.pipeline_mode<synchronous>, transform_indices = @transform_1, window_bounds = array<i64: 128, 1024>}, {pipeline_mode = #tpu.pipeline_mode<synchronous>, transform_indices = @transform_2, window_bounds = array<i64: 1, 1024>}, {pipeline_mode = #tpu.pipeline_mode<synchronous>, transform_indices = @transform_3, window_bounds = array<i64: 512, 1024>}, {pipeline_mode = #tpu.pipeline_mode<synchronous>, transform_indices = @transform_4, window_bounds = array<i64: 1, 1024>}, {transform_indices = @transform_5, window_bounds = array<i64: 1, 128, 640>}, {transform_indices = @transform_6, window_bounds = array<i64: 1, 1, 8, 1024>}]} {
    %c0 = arith.constant 0 : index
    %c0_0 = arith.constant 0 : index
    %c0_1 = arith.constant 0 : index
    %0 = vector.load %arg2[%c0, %c0_0, %c0_1] : memref<1x128x128xbf16, #tpu.memory_space<vmem>>, vector<1x128x128xbf16>
    %1 = vector.shape_cast %0 : vector<1x128x128xbf16> to vector<128x128xbf16>
    %c0_2 = arith.constant 0 : index
    %c0_3 = arith.constant 0 : index
    %2 = vector.load %arg3[%c0_2, %c0_3] : memref<128x1024xbf16, #tpu.memory_space<vmem>>, vector<128x1024xbf16>
    %cst = arith.constant dense<0.000000e+00> : vector<128x1024xf32>
    %3 = tpu.matmul %1, %2, %cst {dimension_numbers = #tpu.dot_dimension_numbers<[1], [0], [0], [1], [0, 0, 1, 1], [], []>} : vector<128x128xbf16>, vector<128x1024xbf16>, vector<128x1024xf32> -> vector<128x1024xf32>
    %c0_4 = arith.constant 0 : index
    %c0_5 = arith.constant 0 : index
    %4 = vector.load %arg4[%c0_4, %c0_5] : memref<1x1024xf32, #tpu.memory_space<vmem>>, vector<1x1024xf32>
    %5 = vector.broadcast %4 : vector<1x1024xf32> to vector<128x1024xf32>
    %6 = arith.addf %3, %5 : vector<128x1024xf32>
    %cst_6 = arith.constant 0.000000e+00 : f32
    %7 = vector.broadcast %cst_6 : f32 to vector<128x1024xf32>
    %8 = arith.maximumf %6, %7 : vector<128x1024xf32>
    %9 = vector.extract_strided_slice %8 {offsets = [0, 512], sizes = [128, 512], strides = [1, 1]} : vector<128x1024xf32> to vector<128x512xf32>
    %10 = arith.truncf %9 : vector<128x512xf32> to vector<128x512xbf16>
    %c0_7 = arith.constant 0 : index
    %c0_8 = arith.constant 0 : index
    %11 = vector.load %arg5[%c0_7, %c0_8] : memref<512x1024xbf16, #tpu.memory_space<vmem>>, vector<512x1024xbf16>
    %cst_9 = arith.constant dense<0.000000e+00> : vector<128x1024xf32>
    %12 = tpu.matmul %10, %11, %cst_9 {dimension_numbers = #tpu.dot_dimension_numbers<[1], [0], [0], [1], [0, 0, 1, 1], [], []>} : vector<128x512xbf16>, vector<512x1024xbf16>, vector<128x1024xf32> -> vector<128x1024xf32>
    %c0_10 = arith.constant 0 : index
    %c0_11 = arith.constant 0 : index
    %13 = vector.load %arg6[%c0_10, %c0_11] : memref<1x1024xf32, #tpu.memory_space<vmem>>, vector<1x1024xf32>
    %14 = vector.broadcast %13 : vector<1x1024xf32> to vector<128x1024xf32>
    %15 = arith.addf %12, %14 : vector<128x1024xf32>
    %cst_12 = arith.constant 0.000000e+00 : f32
    %16 = vector.broadcast %cst_12 : f32 to vector<128x1024xf32>
    %17 = arith.maximumf %15, %16 : vector<128x1024xf32>
    %c0_13 = arith.constant 0 : index
    %c0_14 = arith.constant 0 : index
    %c0_15 = arith.constant 0 : index
    %18 = vector.load %arg7[%c0_13, %c0_14, %c0_15] : memref<1x128x640xbf16, #tpu.memory_space<vmem>>, vector<1x128x128xbf16>
    %19 = vector.shape_cast %18 : vector<1x128x128xbf16> to vector<128x128xbf16>
    %20 = vector.shape_cast %1 : vector<128x128xbf16> to vector<1x128x128xbf16>
    tpu.vector_store %arg7[%c0_13, %c0_14, %c0_15], %20 {strides = array<i32>} : memref<1x128x640xbf16, #tpu.memory_space<vmem>>, vector<1x128x128xbf16>,
    %21 = vector.extract_strided_slice %8 {offsets = [0, 0], sizes = [128, 512], strides = [1, 1]} : vector<128x1024xf32> to vector<128x512xf32>
    %22 = arith.truncf %21 : vector<128x512xf32> to vector<128x512xbf16>
    %c0_16 = arith.constant 0 : index
    %c0_17 = arith.constant 0 : index
    %c128 = arith.constant 128 : index
    %23 = vector.load %arg7[%c0_16, %c0_17, %c128] : memref<1x128x640xbf16, #tpu.memory_space<vmem>>, vector<1x128x512xbf16>
    %24 = vector.shape_cast %23 : vector<1x128x512xbf16> to vector<128x512xbf16>
    %25 = vector.shape_cast %22 : vector<128x512xbf16> to vector<1x128x512xbf16>
    tpu.vector_store %arg7[%c0_16, %c0_17, %c128], %25 {strides = array<i32>} : memref<1x128x640xbf16, #tpu.memory_space<vmem>>, vector<1x128x512xbf16>,
    %26 = vector.shape_cast %17 : vector<128x1024xf32> to vector<16x8x1024xf32>
    %cst_18 = arith.constant dense<0.000000e+00> : vector<8x1024xf32>
    %27 = vector.multi_reduction <add>, %26, %cst_18 [0] : vector<16x8x1024xf32> to vector<8x1024xf32>
    %c0_19 = arith.constant 0 : index
    %c0_20 = arith.constant 0 : index
    %c0_21 = arith.constant 0 : index
    %c0_22 = arith.constant 0 : index
    %28 = vector.load %arg8[%c0_19, %c0_20, %c0_21, %c0_22] : memref<1x1x8x1024xf32, #tpu.memory_space<vmem>>, vector<1x1x8x1024xf32>
    %29 = vector.shape_cast %28 : vector<1x1x8x1024xf32> to vector<8x1024xf32>
    %30 = vector.shape_cast %27 : vector<8x1024xf32> to vector<1x1x8x1024xf32>
    tpu.vector_store %arg8[%c0_19, %c0_20, %c0_21, %c0_22], %30 {strides = array<i32>} : memref<1x1x8x1024xf32, #tpu.memory_space<vmem>>, vector<1x1x8x1024xf32>,
    return
  }
  func.func @transform_0(%arg0: i32, %arg1: i32) -> (i32, i32, i32) {
    %c0_i32 = arith.constant 0 : i32
    %c0_i32_0 = arith.constant 0 : i32
    return %arg0, %arg1, %c0_i32 : i32, i32, i32
  }
  func.func @transform_1(%arg0: i32, %arg1: i32) -> (i32, i32) {
    %c0_i32 = arith.constant 0 : i32
    %c0_i32_0 = arith.constant 0 : i32
    %c0_i32_1 = arith.constant 0 : i32
    return %c0_i32, %c0_i32_0 : i32, i32
  }
  func.func @transform_2(%arg0: i32, %arg1: i32) -> (i32, i32) {
    %c0_i32 = arith.constant 0 : i32
    %c0_i32_0 = arith.constant 0 : i32
    %c0_i32_1 = arith.constant 0 : i32
    return %c0_i32, %c0_i32_0 : i32, i32
  }
  func.func @transform_3(%arg0: i32, %arg1: i32) -> (i32, i32) {
    %c0_i32 = arith.constant 0 : i32
    %c0_i32_0 = arith.constant 0 : i32
    %c0_i32_1 = arith.constant 0 : i32
    return %c0_i32, %c0_i32_0 : i32, i32
  }
  func.func @transform_4(%arg0: i32, %arg1: i32) -> (i32, i32) {
    %c0_i32 = arith.constant 0 : i32
    %c0_i32_0 = arith.constant 0 : i32
    %c0_i32_1 = arith.constant 0 : i32
    return %c0_i32, %c0_i32_0 : i32, i32
  }
  func.func @transform_5(%arg0: i32, %arg1: i32) -> (i32, i32, i32) {
    %c0_i32 = arith.constant 0 : i32
    %c0_i32_0 = arith.constant 0 : i32
    return %arg0, %arg1, %c0_i32 : i32, i32, i32
  }
  func.func @transform_6(%arg0: i32, %arg1: i32) -> (i32, i32, i32, i32) {
    %c0_i32 = arith.constant 0 : i32
    %c0_i32_0 = arith.constant 0 : i32
    %c0_i32_1 = arith.constant 0 : i32
    return %arg0, %arg1, %c0_i32, %c0_i32_0 : i32, i32, i32, i32
  }
}

</mosaic_0001>

<bundles_post_ra>
// kernel: tpu_custom_call.1
= control target key start
LH: loop header
LB: loop body
LE: loop exit
PB: predicated region body
PF: predicated region fallthrough
CT: control target
= control target key end

     0   :  { %s8676_s0 = inlined_call_operand.hbm [shape: bf16[2,128,128], index: 0, kind: input, shape index: {}]   ;;  %s8677_s1 = inlined_call_operand.hbm [shape: bf16[128,1024], index: 1, kind: input, shape index: {}]   ;;  %s8678_s2 = inlined_call_operand.hbm [shape: f32[1,1024], index: 2, kind: input, shape index: {}]   ;;  %s8679_s3 = inlined_call_operand.hbm [shape: bf16[512,1024], index: 3, kind: input, shape index: {}]   ;;  %s8680_s4 = inlined_call_operand.hbm [shape: f32[1,1024], index: 4, kind: input, shape index: {}]   ;;  %s8681_s5 = inlined_call_operand.hbm [shape: bf16[2,128,640], index: 5, kind: output, shape index: {0}]   ;;  %s8682_s6 = inlined_call_operand.hbm [shape: f32[2,1,8,1024], index: 6, kind: output, shape index: {1}]  }
   0x1   :  { %8717 = sst [smem:[#allocation35_spill]] %s8677_s1 }
   0x2   :  { %8718 = sst [smem:[#allocation36_spill]] %s8678_s2 }
   0x3   :  { %8719 = sst [smem:[#allocation37_spill]] %s8679_s3 }
   0x4   :  { %8720 = sst [smem:[#allocation38_spill]] %s8680_s4 }
   0x5   :  { %12 = vsyncpa [#allocation3], 0 }
   0x6   :  { %14 = vsyncpa [#allocation3 + $0x1], 0 }
   0x7   :  { %15 = vsyncpa [#allocation6], 0 }
   0x8   :  { %16 = vsyncpa [#allocation9], 0 }
   0x9   :  { %17 = vsyncpa [#allocation4], 0 }
   0xa   :  { %19 = vsyncpa [#allocation4 + $0x1], 0 }
   0xb   :  { %20 = vsyncpa [#allocation13], 0 }
   0xc   :  { %22 = vsyncpa [#allocation13 + $0x1], 0  ;;  %s7149_s21 = smov 0   ;;  %s7151_s22 = smov 0  }
   0xd   :  { %s7153_s23 = smov 0   ;;  %s7155_s24 = smov 0  }
   0xe   :  { %s7157_s25 = smov 0   ;;  %s7159_s26 = smov 0  }
   0xf LB: > { %s5045_s27 = sadd.s32 4294967295, %s7102_s26   ;;  %s5046_s28 = sadd.s32 4294967294, %s7102_s26   ;;  %s7102_s26 = sphi %s7159_s26, %s28_s26   ;;  %s7098_s25 = sphi %s7157_s25, %s8842_s25   ;;  %s7094_s24 = sphi %s7155_s24, %s8841_s24   ;;  %s7090_s23 = sphi %s7153_s23, %s8840_s23   ;;  %s7086_s22 = sphi %s7151_s22, %s8839_s22   ;;  %s7082_s21 = sphi %s7149_s21, %s8838_s21  }
  0x10   : > { %p62_p0 = scmp.ne.s32.totalorder %s7086_s22, %s7082_s21  ;;  %p7183_p1 = scmp.eq.s32.totalorder %s5045_s27, 0 }
  0x11   : > { %p7187_p2 = scmp.eq.s32.totalorder %s5045_s27, 1  ;;  %p178_p3 = scmp.eq.s32.totalorder %s5046_s28, 1 }
  0x12   : > { %p7193_p4 = por %p7183_p1, %p62_p0  ;;  %p5047_p5 = scmp.ge.s32.totalorder %s7102_s26, 1 }
  0x13   : > { %p7198_p6 = por %p178_p3, %p62_p0  ;;  %p213_p7 = scmp.lt.s32.totalorder %s7102_s26, 3 }
  0x14   : > { %s8725_s1 = sld [smem:[#allocation35_spill]]  ;;  %s7104_s13 = smov [#allocation5]  }
  0x15   : > { %p7206_p8 = pnand %p5047_p5, %p213_p7  ;;  %s226_s14 = sshll.u32 %s7104_s13, 4  ;;  %s227_s14 = int_to_ptr.vmem [resolvable:$true] %s226_s14 }
  0x16   : > { %p5052_p11 = scmp.ge.s32.totalorder %s7102_s26, 2  ;;  %s8728_s3 = sld [smem:[#allocation37_spill]] }
  0x17   : > { %p6735_p9 = pneg %p7206_p8  ;;  %s7105_s19 = smov 512  }
  0x18   : > { %s7106_s20 = smov 32   ;;  %s7107_s27 = smov [#allocation8]  }
  0x19   : > { %p7214_p10 = pnand %p6735_p9, %p7183_p1  ;;  %s252_s28 = sshll.u32 %s7107_s27, 4  ;;  %s253_s28 = int_to_ptr.vmem [resolvable:$true] %s252_s28 }
  0x1a   : > { %s224_s11 = sshll.u32 %s8725_s1, 4  ;;  %s8729_s2 = sld [smem:[#allocation36_spill]]  ;;  %s225_s11 = int_to_ptr.hbm [resolvable:$true] %s224_s11 }
  0x1b   : > { %6738 = dma.hbm_to_vmem [thread:$0]  (!%p7214_p10), %s225_s11, 8192, %s227_s14, [#allocation6], %s7105_s19, %s7105_s19, %s7106_s20  }
  0x1c   : > { %s250_s18 = sshll.u32 %s8728_s3, 4  ;;  %s8730_s4 = sld [smem:[#allocation38_spill]]  ;;  %s251_s18 = int_to_ptr.hbm [resolvable:$true] %s250_s18 }
  0x1d   : > { %6744 = dma.hbm_to_vmem [thread:$0]  (!%p7214_p10), %s251_s18, 32768, %s253_s28, [#allocation9], %s7105_s19, %s7105_s19, %s7106_s20  }
  0x1e   : > { %s7108_s14 = smov [#allocation7]   ;;  %s7109_s27 = smov [#allocation10]  }
  0x1f   : > { %s241_s1 = sshll.u32 %s7108_s14, 4  ;;  %s267_s9 = sshll.u32 %s7109_s27, 4  ;;  %s242_s1 = int_to_ptr.vmem [resolvable:$true] %s241_s1  ;;  %s268_s9 = int_to_ptr.vmem [resolvable:$true] %s267_s9 }
  0x20   : > { %s239_s13 = sshll.u32 %s8729_s2, 4  ;;  %s40_s18 = sadd.s32 1, %s7098_s25  ;;  %s240_s13 = int_to_ptr.hbm [resolvable:$true] %s239_s13 }
  0x21   : > { %6741 = dma.hbm_to_vmem [thread:$0]  (!%p7214_p10), %s240_s13, 128, %s242_s1, [#allocation6]  }
  0x22   : > { %s265_s11 = sshll.u32 %s8730_s4, 4  ;;  %s49_s19 = sadd.s32 1, %s7090_s23  ;;  %s266_s11 = int_to_ptr.hbm [resolvable:$true] %s265_s11 }
  0x23   : > { %6747 = dma.hbm_to_vmem [thread:$0]  (!%p7214_p10), %s266_s11, 128, %s268_s9, [#allocation9]  }
  0x24   : > { %p42_p12 = scmp.ge.s32.totalorder %s40_s18, 2  ;;  %p56_p13 = scmp.ne.s32.totalorder %s7090_s23, %s7086_s22 }
  0x25   : > { %p57_p0 = scmp.eq.s32.totalorder %s7102_s26, 0  ;;  %p6763_p3 = scmp.lt.s32.totalorder %s7102_s26, 2 }
  0x26   : > { %s8844_s18 = smov (%p42_p12, %s40_s18), 0  ;;  %p7250_p7 = por %p7187_p2, %p56_p13 }
  0x27   : > { %p7244_p5 = por %p57_p0, %p56_p13  ;;  %s44_s15 = ssub.s32 %s7098_s25, %s8844_s18 }
  0x28   : > { %s278_s28 = sand.u32 1, %s7090_s23   ;;  %p47_p9 = scmp.eq.s32.totalorder %s44_s15, 0 }
  0x29   : > { %s5053_s10 = sshll.u32 %s278_s28, 6  ;;  %s6381_s13 = sshll.u32 %s7098_s25, 6 }
  0x2a   : > { %s7259_s16 = scalar_select %p47_p9, %s7090_s23, %s49_s19  }
  0x2b   : > { %s289_s14 = scalar_lea.hbm %s8676_s0, %s6381_s13  ;;  %s282_s9 = scalar_lea.vmem [#allocation2], %s5053_s10 }
  0x2c   : > { %s290_s27 = sshll.u32 %s289_s14, 4  ;;  %s292_s2 = sshll.u32 %s282_s9, 4  ;;  %s291_s27 = int_to_ptr.hbm [resolvable:$true] %s290_s27  ;;  %s293_s2 = int_to_ptr.vmem [resolvable:$true] %s292_s2 }
  0x2d   : > { %p6749_p2 = pnand %p6763_p3, %p7244_p5  ;;  %s279_s30 = scalar_lea.sflag [#allocation3], %s278_s28 }
  0x2e   : > { %s7110_s3 = smov 64   ;;  %s7111_s4 = smov 4  }
  0x2f   : > { %6751 = dma.hbm_to_vmem [thread:$0]  (!%p6749_p2), %s291_s27, 1024, %s293_s2, %s279_s30, %s7110_s3, %s7110_s3, %s7111_s4  }
  0x30   : > { %304 = sbr.rel (%p7206_p8) target bundleno = 1532 (0x5fc), region = 40 }
  0x35   : > { %s7271_s19 = sand.u32 1, %s7086_s22  }
  0x36   : > { %s5057_s15 = sshll.u32 %s7271_s19, 6  ;;  %s307_s10 = scalar_lea.sflag [#allocation3], %s7271_s19 }
  0x37   : > { %s7277_s20 = scalar_lea.vmem [#allocation2], %s5057_s15 }
  0x38   : > { %7061 = dma.done.wait (%p7193_p4), %s307_s10, 1024  }
  0x39   : > { %7063 = vsyncadd (%p7193_p4), %s307_s10, 4294966272 }
  0x3a   : > { %7065 = dma.done.wait (%p7183_p1), [#allocation6], 8320  }
  0x3b   : > { %7067 = vsyncadd (%p7183_p1), [#allocation6], 4294958976 }
  0x3c   : > { %7069 = dma.done.wait (%p7183_p1), [#allocation9], 32896  }
  0x3d   : > { %7071 = vsyncadd (%p7183_p1), [#allocation9], 4294934400  ;;  %v5321_v0 = vld [vmem:[#allocation5 + $0x1c0] sm:$0xf]  ;;  %v6446_v2 = vld [vmem:[#allocation5 + $0x1c4] sm:$0xf] }
  0x3e   : > { %v6450_v1 = vld [vmem:[#allocation5 + $0x1dc] sm:$0xf0]  ;;  %v5323_v4 = vld [vmem:[#allocation5 + $0x1e0] sm:$0xf0]  ;;  %v5329_v5 = vld [vmem:[#allocation5 + $0x1c8] sm:$0xf] }
  0x3f   : > { %v5322_v3 = vor.u32 %v6450_v1, %v5321_v0  ;;  %v6451_v6 = vld [vmem:[#allocation5 + $0x1e4] sm:$0xf0]  ;;  %v5326_v7 = vor.u32 %v6446_v2, %v5323_v4  ;;  %v6447_v9 = vld [vmem:[#allocation5 + $0x1cc] sm:$0xf]  ;;  %v5289_v11 = vld [vmem:[#allocation5 + $0x180] sm:$0xf] }
  0x40   : > { %v5330_v8 = vor.u32 %v6451_v6, %v5329_v5  ;;  %v5331_v10 = vld [vmem:[#allocation5 + $0x1e8] sm:$0xf0]  ;;  %v6442_v13 = vld [vmem:[#allocation5 + $0x19c] sm:$0xf0]  ;;  %v6438_v14 = vld [vmem:[#allocation5 + $0x184] sm:$0xf] }
  0x41   : > { %833 = vmatpush.bf16.msra.mxu0 %v5322_v3  ;;  %v5334_v12 = vor.u32 %v6447_v9, %v5331_v10  ;;  %v5291_v15 = vld [vmem:[#allocation5 + $0x1a0] sm:$0xf0]  ;;  %882 = vmatpush.bf16.msra.mxu1 %v5326_v7  ;;  %v5290_v16 = vor.u32 %v6442_v13, %v5289_v11  ;;  %v5297_v18 = vld [vmem:[#allocation5 + $0x188] sm:$0xf]  ;;  %v6439_v20 = vld [vmem:[#allocation5 + $0x18c] sm:$0xf] }
  0x42   : > { %931 = vmatpush.bf16.msra.mxu2 %v5330_v8  ;;  %v5294_v17 = vor.u32 %v6438_v14, %v5291_v15  ;;  %v6443_v19 = vld [vmem:[#allocation5 + $0x1a4] sm:$0xf0]  ;;  %v5299_v22 = vld [vmem:[#allocation5 + $0x1a8] sm:$0xf0]  ;;  %v5257_v23 = vld [vmem:[#allocation5 + $0x140] sm:$0xf] }
  0x43   : > { %980 = vmatpush.bf16.msra.mxu3 %v5334_v12  ;;  %v5298_v21 = vor.u32 %v6443_v19, %v5297_v18  ;;  %v6434_v24 = vld [vmem:[#allocation5 + $0x15c] sm:$0xf0]  ;;  %v5302_v25 = vor.u32 %v6439_v20, %v5299_v22  ;;  %v6430_v26 = vld [vmem:[#allocation5 + $0x144] sm:$0xf]  ;;  %v5265_v28 = vld [vmem:[#allocation5 + $0x148] sm:$0xf] }
  0x44   : > { %v5259_v27 = vld [vmem:[#allocation5 + $0x160] sm:$0xf0]  ;;  %v5258_v29 = vor.u32 %v6434_v24, %v5257_v23  ;;  %v6435_v30 = vld [vmem:[#allocation5 + $0x164] sm:$0xf0]  ;;  %v6431_v31 = vld [vmem:[#allocation5 + $0x14c] sm:$0xf] }
  0x45   : > { %834 = vmatpush.bf16.msra.mxu0 %v5290_v16  ;;  %v5267_v32 = vld [vmem:[#allocation5 + $0x168] sm:$0xf0]  ;;  %883 = vmatpush.bf16.msra.mxu1 %v5294_v17  ;;  %v5262_v33 = vor.u32 %v6430_v26, %v5259_v27  ;;  %v5266_v34 = vor.u32 %v6435_v30, %v5265_v28  ;;  %v5225_v35 = vld [vmem:[#allocation5 + $0x100] sm:$0xf]  ;;  %v6422_v37 = vld [vmem:[#allocation5 + $0x104] sm:$0xf] }
  0x46   : > { %932 = vmatpush.bf16.msra.mxu2 %v5298_v21  ;;  %v6426_v36 = vld [vmem:[#allocation5 + $0x11c] sm:$0xf0]  ;;  %v5270_v38 = vor.u32 %v6431_v31, %v5267_v32  ;;  %v5227_v39 = vld [vmem:[#allocation5 + $0x120] sm:$0xf0]  ;;  %v5233_v40 = vld [vmem:[#allocation5 + $0x108] sm:$0xf] }
  0x47   : > { %981 = vmatpush.bf16.msra.mxu3 %v5302_v25  ;;  %v6427_v41 = vld [vmem:[#allocation5 + $0x124] sm:$0xf0]  ;;  %v6423_v42 = vld [vmem:[#allocation5 + $0x10c] sm:$0xf]  ;;  %v5226_v44 = vor.u32 %v6426_v36, %v5225_v35  ;;  %v5230_v45 = vor.u32 %v6422_v37, %v5227_v39  ;;  %v5193_v47 = vld [vmem:[#allocation5 + $0xc0] sm:$0xf] }
  0x48   : > { %v5235_v43 = vld [vmem:[#allocation5 + $0x128] sm:$0xf0]  ;;  %v5234_v46 = vor.u32 %v6427_v41, %v5233_v40  ;;  %v6418_v48 = vld [vmem:[#allocation5 + $0xdc] sm:$0xf0]  ;;  %v6414_v49 = vld [vmem:[#allocation5 + $0xc4] sm:$0xf] }
  0x49   : > { %835 = vmatpush.bf16.msra.mxu0 %v5258_v29  ;;  %884 = vmatpush.bf16.msra.mxu1 %v5262_v33  ;;  %v5238_v50 = vor.u32 %v6423_v42, %v5235_v43  ;;  %v5195_v51 = vld [vmem:[#allocation5 + $0xe0] sm:$0xf0]  ;;  %v5201_v52 = vld [vmem:[#allocation5 + $0xc8] sm:$0xf]  ;;  %v6415_v54 = vld [vmem:[#allocation5 + $0xcc] sm:$0xf]  ;;  %v5194_v56 = vor.u32 %v6418_v48, %v5193_v47 }
  0x4a   : > { %933 = vmatpush.bf16.msra.mxu2 %v5266_v34  ;;  %v6419_v53 = vld [vmem:[#allocation5 + $0xe4] sm:$0xf0]  ;;  %v5203_v55 = vld [vmem:[#allocation5 + $0xe8] sm:$0xf0]  ;;  %v5198_v57 = vor.u32 %v6414_v49, %v5195_v51  ;;  %v5161_v59 = vld [vmem:[#allocation5 + $0x80] sm:$0xf] }
  0x4b   : > { %982 = vmatpush.bf16.msra.mxu3 %v5270_v38  ;;  %v5202_v58 = vor.u32 %v6419_v53, %v5201_v52  ;;  %v6410_v60 = vld [vmem:[#allocation5 + $0x9c] sm:$0xf0]  ;;  %v6406_v61 = vld [vmem:[#allocation5 + $0x84] sm:$0xf]  ;;  %v5206_v62 = vor.u32 %v6415_v54, %v5203_v55  ;;  %v5169_v0 = vld [vmem:[#allocation5 + $0x88] sm:$0xf] }
  0x4c   : > { %v5163_v63 = vld [vmem:[#allocation5 + $0xa0] sm:$0xf0]  ;;  %v6411_v1 = vld [vmem:[#allocation5 + $0xa4] sm:$0xf0]  ;;  %v6407_v2 = vld [vmem:[#allocation5 + $0x8c] sm:$0xf]  ;;  %v5162_v4 = vor.u32 %v6410_v60, %v5161_v59 }
  0x4d   : > { %836 = vmatpush.bf16.msra.mxu0 %v5226_v44  ;;  %885 = vmatpush.bf16.msra.mxu1 %v5230_v45  ;;  %v5171_v3 = vld [vmem:[#allocation5 + $0xa8] sm:$0xf0]  ;;  %v5166_v5 = vor.u32 %v6406_v61, %v5163_v63  ;;  %v5170_v6 = vor.u32 %v6411_v1, %v5169_v0  ;;  %v5129_v7 = vld [vmem:[#allocation5 + $0x40] sm:$0xf]  ;;  %v6398_v9 = vld [vmem:[#allocation5 + $0x44] sm:$0xf] }
  0x4e   : > { %934 = vmatpush.bf16.msra.mxu2 %v5234_v46  ;;  %v6402_v8 = vld [vmem:[#allocation5 + $0x5c] sm:$0xf0]  ;;  %v5174_v10 = vor.u32 %v6407_v2, %v5171_v3  ;;  %v5131_v11 = vld [vmem:[#allocation5 + $0x60] sm:$0xf0]  ;;  %v5137_v12 = vld [vmem:[#allocation5 + $0x48] sm:$0xf] }
  0x4f   : > { %983 = vmatpush.bf16.msra.mxu3 %v5238_v50  ;;  %v6403_v13 = vld [vmem:[#allocation5 + $0x64] sm:$0xf0]  ;;  %v6399_v14 = vld [vmem:[#allocation5 + $0x4c] sm:$0xf]  ;;  %v5130_v16 = vor.u32 %v6402_v8, %v5129_v7  ;;  %v5097_v17 = vld [vmem:[#allocation5] sm:$0xf]  ;;  %v5134_v18 = vor.u32 %v6398_v9, %v5131_v11 }
  0x50   : > { %v5139_v15 = vld [vmem:[#allocation5 + $0x68] sm:$0xf0]  ;;  %v5138_v19 = vor.u32 %v6403_v13, %v5137_v12  ;;  %v6394_v20 = vld [vmem:[#allocation5 + $0x1c] sm:$0xf0]  ;;  %v6390_v21 = vld [vmem:[#allocation5 + $0x4] sm:$0xf] }
  0x51   : > { %837 = vmatpush.bf16.msra.mxu0 %v5194_v56  ;;  %886 = vmatpush.bf16.msra.mxu1 %v5198_v57  ;;  %v5099_v22 = vld [vmem:[#allocation5 + $0x20] sm:$0xf0]  ;;  %v5142_v23 = vor.u32 %v6399_v14, %v5139_v15  ;;  %v5105_v24 = vld [vmem:[#allocation5 + $0x8] sm:$0xf]  ;;  %v6391_v26 = vld [vmem:[#allocation5 + $0xc] sm:$0xf]  ;;  %v5098_v30 = vor.u32 %v6394_v20, %v5097_v17 }
  0x52   : > { %935 = vmatpush.bf16.msra.mxu2 %v5202_v58  ;;  %v6395_v25 = vld [vmem:[#allocation5 + $0x24] sm:$0xf0]  ;;  %v5107_v27 = vld [vmem:[#allocation5 + $0x28] sm:$0xf0]  ;;  %v5345_v28 = vld [vmem:[#allocation5 + $0x1d8] sm:$0xf]  ;;  %v5102_v33 = vor.u32 %v6390_v21, %v5099_v22 }
  0x53   : > { %984 = vmatpush.bf16.msra.mxu3 %v5206_v62  ;;  %v6453_v29 = vld [vmem:[#allocation5 + $0x1f4] sm:$0xf0]  ;;  %v6449_v31 = vld [vmem:[#allocation5 + $0x1dc] sm:$0xf]  ;;  %v5106_v34 = vor.u32 %v6395_v25, %v5105_v24  ;;  %v7292_v35 = vld [vmem:[%s7277_s20] sm:$0xff]  ;;  %v5110_v36 = vor.u32 %v6391_v26, %v5107_v27  ;;  %s6711_s2 = smul.u32 320, %s7271_s19 }
  0x54   : > { %v5347_v32 = vld [vmem:[#allocation5 + $0x1f8] sm:$0xf0]  ;;  %v5346_v37 = vor.u32 %v6453_v29, %v5345_v28  ;;  %v5337_v38 = vld [vmem:[#allocation5 + $0x1d0] sm:$0xf]  ;;  %v6448_v40 = vld [vmem:[#allocation5 + $0x1d4] sm:$0xf] }
  0x55   : > { %838 = vmatpush.bf16.msra.mxu0 %v5162_v4  ;;  %887 = vmatpush.bf16.msra.mxu1 %v5166_v5  ;;  %v6452_v39 = vld [vmem:[#allocation5 + $0x1ec] sm:$0xf0]  ;;  %v5350_v41 = vor.u32 %v6449_v31, %v5347_v32  ;;  %v5339_v42 = vld [vmem:[#allocation5 + $0x1f0] sm:$0xf0]  ;;  %v5313_v43 = vld [vmem:[#allocation5 + $0x198] sm:$0xf] }
  0x56   : > { %936 = vmatpush.bf16.msra.mxu2 %v5170_v6  ;;  %v6445_v44 = vld [vmem:[#allocation5 + $0x1b4] sm:$0xf0]  ;;  %v6441_v45 = vld [vmem:[#allocation5 + $0x19c] sm:$0xf]  ;;  %v5338_v47 = vor.u32 %v6452_v39, %v5337_v38  ;;  %v5342_v48 = vor.u32 %v6448_v40, %v5339_v42  ;;  %v5305_v50 = vld [vmem:[#allocation5 + $0x190] sm:$0xf] }
  0x57   : > { %985 = vmatpush.bf16.msra.mxu3 %v5174_v10  ;;  %v5315_v46 = vld [vmem:[#allocation5 + $0x1b8] sm:$0xf0]  ;;  %v5314_v49 = vor.u32 %v6445_v44, %v5313_v43  ;;  %v6444_v51 = vld [vmem:[#allocation5 + $0x1ac] sm:$0xf0]  ;;  %v6440_v53 = vld [vmem:[#allocation5 + $0x194] sm:$0xf] }
  0x58   : > { %v5318_v52 = vor.u32 %v6441_v45, %v5315_v46  ;;  %v5307_v54 = vld [vmem:[#allocation5 + $0x1b0] sm:$0xf0]  ;;  %v5306_v55 = vor.u32 %v6444_v51, %v5305_v50  ;;  %v5281_v56 = vld [vmem:[#allocation5 + $0x158] sm:$0xf]  ;;  %v6433_v58 = vld [vmem:[#allocation5 + $0x15c] sm:$0xf] }
  0x59   : > { %839 = vmatpush.bf16.msra.mxu0 %v5130_v16  ;;  %888 = vmatpush.bf16.msra.mxu1 %v5134_v18  ;;  %v6437_v57 = vld [vmem:[#allocation5 + $0x174] sm:$0xf0]  ;;  %v5310_v59 = vor.u32 %v6440_v53, %v5307_v54  ;;  %v5283_v61 = vld [vmem:[#allocation5 + $0x178] sm:$0xf0]  ;;  %v5273_v62 = vld [vmem:[#allocation5 + $0x150] sm:$0xf] }
  0x5a   : > { %937 = vmatpush.bf16.msra.mxu2 %v5138_v19  ;;  %v5282_v60 = vor.u32 %v6437_v57, %v5281_v56  ;;  %v6436_v63 = vld [vmem:[#allocation5 + $0x16c] sm:$0xf0]  ;;  %v5286_v0 = vor.u32 %v6433_v58, %v5283_v61  ;;  %v6432_v1 = vld [vmem:[#allocation5 + $0x154] sm:$0xf]  ;;  %v7299_v5 = vld [vmem:[%s7277_s20 + $0x8] sm:$0xff]  ;;  %s7368_s3 = scalar_lea.vmem [#allocation11], %s6711_s2 }
  0x5b   : > { %986 = vmatpush.bf16.msra.mxu3 %v5142_v23  ;;  %v5275_v2 = vld [vmem:[#allocation5 + $0x170] sm:$0xf0]  ;;  %v5274_v3 = vor.u32 %v6436_v63, %v5273_v62  ;;  %v5249_v6 = vld [vmem:[#allocation5 + $0x118] sm:$0xf]  ;;  %v6425_v8 = vld [vmem:[#allocation5 + $0x11c] sm:$0xf] }
  0x5c   : > { %v5278_v4 = vor.u32 %v6432_v1, %v5275_v2  ;;  %v6429_v7 = vld [vmem:[#allocation5 + $0x134] sm:$0xf0]  ;;  %v5251_v10 = vld [vmem:[#allocation5 + $0x138] sm:$0xf0]  ;;  %v5241_v11 = vld [vmem:[#allocation5 + $0x110] sm:$0xf] }
  0x5d   : > { %840 = vmatpush.bf16.msra.mxu0 %v5098_v30  ;;  %889 = vmatpush.bf16.msra.mxu1 %v5102_v33  ;;  %v5250_v9 = vor.u32 %v6429_v7, %v5249_v6  ;;  %v6428_v12 = vld [vmem:[#allocation5 + $0x12c] sm:$0xf0]  ;;  %v5254_v13 = vor.u32 %v6425_v8, %v5251_v10  ;;  %v6424_v15 = vld [vmem:[#allocation5 + $0x114] sm:$0xf]  ;;  %v5217_v19 = vld [vmem:[#allocation5 + $0xd8] sm:$0xf] }
  0x5e   : > { %938 = vmatpush.bf16.msra.mxu2 %v5106_v34  ;;  %v5242_v14 = vor.u32 %v6428_v12, %v5241_v11  ;;  %v5243_v16 = vld [vmem:[#allocation5 + $0x130] sm:$0xf0]  ;;  %v6421_v20 = vld [vmem:[#allocation5 + $0xf4] sm:$0xf0]  ;;  %v6417_v21 = vld [vmem:[#allocation5 + $0xdc] sm:$0xf] }
  0x5f   : > { %987 = vmatpush.bf16.msra.mxu3 %v5110_v36  ;;  %v5246_v17 = vor.u32 %v6424_v15, %v5243_v16  ;;  %v7306_v18 = vld [vmem:[%s7277_s20 + $0x10] sm:$0xff]  ;;  %v5218_v22 = vor.u32 %v6421_v20, %v5217_v19  ;;  %v5219_v23 = vld [vmem:[#allocation5 + $0xf8] sm:$0xf0]  ;;  %v5185_v32 = vld [vmem:[#allocation5 + $0x98] sm:$0xf]  ;;  %s7815_s4 = scalar_lea.vmem [#allocation12], %s5057_s15 }
  0x60   : > { %841 = vmatmul.bf16.vlgmr.msra.gmra.mxu0 %v7292_v35  ;;  %890 = vmatmul.bf16.vlgmr.msra.gmra.mxu1 %v7292_v35  ;;  %v5209_v24 = vld [vmem:[#allocation5 + $0xd0] sm:$0xf]  ;;  %v5222_v26 = vor.u32 %v6417_v21, %v5219_v23  ;;  %v6416_v28 = vld [vmem:[#allocation5 + $0xd4] sm:$0xf]  ;;  %v7313_v31 = vld [vmem:[%s7277_s20 + $0x18] sm:$0xff]  ;;  %s6712_s29 = smul.u32 320, %s7094_s24 }
  0x61   : > { %939 = vmatmul.bf16.vlgmr.msra.gmra.mxu2 %v7292_v35  ;;  %1029 = vmatpush.bf16.msrb.mxu0 %v5338_v47  ;;  %v6420_v25 = vld [vmem:[#allocation5 + $0xec] sm:$0xf0]  ;;  %v5211_v29 = vld [vmem:[#allocation5 + $0xf0] sm:$0xf0]  ;;  %v6413_v33 = vld [vmem:[#allocation5 + $0xb4] sm:$0xf0] }
  0x62   : > { %1127 = vmatpush.bf16.msrb.mxu2 %v5346_v37  ;;  %988 = vmatmul.bf16.vlgmr.msra.gmra.mxu3 %v7292_v35  ;;  %v5210_v27 = vor.u32 %v6420_v25, %v5209_v24  ;;  %v5214_v30 = vor.u32 %v6416_v28, %v5211_v29  ;;  %v6409_v34 = vld [vmem:[#allocation5 + $0x9c] sm:$0xf]  ;;  %v5186_v36 = vor.u32 %v6413_v33, %v5185_v32  ;;  %v5177_v38 = vld [vmem:[#allocation5 + $0x90] sm:$0xf]  ;;  %v6408_v42 = vld [vmem:[#allocation5 + $0x94] sm:$0xf]  ;;  %s8595_s28 = scalar_lea.hbm %s8681_s5, %s6712_s29 }
  0x63   : > { %1176 = vmatpush.bf16.msrb.mxu3 %v5350_v41  ;;  %1078 = vmatpush.bf16.msrb.mxu1 %v5342_v48  ;;  %v5187_v37 = vld [vmem:[#allocation5 + $0xb8] sm:$0xf0]  ;;  %v6412_v39 = vld [vmem:[#allocation5 + $0xac] sm:$0xf0]  ;;  %v5179_v43 = vld [vmem:[#allocation5 + $0xb0] sm:$0xf0] }
  0x64   : > { %v5190_v40 = vor.u32 %v6409_v34, %v5187_v37  ;;  %v5178_v41 = vor.u32 %v6412_v39, %v5177_v38  ;;  %v5182_v44 = vor.u32 %v6408_v42, %v5179_v43  ;;  %v7320_v45 = vld [vmem:[%s7277_s20 + $0x20] sm:$0xff]  ;;  %v5153_v46 = vld [vmem:[#allocation5 + $0x58] sm:$0xf]  ;;  %v6401_v48 = vld [vmem:[#allocation5 + $0x5c] sm:$0xf]  ;;  %s4864_s13 = sshll.u32 %s7368_s3, 4  ;;  %s8614_s13 = int_to_ptr.vmem [resolvable:$true] %s4864_s13 }
  0x65   : > { %1030 = vmatpush.bf16.msrb.mxu0 %v5306_v55  ;;  %v6405_v47 = vld [vmem:[#allocation5 + $0x74] sm:$0xf0]  ;;  %v5155_v50 = vld [vmem:[#allocation5 + $0x78] sm:$0xf0]  ;;  %v5145_v51 = vld [vmem:[#allocation5 + $0x50] sm:$0xf] }
  0x66   : > { %1128 = vmatpush.bf16.msrb.mxu2 %v5314_v49  ;;  %v5154_v49 = vor.u32 %v6405_v47, %v5153_v46  ;;  %v5158_v53 = vor.u32 %v6401_v48, %v5155_v50  ;;  %v6400_v55 = vld [vmem:[#allocation5 + $0x54] sm:$0xf]  ;;  %v7327_v58 = vld [vmem:[%s7277_s20 + $0x28] sm:$0xff]  ;;  %v6393_v61 = vld [vmem:[#allocation5 + $0x1c] sm:$0xf]  ;;  %s4866_s17 = sshll.u32 %s8595_s28, 4  ;;  %s8616_s17 = int_to_ptr.hbm [resolvable:$true] %s4866_s17 }
  0x67   : > { %1177 = vmatpush.bf16.msrb.mxu3 %v5318_v52  ;;  %1079 = vmatpush.bf16.msrb.mxu1 %v5310_v59  ;;  %v6404_v52 = vld [vmem:[#allocation5 + $0x6c] sm:$0xf0]  ;;  %v5147_v56 = vld [vmem:[#allocation5 + $0x70] sm:$0xf0]  ;;  %v5121_v59 = vld [vmem:[#allocation5 + $0x18] sm:$0xf] }
  0x68   : > { %v5146_v54 = vor.u32 %v6404_v52, %v5145_v51  ;;  %v5150_v57 = vor.u32 %v6400_v55, %v5147_v56  ;;  %v5123_v63 = vld [vmem:[#allocation5 + $0x38] sm:$0xf0]  ;;  %v6396_v1 = vld [vmem:[#allocation5 + $0x2c] sm:$0xf0]  ;;  %v5115_v6 = vld [vmem:[#allocation5 + $0x30] sm:$0xf0] }
  0x69   : > { %1031 = vmatpush.bf16.msrb.mxu0 %v5274_v3  ;;  %v5126_v2 = vor.u32 %v6393_v61, %v5123_v63  ;;  %v7334_v8 = vld [vmem:[%s7277_s20 + $0x30] sm:$0xff]  ;;  %v6089_v10 = vld [vmem:[#allocation8 + $0x5c0] sm:$0xf]  ;;  %s4844_s11 = scalar_lea.sflag [#allocation4], %s7271_s19  ;;  %s6994_s14 = sshra.s32 %s8616_s17, 4  ;;  %s6995_s14 = int_to_ptr.hbm [resolvable:$true] %s6994_s14 }
  0x6a   : > { %1129 = vmatpush.bf16.msrb.mxu2 %v5282_v60  ;;  %v6397_v60 = vld [vmem:[#allocation5 + $0x34] sm:$0xf0]  ;;  %v6642_v11 = vld [vmem:[#allocation8 + $0x5dc] sm:$0xf0]  ;;  %s6996_s27 = scalar_lea.hbm %s6995_s14, 320  ;;  %s7000_s15 = scalar_lea.hbm %s8681_s5, 640 }
  0x6b   : > { %1178 = vmatpush.bf16.msrb.mxu3 %v5286_v0  ;;  %1080 = vmatpush.bf16.msrb.mxu1 %v5278_v4  ;;  %v5122_v62 = vor.u32 %v6397_v60, %v5121_v59  ;;  %v5113_v0 = vld [vmem:[#allocation5 + $0x10] sm:$0xf]  ;;  %v6392_v4 = vld [vmem:[#allocation5 + $0x14] sm:$0xf]  ;;  %v6090_v12 = vor.u32 %v6642_v11, %v6089_v10  ;;  %v5577_v16 = vld [vmem:[#allocation8 + $0x1c0] sm:$0xf]  ;;  %p6997_p1 = scmp.ne.s32.totalorder %s6995_s14, %s6996_s27  ;;  %p7001_p10 = scmp.lt.s32.totalorder %s6995_s14, %s8681_s5 }
  0x6c   : > { %v5114_v3 = vor.u32 %v6396_v1, %v5113_v0  ;;  %v5118_v7 = vor.u32 %v6392_v4, %v5115_v6  ;;  %v6345_v19 = vld [vmem:[#allocation8 + $0x7c0] sm:$0xf]  ;;  %p7002_p12 = scmp.lt.s32.totalorder %s7000_s15, %s6996_s27 }
  0x6d   : > { %1032 = vmatpush.bf16.msrb.mxu0 %v5242_v14  ;;  %v5833_v23 = vld [vmem:[#allocation8 + $0x3c0] sm:$0xf]  ;;  %p6998_p4 = pnand %p6997_p1, %p7250_p7 }
  0x6e   : > { %1130 = vmatpush.bf16.msrb.mxu2 %v5250_v9  ;;  %v7341_v9 = vld [vmem:[%s7277_s20 + $0x38] sm:$0xff]  ;;  %v6578_v24 = vld [vmem:[#allocation8 + $0x3dc] sm:$0xf0]  ;;  %p7003_p13 = por %p7002_p12, %p7001_p10 }
  0x6f   : > { %1179 = vmatpush.bf16.msrb.mxu3 %v5254_v13  ;;  %1081 = vmatpush.bf16.msrb.mxu1 %v5246_v17  ;;  %v7347_v13 = vld [vmem:[#allocation7] sm:$0xff]  ;;  %v6514_v17 = vld [vmem:[#allocation8 + $0x1dc] sm:$0xf0]  ;;  %v5834_v28 = vor.u32 %v6578_v24, %v5833_v23  ;;  %p6999_p8 = pneg %p6998_p4 }
  0x70   : > { %846 = vmatmul.bf16.gmra.mxu0 %v7299_v5  ;;  %895 = vmatmul.bf16.gmra.mxu1 %v7299_v5  ;;  %v7350_v14 = vperm.slane %v7347_v13, 0  ;;  %v7353_v15 = vperm.slane %v7347_v13, 1  ;;  %v5578_v21 = vor.u32 %v6514_v17, %v5577_v16  ;;  %v7362_v33 = vperm.slane %v7347_v13, 2  ;;  %v6634_v42 = vld [vmem:[#allocation8 + $0x59c] sm:$0xf0] }
  0x71   : > { %944 = vmatmul.bf16.gmra.mxu2 %v7299_v5  ;;  %1033 = vmatpush.bf16.msrb.mxu0 %v5210_v27  ;;  %v7366_v34 = vperm.slane %v7347_v13, 3  ;;  %v5545_v55 = vld [vmem:[#allocation8 + $0x180] sm:$0xf]  ;;  %p7004_p0 = pnand %p7003_p13, %p6999_p8 }
  0x72   : > { %993 = vmatmul.bf16.gmra.mxu3 %v7299_v5  ;;  %1131 = vmatpush.bf16.msrb.mxu2 %v5218_v22  ;;  %v6706_v22 = vld [vmem:[#allocation8 + $0x7dc] sm:$0xf0] }
  0x73   : > { %1180 = vmatpush.bf16.msrb.mxu3 %v5222_v26  ;;  %1082 = vmatpush.bf16.msrb.mxu1 %v5214_v30  ;;  %v6346_v27 = vor.u32 %v6706_v22, %v6345_v19  ;;  %v6506_v56 = vld [vmem:[#allocation8 + $0x19c] sm:$0xf0] }
  0x74   : > { %v5546_v61 = vor.u32 %v6506_v56, %v5545_v55  ;;  %v6698_v63 = vld [vmem:[#allocation8 + $0x79c] sm:$0xf0] }
  0x75   : > { %1034 = vmatpush.bf16.msrb.mxu0 %v5178_v41  ;;  %v6057_v41 = vld [vmem:[#allocation8 + $0x580] sm:$0xf] }
  0x76   : > { %1132 = vmatpush.bf16.msrb.mxu2 %v5186_v36  ;;  %v6058_v46 = vor.u32 %v6634_v42, %v6057_v41  ;;  %v5801_v4 = vld [vmem:[#allocation8 + $0x380] sm:$0xf] }
  0x77   : > { %1181 = vmatpush.bf16.msrb.mxu3 %v5190_v40  ;;  %1083 = vmatpush.bf16.msrb.mxu1 %v5182_v44  ;;  %v6570_v6 = vld [vmem:[#allocation8 + $0x39c] sm:$0xf0] }
  0x78   : > { %v5802_v11 = vor.u32 %v6570_v6, %v5801_v4  ;;  %v5513_v42 = vld [vmem:[#allocation8 + $0x140] sm:$0xf] }
  0x79   : > { %1035 = vmatpush.bf16.msrb.mxu0 %v5146_v54  ;;  %v6562_v55 = vld [vmem:[#allocation8 + $0x35c] sm:$0xf0] }
  0x7a   : > { %1133 = vmatpush.bf16.msrb.mxu2 %v5154_v49  ;;  %v5993_v6 = vld [vmem:[#allocation8 + $0x500] sm:$0xf] }
  0x7b   : > { %1182 = vmatpush.bf16.msrb.mxu3 %v5158_v53  ;;  %1084 = vmatpush.bf16.msrb.mxu1 %v5150_v57 }
  0x7d   : > { %1036 = vmatpush.bf16.msrb.mxu0 %v5114_v3 }
  0x7e   : > { %1134 = vmatpush.bf16.msrb.mxu2 %v5122_v62  ;;  %v6313_v62 = vld [vmem:[#allocation8 + $0x780] sm:$0xf] }
  0x7f   : > { %1183 = vmatpush.bf16.msrb.mxu3 %v5126_v2  ;;  %1085 = vmatpush.bf16.msrb.mxu1 %v5118_v7  ;;  %v6314_v3 = vor.u32 %v6698_v63, %v6313_v62 }
  0x80   : > { %851 = vmatmul.bf16.gmra.mxu0 %v7306_v18  ;;  %900 = vmatmul.bf16.gmra.mxu1 %v7306_v18 }
  0x81   : > { %949 = vmatmul.bf16.gmra.mxu2 %v7306_v18  ;;  %2939 = vmatpush.bf16.msra.mxu0 %v5578_v21 }
  0x82   : > { %998 = vmatmul.bf16.gmra.mxu3 %v7306_v18  ;;  %3037 = vmatpush.bf16.msra.mxu2 %v6090_v12 }
  0x83   : > { %3086 = vmatpush.bf16.msra.mxu3 %v6346_v27  ;;  %2988 = vmatpush.bf16.msra.mxu1 %v5834_v28 }
  0x85   : > { %2940 = vmatpush.bf16.msra.mxu0 %v5546_v61 }
  0x86   : > { %3038 = vmatpush.bf16.msra.mxu2 %v6058_v46 }
  0x87   : > { %3087 = vmatpush.bf16.msra.mxu3 %v6314_v3  ;;  %2989 = vmatpush.bf16.msra.mxu1 %v5802_v11 }
  0x90   : > { %856 = vmatmul.bf16.gmra.mxu0 %v7313_v31  ;;  %905 = vmatmul.bf16.gmra.mxu1 %v7313_v31 }
  0x91   : > { %954 = vmatmul.bf16.gmra.mxu2 %v7313_v31 }
  0x92   : > { %1003 = vmatmul.bf16.gmra.mxu3 %v7313_v31 }
  0xa0   : > { %861 = vmatmul.bf16.gmra.mxu0 %v7320_v45  ;;  %910 = vmatmul.bf16.gmra.mxu1 %v7320_v45 }
  0xa1   : > { %959 = vmatmul.bf16.gmra.mxu2 %v7320_v45 }
  0xa2   : > { %1008 = vmatmul.bf16.gmra.mxu3 %v7320_v45 }
  0xb0   : > { %866 = vmatmul.bf16.gmra.mxu0 %v7327_v58  ;;  %915 = vmatmul.bf16.gmra.mxu1 %v7327_v58 }
  0xb1   : > { %964 = vmatmul.bf16.gmra.mxu2 %v7327_v58 }
  0xb2   : > { %1013 = vmatmul.bf16.gmra.mxu3 %v7327_v58 }
  0xc0   : > { %871 = vmatmul.bf16.gmra.mxu0 %v7334_v8  ;;  %920 = vmatmul.bf16.gmra.mxu1 %v7334_v8 }
  0xc1   : > { %969 = vmatmul.bf16.gmra.mxu2 %v7334_v8 }
  0xc2   : > { %1018 = vmatmul.bf16.gmra.mxu3 %v7334_v8 }
  0xd0   : > { %876 = vmatmul.bf16.gmra.mxu0 %v7341_v9  ;;  %925 = vmatmul.bf16.gmra.mxu1 %v7341_v9 }
  0xd1   : > { %974 = vmatmul.bf16.gmra.mxu2 %v7341_v9 }
  0xd2   : > { %1023 = vmatmul.bf16.gmra.mxu3 %v7341_v9 }
  0xdd   : > { %v842_v20 = vpop.f32.mrf.mxu0  ;;  %v891_v26 = vpop.f32.mrf.mxu1 }
  0xde   : > { %v843_v25 = vadd.f32 %v842_v20, %v7350_v14  ;;  %v892_v29 = vadd.f32 %v891_v26, %v7353_v15  ;;  %v6626_v26 = vld [vmem:[#allocation8 + $0x55c] sm:$0xf0] }
  0xe0   : > { %v1225_v30 = vmax.f32 %v843_v25, 0.0  ;;  %1037 = vmatmul.bf16.vlgmr.msrb.gmra.mxu0 %v7292_v35  ;;  %v1226_v32 = vmax.f32 %v892_v29, 0.0  ;;  %1086 = vmatmul.bf16.vlgmr.msrb.gmra.mxu1 %v7292_v35  ;;  %v6025_v25 = vld [vmem:[#allocation8 + $0x540] sm:$0xf] }
  0xe1   : > { %1135 = vmatmul.bf16.vlgmr.msrb.gmra.mxu2 %v7292_v35 }
  0xe2   : > { %1184 = vmatmul.bf16.vlgmr.msrb.gmra.mxu3 %v7292_v35  ;;  %v4651_v36 = vpack.c.bf16 %v1226_v32, %v1225_v30  ;;  %v6026_v30 = vor.u32 %v6626_v26, %v6025_v25  ;;  %v5481_v25 = vld [vmem:[#allocation8 + $0x100] sm:$0xf] }
  0xe3   : > { %v6490_v26 = vld [vmem:[#allocation8 + $0x11c] sm:$0xf0] }
  0xe4   : > { %v940_v37 = vpop.f32.mrf.mxu2  ;;  %4683 = vst [vmem:[%s7368_s3 + $0x4] sm:$0xff] %v4651_v36  ;;  %3039 = vmatpush.bf16.msra.mxu2 %v6026_v30  ;;  %v5482_v30 = vor.u32 %v6490_v26, %v5481_v25 }
  0xe5   : > { %v941_v38 = vadd.f32 %v940_v37, %v7362_v33  ;;  %v989_v39 = vpop.f32.mrf.mxu3  ;;  %v844_v40 = vpop.f32.mrf.mxu0 }
  0xe6   : > { %v990_v43 = vadd.f32 %v989_v39, %v7366_v34  ;;  %v845_v35 = vadd.f32 %v844_v40, %v7350_v14  ;;  %v893_v44 = vpop.f32.mrf.mxu1 }
  0xe7   : > { %v1227_v47 = vmax.f32 %v941_v38, 0.0  ;;  %v894_v48 = vadd.f32 %v893_v44, %v7353_v15 }
  0xe8   : > { %v1228_v49 = vmax.f32 %v990_v43, 0.0  ;;  %v1233_v50 = vmax.f32 %v845_v35, 0.0  ;;  %v6498_v43 = vld [vmem:[#allocation8 + $0x15c] sm:$0xf0] }
  0xe9   : > { %v1234_v51 = vmax.f32 %v894_v48, 0.0  ;;  %v6281_v48 = vld [vmem:[#allocation8 + $0x740] sm:$0xf] }
  0xea   : > { %v4652_v52 = vpack.c.bf16 %v1228_v49, %v1227_v47  ;;  %v5514_v47 = vor.u32 %v6498_v43, %v5513_v42  ;;  %v6690_v49 = vld [vmem:[#allocation8 + $0x75c] sm:$0xf0] }
  0xeb   : > { %v4653_v53 = vpack.c.bf16 %v1234_v51, %v1233_v50 }
  0xec   : > { %4684 = vst [vmem:[%s7368_s3 + $0xc] sm:$0xff] %v4652_v52  ;;  %v942_v54 = vpop.f32.mrf.mxu2  ;;  %2941 = vmatpush.bf16.msra.mxu0 %v5514_v47 }
  0xed   : > { %4685 = vst [vmem:[%s7368_s3 + $0x18] sm:$0xff] %v4653_v53  ;;  %v943_v57 = vadd.f32 %v942_v54, %v7362_v33  ;;  %v991_v59 = vpop.f32.mrf.mxu3  ;;  %v847_v60 = vpop.f32.mrf.mxu0  ;;  %v6282_v53 = vor.u32 %v6690_v49, %v6281_v48  ;;  %v5769_v54 = vld [vmem:[#allocation8 + $0x340] sm:$0xf] }
  0xee   : > { %v992_v0 = vadd.f32 %v991_v59, %v7366_v34  ;;  %v848_v1 = vadd.f32 %v847_v60, %v7350_v14  ;;  %v896_v2 = vpop.f32.mrf.mxu1  ;;  %v5770_v59 = vor.u32 %v6562_v55, %v5769_v54  ;;  %v5961_v54 = vld [vmem:[#allocation8 + $0x4c0] sm:$0xf] }
  0xef   : > { %v1235_v7 = vmax.f32 %v943_v57, 0.0  ;;  %v897_v10 = vadd.f32 %v896_v2, %v7353_v15  ;;  %3088 = vmatpush.bf16.msra.mxu3 %v6282_v53  ;;  %v6610_v55 = vld [vmem:[#allocation8 + $0x4dc] sm:$0xf0] }
  0xf0   : > { %v1236_v12 = vmax.f32 %v992_v0, 0.0  ;;  %v1241_v16 = vmax.f32 %v848_v1, 0.0  ;;  %1042 = vmatmul.bf16.gmra.mxu0 %v7299_v5  ;;  %1091 = vmatmul.bf16.gmra.mxu1 %v7299_v5 }
  0xf1   : > { %v1242_v17 = vmax.f32 %v897_v10, 0.0  ;;  %1140 = vmatmul.bf16.gmra.mxu2 %v7299_v5  ;;  %2990 = vmatpush.bf16.msra.mxu1 %v5770_v59 }
  0xf2   : > { %v4654_v19 = vpack.c.bf16 %v1236_v12, %v1235_v7  ;;  %1189 = vmatmul.bf16.gmra.mxu3 %v7299_v5  ;;  %v6618_v7 = vld [vmem:[#allocation8 + $0x51c] sm:$0xf0]  ;;  %2942 = vmatpush.bf16.msra.mxu0 %v5482_v30 }
  0xf3   : > { %v4655_v20 = vpack.c.bf16 %v1242_v17, %v1241_v16  ;;  %v5994_v16 = vor.u32 %v6618_v7, %v5993_v6  ;;  %v6482_v6 = vld [vmem:[#allocation8 + $0xdc] sm:$0xf0] }
  0xf4   : > { %4686 = vst [vmem:[%s7368_s3 + $0x20] sm:$0xff] %v4654_v19  ;;  %v945_v21 = vpop.f32.mrf.mxu2 }
  0xf5   : > { %4687 = vst [vmem:[%s7368_s3 + $0x2c] sm:$0xff] %v4655_v20  ;;  %v946_v22 = vadd.f32 %v945_v21, %v7362_v33  ;;  %v994_v23 = vpop.f32.mrf.mxu3  ;;  %v849_v24 = vpop.f32.mrf.mxu0  ;;  %3040 = vmatpush.bf16.msra.mxu2 %v5994_v16  ;;  %v6217_v16 = vld [vmem:[#allocation8 + $0x6c0] sm:$0xf] }
  0xf6   : > { %v995_v27 = vadd.f32 %v994_v23, %v7366_v34  ;;  %v850_v28 = vadd.f32 %v849_v24, %v7350_v14  ;;  %v898_v29 = vpop.f32.mrf.mxu1 }
  0xf7   : > { %v1243_v5 = vmax.f32 %v946_v22, 0.0  ;;  %v899_v32 = vadd.f32 %v898_v29, %v7353_v15 }
  0xf8   : > { %v1244_v36 = vmax.f32 %v995_v27, 0.0  ;;  %v1249_v37 = vmax.f32 %v850_v28, 0.0 }
  0xf9   : > { %v1250_v38 = vmax.f32 %v899_v32, 0.0  ;;  %v6682_v32 = vld [vmem:[#allocation8 + $0x71c] sm:$0xf0] }
  0xfa   : > { %v4656_v39 = vpack.c.bf16 %v1244_v36, %v1243_v5  ;;  %v6249_v5 = vld [vmem:[#allocation8 + $0x700] sm:$0xf] }
  0xfb   : > { %v4657_v40 = vpack.c.bf16 %v1250_v38, %v1249_v37 }
  0xfc   : > { %4688 = vst [vmem:[%s7368_s3 + $0x34] sm:$0xff] %v4656_v39  ;;  %v947_v41 = vpop.f32.mrf.mxu2  ;;  %v6250_v39 = vor.u32 %v6682_v32, %v6249_v5 }
  0xfd   : > { %4689 = vst [vmem:[%s7368_s3 + $0x40] sm:$0xff] %v4657_v40  ;;  %v948_v35 = vadd.f32 %v947_v41, %v7362_v33  ;;  %v996_v44 = vpop.f32.mrf.mxu3  ;;  %v852_v46 = vpop.f32.mrf.mxu0  ;;  %v5737_v40 = vld [vmem:[#allocation8 + $0x300] sm:$0xf] }
  0xfe   : > { %v997_v50 = vadd.f32 %v996_v44, %v7366_v34  ;;  %v853_v51 = vadd.f32 %v852_v46, %v7350_v14  ;;  %v901_v52 = vpop.f32.mrf.mxu1  ;;  %v6554_v41 = vld [vmem:[#allocation8 + $0x31c] sm:$0xf0]  ;;  %3089 = vmatpush.bf16.msra.mxu3 %v6250_v39 }
  0xff   : > { %v1251_v56 = vmax.f32 %v948_v35, 0.0  ;;  %v902_v57 = vadd.f32 %v901_v52, %v7353_v15  ;;  %v5738_v35 = vor.u32 %v6554_v41, %v5737_v40  ;;  %v5929_v39 = vld [vmem:[#allocation8 + $0x480] sm:$0xf] }
 0x100   : > { %v1252_v60 = vmax.f32 %v997_v50, 0.0  ;;  %v1257_v61 = vmax.f32 %v853_v51, 0.0  ;;  %1047 = vmatmul.bf16.gmra.mxu0 %v7306_v18  ;;  %1096 = vmatmul.bf16.gmra.mxu1 %v7306_v18  ;;  %v6602_v40 = vld [vmem:[#allocation8 + $0x49c] sm:$0xf0] }
 0x101   : > { %v1258_v62 = vmax.f32 %v902_v57, 0.0  ;;  %1145 = vmatmul.bf16.gmra.mxu2 %v7306_v18  ;;  %2991 = vmatpush.bf16.msra.mxu1 %v5738_v35  ;;  %v5930_v35 = vor.u32 %v6602_v40, %v5929_v39 }
 0x102   : > { %v4658_v63 = vpack.c.bf16 %v1252_v60, %v1251_v56  ;;  %1194 = vmatmul.bf16.gmra.mxu3 %v7306_v18  ;;  %v5962_v60 = vor.u32 %v6610_v55, %v5961_v54 }
 0x103   : > { %v4659_v0 = vpack.c.bf16 %v1258_v62, %v1257_v61 }
 0x104   : > { %4690 = vst [vmem:[%s7368_s3 + $0x48] sm:$0xff] %v4658_v63  ;;  %v950_v1 = vpop.f32.mrf.mxu2  ;;  %3041 = vmatpush.bf16.msra.mxu2 %v5962_v60  ;;  %v6666_v60 = vld [vmem:[#allocation8 + $0x69c] sm:$0xf0] }
 0x105   : > { %4691 = vst [vmem:[%s7368_s3 + $0x54] sm:$0xff] %v4659_v0  ;;  %v951_v2 = vadd.f32 %v950_v1, %v7362_v33  ;;  %v999_v3 = vpop.f32.mrf.mxu3  ;;  %v854_v4 = vpop.f32.mrf.mxu0 }
 0x106   : > { %v1000_v10 = vadd.f32 %v999_v3, %v7366_v34  ;;  %v855_v11 = vadd.f32 %v854_v4, %v7350_v14  ;;  %v903_v12 = vpop.f32.mrf.mxu1  ;;  %v5449_v4 = vld [vmem:[#allocation8 + $0xc0] sm:$0xf] }
 0x107   : > { %v1259_v18 = vmax.f32 %v951_v2, 0.0  ;;  %v904_v17 = vadd.f32 %v903_v12, %v7353_v15  ;;  %v5450_v12 = vor.u32 %v6482_v6, %v5449_v4 }
 0x108   : > { %v1260_v19 = vmax.f32 %v1000_v10, 0.0  ;;  %v1265_v20 = vmax.f32 %v855_v11, 0.0  ;;  %3042 = vmatpush.bf16.msra.mxu2 %v5930_v35 }
 0x109   : > { %v1266_v21 = vmax.f32 %v904_v17, 0.0  ;;  %2943 = vmatpush.bf16.msra.mxu0 %v5450_v12 }
 0x10a   : > { %v4660_v22 = vpack.c.bf16 %v1260_v19, %v1259_v18  ;;  %v6674_v18 = vld [vmem:[#allocation8 + $0x6dc] sm:$0xf0] }
 0x10b   : > { %v4661_v23 = vpack.c.bf16 %v1266_v21, %v1265_v20  ;;  %v6218_v21 = vor.u32 %v6674_v18, %v6217_v16 }
 0x10c   : > { %4692 = vst [vmem:[%s7368_s3 + $0x5c] sm:$0xff] %v4660_v22  ;;  %v952_v24 = vpop.f32.mrf.mxu2  ;;  %v5705_v22 = vld [vmem:[#allocation8 + $0x2c0] sm:$0xf] }
 0x10d   : > { %4693 = vst [vmem:[%s7368_s3 + $0x68] sm:$0xff] %v4661_v23  ;;  %v953_v27 = vadd.f32 %v952_v24, %v7362_v33  ;;  %v1001_v28 = vpop.f32.mrf.mxu3  ;;  %v857_v29 = vpop.f32.mrf.mxu0  ;;  %v6546_v23 = vld [vmem:[#allocation8 + $0x2dc] sm:$0xf0]  ;;  %3090 = vmatpush.bf16.msra.mxu3 %v6218_v21 }
 0x10e   : > { %v1002_v36 = vadd.f32 %v1001_v28, %v7366_v34  ;;  %v858_v37 = vadd.f32 %v857_v29, %v7350_v14  ;;  %v906_v38 = vpop.f32.mrf.mxu1  ;;  %v5706_v26 = vor.u32 %v6546_v23, %v5705_v22  ;;  %v6594_v21 = vld [vmem:[#allocation8 + $0x45c] sm:$0xf0] }
 0x10f   : > { %v1267_v42 = vmax.f32 %v953_v27, 0.0  ;;  %v907_v43 = vadd.f32 %v906_v38, %v7353_v15 }
 0x110   : > { %v1268_v44 = vmax.f32 %v1002_v36, 0.0  ;;  %v1273_v46 = vmax.f32 %v858_v37, 0.0  ;;  %1052 = vmatmul.bf16.gmra.mxu0 %v7313_v31  ;;  %1101 = vmatmul.bf16.gmra.mxu1 %v7313_v31 }
 0x111   : > { %v1274_v47 = vmax.f32 %v907_v43, 0.0  ;;  %1150 = vmatmul.bf16.gmra.mxu2 %v7313_v31  ;;  %2992 = vmatpush.bf16.msra.mxu1 %v5706_v26 }
 0x112   : > { %v4662_v48 = vpack.c.bf16 %v1268_v44, %v1267_v42  ;;  %1199 = vmatmul.bf16.gmra.mxu3 %v7313_v31 }
 0x113   : > { %v4663_v49 = vpack.c.bf16 %v1274_v47, %v1273_v46 }
 0x114   : > { %4694 = vst [vmem:[%s7368_s3 + $0x70] sm:$0xff] %v4662_v48  ;;  %v955_v50 = vpop.f32.mrf.mxu2 }
 0x115   : > { %4695 = vst [vmem:[%s7368_s3 + $0x7c] sm:$0xff] %v4663_v49  ;;  %v956_v51 = vadd.f32 %v955_v50, %v7362_v33  ;;  %v1004_v52 = vpop.f32.mrf.mxu3  ;;  %v859_v53 = vpop.f32.mrf.mxu0 }
 0x116   : > { %v1005_v56 = vadd.f32 %v1004_v52, %v7366_v34  ;;  %v860_v57 = vadd.f32 %v859_v53, %v7350_v14  ;;  %v908_v59 = vpop.f32.mrf.mxu1  ;;  %v5417_v52 = vld [vmem:[#allocation8 + $0x80] sm:$0xf] }
 0x117   : > { %v1275_v31 = vmax.f32 %v956_v51, 0.0  ;;  %v909_v61 = vadd.f32 %v908_v59, %v7353_v15  ;;  %v6474_v53 = vld [vmem:[#allocation8 + $0x9c] sm:$0xf0] }
 0x118   : > { %v1276_v62 = vmax.f32 %v1005_v56, 0.0  ;;  %v1281_v63 = vmax.f32 %v860_v57, 0.0  ;;  %v5418_v57 = vor.u32 %v6474_v53, %v5417_v52  ;;  %v6185_v59 = vld [vmem:[#allocation8 + $0x680] sm:$0xf] }
 0x119   : > { %v1282_v0 = vmax.f32 %v909_v61, 0.0 }
 0x11a   : > { %v4664_v1 = vpack.c.bf16 %v1276_v62, %v1275_v31  ;;  %2944 = vmatpush.bf16.msra.mxu0 %v5418_v57 }
 0x11b   : > { %v4665_v2 = vpack.c.bf16 %v1282_v0, %v1281_v63  ;;  %v6186_v63 = vor.u32 %v6666_v60, %v6185_v59  ;;  %v5673_v0 = vld [vmem:[#allocation8 + $0x280] sm:$0xf] }
 0x11c   : > { %4696 = vst [vmem:[%s7368_s3 + $0x84] sm:$0xff] %v4664_v1  ;;  %v957_v3 = vpop.f32.mrf.mxu2  ;;  %v6538_v1 = vld [vmem:[#allocation8 + $0x29c] sm:$0xf0] }
 0x11d   : > { %4697 = vst [vmem:[%s7368_s3 + $0x90] sm:$0xff] %v4665_v2  ;;  %v958_v7 = vadd.f32 %v957_v3, %v7362_v33  ;;  %v1006_v10 = vpop.f32.mrf.mxu3  ;;  %v862_v11 = vpop.f32.mrf.mxu0  ;;  %v5674_v4 = vor.u32 %v6538_v1, %v5673_v0  ;;  %3091 = vmatpush.bf16.msra.mxu3 %v6186_v63  ;;  %v5865_v59 = vld [vmem:[#allocation8 + $0x400] sm:$0xf] }
 0x11e   : > { %v1007_v17 = vadd.f32 %v1006_v10, %v7366_v34  ;;  %v863_v19 = vadd.f32 %v862_v11, %v7350_v14  ;;  %v911_v20 = vpop.f32.mrf.mxu1 }
 0x11f   : > { %v1283_v24 = vmax.f32 %v958_v7, 0.0  ;;  %v912_v25 = vadd.f32 %v911_v20, %v7353_v15  ;;  %2993 = vmatpush.bf16.msra.mxu1 %v5674_v4  ;;  %v5897_v20 = vld [vmem:[#allocation8 + $0x440] sm:$0xf] }
 0x120   : > { %v1284_v27 = vmax.f32 %v1007_v17, 0.0  ;;  %v1289_v28 = vmax.f32 %v863_v19, 0.0  ;;  %1057 = vmatmul.bf16.gmra.mxu0 %v7320_v45  ;;  %1106 = vmatmul.bf16.gmra.mxu1 %v7320_v45 }
 0x121   : > { %v1290_v29 = vmax.f32 %v912_v25, 0.0  ;;  %1155 = vmatmul.bf16.gmra.mxu2 %v7320_v45  ;;  %v5898_v25 = vor.u32 %v6594_v21, %v5897_v20  ;;  %v5609_v20 = vld [vmem:[#allocation8 + $0x200] sm:$0xf] }
 0x122   : > { %v4666_v30 = vpack.c.bf16 %v1284_v27, %v1283_v24  ;;  %1204 = vmatmul.bf16.gmra.mxu3 %v7320_v45  ;;  %v6522_v21 = vld [vmem:[#allocation8 + $0x21c] sm:$0xf0] }
 0x123   : > { %v4667_v5 = vpack.c.bf16 %v1290_v29, %v1289_v28  ;;  %3043 = vmatpush.bf16.msra.mxu2 %v5898_v25 }
 0x124   : > { %4698 = vst [vmem:[%s7368_s3 + $0x98] sm:$0xff] %v4666_v30  ;;  %v960_v32 = vpop.f32.mrf.mxu2 }
 0x125   : > { %4699 = vst [vmem:[%s7368_s3 + $0xa4] sm:$0xff] %v4667_v5  ;;  %v961_v36 = vadd.f32 %v960_v32, %v7362_v33  ;;  %v1009_v37 = vpop.f32.mrf.mxu3  ;;  %v864_v38 = vpop.f32.mrf.mxu0 }
 0x126   : > { %v1010_v41 = vadd.f32 %v1009_v37, %v7366_v34  ;;  %v865_v42 = vadd.f32 %v864_v38, %v7350_v14  ;;  %v913_v43 = vpop.f32.mrf.mxu1  ;;  %v6466_v37 = vld [vmem:[#allocation8 + $0x5c] sm:$0xf0] }
 0x127   : > { %v1291_v45 = vmax.f32 %v961_v36, 0.0  ;;  %v914_v44 = vadd.f32 %v913_v43, %v7353_v15  ;;  %v5385_v36 = vld [vmem:[#allocation8 + $0x40] sm:$0xf] }
 0x128   : > { %v1292_v46 = vmax.f32 %v1010_v41, 0.0  ;;  %v1297_v47 = vmax.f32 %v865_v42, 0.0  ;;  %v5386_v41 = vor.u32 %v6466_v37, %v5385_v36  ;;  %v6153_v42 = vld [vmem:[#allocation8 + $0x640] sm:$0xf] }
 0x129   : > { %v1298_v48 = vmax.f32 %v914_v44, 0.0  ;;  %v6658_v43 = vld [vmem:[#allocation8 + $0x65c] sm:$0xf0] }
 0x12a   : > { %v4668_v49 = vpack.c.bf16 %v1292_v46, %v1291_v45  ;;  %v6154_v46 = vor.u32 %v6658_v43, %v6153_v42  ;;  %2945 = vmatpush.bf16.msra.mxu0 %v5386_v41  ;;  %v6638_v41 = vld [vmem:[#allocation8 + $0x5c4] sm:$0xf] }
 0x12b   : > { %v4669_v50 = vpack.c.bf16 %v1298_v48, %v1297_v47  ;;  %v5641_v47 = vld [vmem:[#allocation8 + $0x240] sm:$0xf]  ;;  %v6091_v42 = vld [vmem:[#allocation8 + $0x5e0] sm:$0xf0] }
 0x12c   : > { %4700 = vst [vmem:[%s7368_s3 + $0xac] sm:$0xff] %v4668_v49  ;;  %v962_v51 = vpop.f32.mrf.mxu2  ;;  %v6530_v48 = vld [vmem:[#allocation8 + $0x25c] sm:$0xf0]  ;;  %3092 = vmatpush.bf16.msra.mxu3 %v6154_v46 }
 0x12d   : > { %4701 = vst [vmem:[%s7368_s3 + $0xb8] sm:$0xff] %v4669_v50  ;;  %v963_v54 = vadd.f32 %v962_v51, %v7362_v33  ;;  %v1011_v55 = vpop.f32.mrf.mxu3  ;;  %v867_v56 = vpop.f32.mrf.mxu0  ;;  %v5642_v51 = vor.u32 %v6530_v48, %v5641_v47 }
 0x12e   : > { %v1012_v31 = vadd.f32 %v1011_v55, %v7366_v34  ;;  %v868_v61 = vadd.f32 %v867_v56, %v7350_v14  ;;  %v916_v62 = vpop.f32.mrf.mxu1 }
 0x12f   : > { %v1299_v2 = vmax.f32 %v963_v54, 0.0  ;;  %v917_v3 = vadd.f32 %v916_v62, %v7353_v15  ;;  %2994 = vmatpush.bf16.msra.mxu1 %v5642_v51  ;;  %v6586_v62 = vld [vmem:[#allocation8 + $0x41c] sm:$0xf0] }
 0x130   : > { %v1300_v6 = vmax.f32 %v1012_v31, 0.0  ;;  %v1305_v7 = vmax.f32 %v868_v61, 0.0  ;;  %1062 = vmatmul.bf16.gmra.mxu0 %v7327_v58  ;;  %1111 = vmatmul.bf16.gmra.mxu1 %v7327_v58 }
 0x131   : > { %v1306_v10 = vmax.f32 %v917_v3, 0.0  ;;  %1160 = vmatmul.bf16.gmra.mxu2 %v7327_v58 }
 0x132   : > { %v4670_v11 = vpack.c.bf16 %v1300_v6, %v1299_v2  ;;  %1209 = vmatmul.bf16.gmra.mxu3 %v7327_v58  ;;  %v5866_v2 = vor.u32 %v6586_v62, %v5865_v59 }
 0x133   : > { %v4671_v12 = vpack.c.bf16 %v1306_v10, %v1305_v7  ;;  %v5353_v7 = vld [vmem:[#allocation8] sm:$0xf] }
 0x134   : > { %4702 = vst [vmem:[%s7368_s3 + $0xc0] sm:$0xff] %v4670_v11  ;;  %v965_v16 = vpop.f32.mrf.mxu2  ;;  %3044 = vmatpush.bf16.msra.mxu2 %v5866_v2  ;;  %v6458_v10 = vld [vmem:[#allocation8 + $0x1c] sm:$0xf0] }
 0x135   : > { %4703 = vst [vmem:[%s7368_s3 + $0xcc] sm:$0xff] %v4671_v12  ;;  %v966_v18 = vadd.f32 %v965_v16, %v7362_v33  ;;  %v1014_v17 = vpop.f32.mrf.mxu3  ;;  %v869_v19 = vpop.f32.mrf.mxu0  ;;  %v5354_v12 = vor.u32 %v6458_v10, %v5353_v7  ;;  %v6121_v16 = vld [vmem:[#allocation8 + $0x600] sm:$0xf] }
 0x136   : > { %v1015_v22 = vadd.f32 %v1014_v17, %v7366_v34  ;;  %v870_v23 = vadd.f32 %v869_v19, %v7350_v14  ;;  %v918_v24 = vpop.f32.mrf.mxu1 }
 0x137   : > { %v1307_v58 = vmax.f32 %v966_v18, 0.0  ;;  %v919_v26 = vadd.f32 %v918_v24, %v7353_v15  ;;  %v6650_v18 = vld [vmem:[#allocation8 + $0x61c] sm:$0xf0]  ;;  %2946 = vmatpush.bf16.msra.mxu0 %v5354_v12 }
 0x138   : > { %v1308_v27 = vmax.f32 %v1015_v22, 0.0  ;;  %v1313_v28 = vmax.f32 %v870_v23, 0.0  ;;  %v6122_v19 = vor.u32 %v6650_v18, %v6121_v16  ;;  %v5610_v23 = vor.u32 %v6522_v21, %v5609_v20  ;;  %v6630_v16 = vld [vmem:[#allocation8 + $0x584] sm:$0xf] }
 0x139   : > { %v1314_v29 = vmax.f32 %v919_v26, 0.0  ;;  %v6059_v18 = vld [vmem:[#allocation8 + $0x5a0] sm:$0xf0] }
 0x13a   : > { %v4672_v30 = vpack.c.bf16 %v1308_v27, %v1307_v58  ;;  %3093 = vmatpush.bf16.msra.mxu3 %v6122_v19  ;;  %2995 = vmatpush.bf16.msra.mxu1 %v5610_v23  ;;  %v6062_v19 = vor.u32 %v6630_v16, %v6059_v18  ;;  %v6558_v18 = vld [vmem:[#allocation8 + $0x344] sm:$0xf] }
 0x13b   : > { %v4673_v5 = vpack.c.bf16 %v1314_v29, %v1313_v28 }
 0x13c   : > { %4704 = vst [vmem:[%s7368_s3 + $0xd4] sm:$0xff] %v4672_v30  ;;  %v967_v32 = vpop.f32.mrf.mxu2 }
 0x13d   : > { %4705 = vst [vmem:[%s7368_s3 + $0xe0] sm:$0xff] %v4673_v5  ;;  %v968_v38 = vadd.f32 %v967_v32, %v7362_v33  ;;  %v1016_v39 = vpop.f32.mrf.mxu3  ;;  %v872_v40 = vpop.f32.mrf.mxu0 }
 0x13e   : > { %v1017_v35 = vadd.f32 %v1016_v39, %v7366_v34  ;;  %v873_v45 = vadd.f32 %v872_v40, %v7350_v14  ;;  %v921_v44 = vpop.f32.mrf.mxu1 }
 0x13f   : > { %v1315_v49 = vmax.f32 %v968_v38, 0.0  ;;  %v922_v50 = vadd.f32 %v921_v44, %v7353_v15  ;;  %v6094_v44 = vor.u32 %v6638_v41, %v6091_v42  ;;  %v5803_v41 = vld [vmem:[#allocation8 + $0x3a0] sm:$0xf0] }
 0x140   : > { %v1316_v52 = vmax.f32 %v1017_v35, 0.0  ;;  %v1321_v53 = vmax.f32 %v873_v45, 0.0  ;;  %1067 = vmatmul.bf16.gmra.mxu0 %v7334_v8  ;;  %1116 = vmatmul.bf16.gmra.mxu1 %v7334_v8 }
 0x141   : > { %v1322_v54 = vmax.f32 %v922_v50, 0.0  ;;  %1165 = vmatmul.bf16.gmra.mxu2 %v7334_v8 }
 0x142   : > { %v4674_v55 = vpack.c.bf16 %v1316_v52, %v1315_v49  ;;  %1214 = vmatmul.bf16.gmra.mxu3 %v7334_v8  ;;  %3233 = vmatpush.bf16.msrb.mxu2 %v6094_v44  ;;  %v6510_v52 = vld [vmem:[#allocation8 + $0x1c4] sm:$0xf] }
 0x143   : > { %v4675_v56 = vpack.c.bf16 %v1322_v54, %v1321_v53  ;;  %v5579_v53 = vld [vmem:[#allocation8 + $0x1e0] sm:$0xf0] }
 0x144   : > { %4706 = vst [vmem:[%s7368_s3 + $0xe8] sm:$0xff] %v4674_v55  ;;  %v970_v57 = vpop.f32.mrf.mxu2  ;;  %v5582_v55 = vor.u32 %v6510_v52, %v5579_v53 }
 0x145   : > { %4707 = vst [vmem:[%s7368_s3 + $0xf4] sm:$0xff] %v4675_v56  ;;  %v971_v60 = vadd.f32 %v970_v57, %v7362_v33  ;;  %v1019_v31 = vpop.f32.mrf.mxu3  ;;  %v874_v61 = vpop.f32.mrf.mxu0  ;;  %v6702_v56 = vld [vmem:[#allocation8 + $0x7c4] sm:$0xf] }
 0x146   : > { %v1020_v63 = vadd.f32 %v1019_v31, %v7366_v34  ;;  %v875_v0 = vadd.f32 %v874_v61, %v7350_v14  ;;  %v923_v1 = vpop.f32.mrf.mxu1  ;;  %v6347_v57 = vld [vmem:[#allocation8 + $0x7e0] sm:$0xf0]  ;;  %3135 = vmatpush.bf16.msrb.mxu0 %v5582_v55  ;;  %3234 = vmatpush.bf16.msrb.mxu2 %v6062_v19 }
 0x147   : > { %v1323_v3 = vmax.f32 %v971_v60, 0.0  ;;  %v924_v8 = vadd.f32 %v923_v1, %v7353_v15  ;;  %v6350_v60 = vor.u32 %v6702_v56, %v6347_v57  ;;  %v5835_v61 = vld [vmem:[#allocation8 + $0x3e0] sm:$0xf0] }
 0x148   : > { %v1324_v4 = vmax.f32 %v1020_v63, 0.0  ;;  %v1329_v6 = vmax.f32 %v875_v0, 0.0  ;;  %v6622_v56 = vld [vmem:[#allocation8 + $0x544] sm:$0xf] }
 0x149   : > { %v1330_v11 = vmax.f32 %v924_v8, 0.0  ;;  %3282 = vmatpush.bf16.msrb.mxu3 %v6350_v60  ;;  %v6027_v57 = vld [vmem:[#allocation8 + $0x560] sm:$0xf0] }
 0x14a   : > { %v4676_v17 = vpack.c.bf16 %v1324_v4, %v1323_v3  ;;  %v7492_v3 = vperm.slane %v7347_v13, 4 }
 0x14b   : > { %v4677_v22 = vpack.c.bf16 %v1330_v11, %v1329_v6  ;;  %v7495_v6 = vperm.slane %v7347_v13, 5 }
 0x14c   : > { %4708 = vst [vmem:[%s7368_s3 + $0xfc] sm:$0xff] %v4676_v17  ;;  %v972_v24 = vpop.f32.mrf.mxu2 }
 0x14d   : > { %4709 = vst [vmem:[%s7368_s3 + $0x108] sm:$0xff] %v4677_v22  ;;  %v973_v25 = vadd.f32 %v972_v24, %v7362_v33  ;;  %v1021_v58 = vpop.f32.mrf.mxu3  ;;  %v877_v26 = vpop.f32.mrf.mxu0  ;;  %v7502_v24 = vperm.slane %v7347_v13, 6 }
 0x14e   : > { %v1022_v27 = vadd.f32 %v1021_v58, %v7366_v34  ;;  %v878_v28 = vadd.f32 %v877_v26, %v7350_v14  ;;  %v926_v29 = vpop.f32.mrf.mxu1  ;;  %v7506_v58 = vperm.slane %v7347_v13, 7 }
 0x14f   : > { %v1331_v30 = vmax.f32 %v973_v25, 0.0  ;;  %v927_v5 = vadd.f32 %v926_v29, %v7353_v15 }
 0x150   : > { %v1332_v32 = vmax.f32 %v1022_v27, 0.0  ;;  %v1337_v36 = vmax.f32 %v878_v28, 0.0  ;;  %1072 = vmatmul.bf16.gmra.mxu0 %v7341_v9  ;;  %1121 = vmatmul.bf16.gmra.mxu1 %v7341_v9  ;;  %v6502_v27 = vld [vmem:[#allocation8 + $0x184] sm:$0xf] }
 0x151   : > { %v1338_v37 = vmax.f32 %v927_v5, 0.0  ;;  %1170 = vmatmul.bf16.gmra.mxu2 %v7341_v9  ;;  %v5547_v28 = vld [vmem:[#allocation8 + $0x1a0] sm:$0xf0] }
 0x152   : > { %v4678_v38 = vpack.c.bf16 %v1332_v32, %v1331_v30  ;;  %1219 = vmatmul.bf16.gmra.mxu3 %v7341_v9  ;;  %v5550_v30 = vor.u32 %v6502_v27, %v5547_v28  ;;  %v6694_v5 = vld [vmem:[#allocation8 + $0x784] sm:$0xf] }
 0x153   : > { %v4679_v39 = vpack.c.bf16 %v1338_v37, %v1337_v36  ;;  %v6315_v32 = vld [vmem:[#allocation8 + $0x7a0] sm:$0xf0] }
 0x154   : > { %4710 = vst [vmem:[%s7368_s3 + $0x110] sm:$0xff] %v4678_v38  ;;  %v975_v40 = vpop.f32.mrf.mxu2  ;;  %v6318_v37 = vor.u32 %v6694_v5, %v6315_v32  ;;  %3136 = vmatpush.bf16.msrb.mxu0 %v5550_v30 }
 0x155   : > { %4711 = vst [vmem:[%s7368_s3 + $0x11c] sm:$0xff] %v4679_v39  ;;  %v976_v43 = vadd.f32 %v975_v40, %v7362_v33  ;;  %v1024_v35 = vpop.f32.mrf.mxu3  ;;  %v879_v45 = vpop.f32.mrf.mxu0  ;;  %v6566_v40 = vld [vmem:[#allocation8 + $0x384] sm:$0xf] }
 0x156   : > { %v1025_v46 = vadd.f32 %v1024_v35, %v7366_v34  ;;  %v880_v47 = vadd.f32 %v879_v45, %v7350_v14  ;;  %v928_v48 = vpop.f32.mrf.mxu1  ;;  %v6574_v14 = vld [vmem:[#allocation8 + $0x3c4] sm:$0xf]  ;;  %3283 = vmatpush.bf16.msrb.mxu3 %v6318_v37 }
 0x157   : > { %v1339_v49 = vmax.f32 %v976_v43, 0.0  ;;  %v929_v50 = vadd.f32 %v928_v48, %v7353_v15  ;;  %v5838_v15 = vor.u32 %v6574_v14, %v5835_v61  ;;  %v5806_v43 = vor.u32 %v6566_v40, %v5803_v41  ;;  %v6614_v41 = vld [vmem:[#allocation8 + $0x504] sm:$0xf] }
 0x158   : > { %v1340_v9 = vmax.f32 %v1025_v46, 0.0  ;;  %v1345_v51 = vmax.f32 %v880_v47, 0.0 }
 0x159   : > { %v1346_v54 = vmax.f32 %v929_v50, 0.0  ;;  %3184 = vmatpush.bf16.msrb.mxu1 %v5838_v15 }
 0x15a   : > { %v4680_v59 = vpack.c.bf16 %v1340_v9, %v1339_v49 }
 0x15b   : > { %v4681_v31 = vpack.c.bf16 %v1346_v54, %v1345_v51 }
 0x15c   : > { %4712 = vst [vmem:[%s7368_s3 + $0x124] sm:$0xff] %v4680_v59  ;;  %v977_v62 = vpop.f32.mrf.mxu2 }
 0x15d   : > { %4713 = vst [vmem:[%s7368_s3 + $0x130] sm:$0xff] %v4681_v31  ;;  %v978_v63 = vadd.f32 %v977_v62, %v7362_v33  ;;  %v1026_v0 = vpop.f32.mrf.mxu3  ;;  %v1038_v1 = vpop.f32.mrf.mxu0  ;;  %3185 = vmatpush.bf16.msrb.mxu1 %v5806_v43  ;;  %v6030_v31 = vor.u32 %v6622_v56, %v6027_v57  ;;  %v6251_v56 = vld [vmem:[#allocation8 + $0x720] sm:$0xf0] }
 0x15e   : > { %v1027_v2 = vadd.f32 %v1026_v0, %v7366_v34  ;;  %v1087_v8 = vpop.f32.mrf.mxu1  ;;  %v1039_v11 = vadd.f32 %v1038_v1, %v7492_v3  ;;  %v6494_v1 = vld [vmem:[#allocation8 + $0x144] sm:$0xf] }
 0x15f   : > { %v1347_v4 = vmax.f32 %v978_v63, 0.0  ;;  %v1088_v12 = vadd.f32 %v1087_v8, %v7495_v6  ;;  %3235 = vmatpush.bf16.msrb.mxu2 %v6030_v31 }
 0x160   : > { %v1348_v7 = vmax.f32 %v1027_v2, 0.0  ;;  %v1229_v20 = vmax.f32 %v1039_v11, 0.0  ;;  %v5515_v2 = vld [vmem:[#allocation8 + $0x160] sm:$0xf0] }
 0x161   : > { %v1230_v23 = vmax.f32 %v1088_v12, 0.0 }
 0x162   : > { %v4682_v10 = vpack.c.bf16 %v1348_v7, %v1347_v4  ;;  %v5518_v4 = vor.u32 %v6494_v1, %v5515_v2  ;;  %v6686_v7 = vld [vmem:[#allocation8 + $0x744] sm:$0xf] }
 0x164   : > { %4714 = vst [vmem:[%s7368_s3 + $0x138] sm:$0xff] %v4682_v10  ;;  %v1136_v33 = vpop.f32.mrf.mxu2  ;;  %v6283_v10 = vld [vmem:[#allocation8 + $0x760] sm:$0xf0]  ;;  %3137 = vmatpush.bf16.msrb.mxu0 %v5518_v4 }
 0x165   : > { %v1185_v34 = vpop.f32.mrf.mxu3  ;;  %v1040_v17 = vpop.f32.mrf.mxu0  ;;  %v1137_v38 = vadd.f32 %v1136_v33, %v7502_v24  ;;  %v6286_v12 = vor.u32 %v6686_v7, %v6283_v10 }
 0x166   : > { %v1041_v21 = vadd.f32 %v1040_v17, %v7492_v3  ;;  %v1089_v22 = vpop.f32.mrf.mxu1  ;;  %v1186_v13 = vadd.f32 %v1185_v34, %v7506_v58  ;;  %v5771_v34 = vld [vmem:[#allocation8 + $0x360] sm:$0xf0] }
 0x167   : > { %v1090_v25 = vadd.f32 %v1089_v22, %v7495_v6  ;;  %v1231_v48 = vmax.f32 %v1137_v38, 0.0  ;;  %3284 = vmatpush.bf16.msrb.mxu3 %v6286_v12 }
 0x168   : > { %v1237_v26 = vmax.f32 %v1041_v21, 0.0  ;;  %v1232_v50 = vmax.f32 %v1186_v13, 0.0  ;;  %v5995_v13 = vld [vmem:[#allocation8 + $0x520] sm:$0xf0] }
 0x169   : > { %v1238_v29 = vmax.f32 %v1090_v25, 0.0 }
 0x16a   : > { %v7508_v36 = vpack.c.bf16 %v1237_v26, %v1229_v20  ;;  %v5774_v20 = vor.u32 %v6558_v18, %v5771_v34 }
 0x16b   : > { %v7511_v39 = vpack.c.bf16 %v1238_v29, %v1230_v23 }
 0x16c   : > { %v1138_v42 = vpop.f32.mrf.mxu2  ;;  %2947 = vmatmul.bf16.vlgmr.msra.gmra.mxu0 %v7508_v36  ;;  %3186 = vmatpush.bf16.msrb.mxu1 %v5774_v20 }
 0x16d   : > { %v1139_v35 = vadd.f32 %v1138_v42, %v7502_v24  ;;  %v1187_v45 = vpop.f32.mrf.mxu3  ;;  %2996 = vmatmul.bf16.vlgmr.msra.gmra.mxu1 %v7511_v39  ;;  %v1043_v44 = vpop.f32.mrf.mxu0 }
 0x16e   : > { %v1188_v46 = vadd.f32 %v1187_v45, %v7506_v58  ;;  %v1092_v47 = vpop.f32.mrf.mxu1  ;;  %v1044_v53 = vadd.f32 %v1043_v44, %v7492_v3 }
 0x16f   : > { %v1239_v49 = vmax.f32 %v1139_v35, 0.0  ;;  %v1093_v54 = vadd.f32 %v1092_v47, %v7495_v6  ;;  %v5998_v35 = vor.u32 %v6614_v41, %v5995_v13  ;;  %v5451_v41 = vld [vmem:[#allocation8 + $0xe0] sm:$0xf0] }
 0x170   : > { %v1240_v9 = vmax.f32 %v1188_v46, 0.0  ;;  %v1245_v14 = vmax.f32 %v1044_v53, 0.0 }
 0x171   : > { %v7518_v51 = vpack.c.bf16 %v1239_v49, %v1231_v48  ;;  %v1246_v15 = vmax.f32 %v1093_v54, 0.0  ;;  %3236 = vmatpush.bf16.msrb.mxu2 %v5998_v35  ;;  %v6219_v35 = vld [vmem:[#allocation8 + $0x6e0] sm:$0xf0] }
 0x172   : > { %v7520_v52 = vpack.c.bf16 %v1240_v9, %v1232_v50  ;;  %v6486_v50 = vld [vmem:[#allocation8 + $0x104] sm:$0xf] }
 0x173   : > { %3045 = vmatmul.bf16.vlgmr.msra.gmra.mxu2 %v7518_v51  ;;  %v5483_v9 = vld [vmem:[#allocation8 + $0x120] sm:$0xf0] }
 0x174   : > { %3094 = vmatmul.bf16.vlgmr.msra.gmra.mxu3 %v7520_v52  ;;  %v1141_v55 = vpop.f32.mrf.mxu2  ;;  %v5486_v54 = vor.u32 %v6486_v50, %v5483_v9 }
 0x175   : > { %v1190_v59 = vpop.f32.mrf.mxu3  ;;  %v1045_v60 = vpop.f32.mrf.mxu0  ;;  %v1142_v33 = vadd.f32 %v1141_v55, %v7502_v24  ;;  %v6678_v55 = vld [vmem:[#allocation8 + $0x704] sm:$0xf] }
 0x176   : > { %v1046_v61 = vadd.f32 %v1045_v60, %v7492_v3  ;;  %v1094_v62 = vpop.f32.mrf.mxu1  ;;  %v1191_v17 = vadd.f32 %v1190_v59, %v7506_v58  ;;  %v6254_v59 = vor.u32 %v6678_v55, %v6251_v56  ;;  %3138 = vmatpush.bf16.msrb.mxu0 %v5486_v54 }
 0x177   : > { %v1095_v63 = vadd.f32 %v1094_v62, %v7495_v6  ;;  %v1247_v27 = vmax.f32 %v1142_v33, 0.0 }
 0x178   : > { %v1253_v0 = vmax.f32 %v1046_v61, 0.0  ;;  %v1248_v29 = vmax.f32 %v1191_v17, 0.0  ;;  %v5739_v61 = vld [vmem:[#allocation8 + $0x320] sm:$0xf0]  ;;  %3285 = vmatpush.bf16.msrb.mxu3 %v6254_v59 }
 0x179   : > { %v1254_v8 = vmax.f32 %v1095_v63, 0.0 }
 0x17a   : > { %v7528_v11 = vpack.c.bf16 %v1253_v0, %v1245_v14  ;;  %v6550_v14 = vld [vmem:[#allocation8 + $0x304] sm:$0xf] }
 0x17b   : > { %v7531_v16 = vpack.c.bf16 %v1254_v8, %v1246_v15  ;;  %v5742_v63 = vor.u32 %v6550_v14, %v5739_v61 }
 0x17c   : > { %v1143_v19 = vpop.f32.mrf.mxu2  ;;  %2952 = vmatmul.bf16.gmra.mxu0 %v7528_v11 }
 0x17d   : > { %v1144_v21 = vadd.f32 %v1143_v19, %v7502_v24  ;;  %v1192_v22 = vpop.f32.mrf.mxu3  ;;  %3001 = vmatmul.bf16.gmra.mxu1 %v7531_v16  ;;  %v1048_v23 = vpop.f32.mrf.mxu0 }
 0x17e   : > { %v1193_v25 = vadd.f32 %v1192_v22, %v7506_v58  ;;  %v1097_v26 = vpop.f32.mrf.mxu1  ;;  %v1049_v37 = vadd.f32 %v1048_v23, %v7492_v3  ;;  %3187 = vmatpush.bf16.msrb.mxu1 %v5742_v63  ;;  %v5963_v22 = vld [vmem:[#allocation8 + $0x4e0] sm:$0xf0] }
 0x17f   : > { %v1255_v28 = vmax.f32 %v1144_v21, 0.0  ;;  %v1098_v38 = vadd.f32 %v1097_v26, %v7495_v6  ;;  %v6606_v21 = vld [vmem:[#allocation8 + $0x4c4] sm:$0xf] }
 0x180   : > { %v1256_v30 = vmax.f32 %v1193_v25, 0.0  ;;  %v1261_v45 = vmax.f32 %v1049_v37, 0.0  ;;  %v5966_v26 = vor.u32 %v6606_v21, %v5963_v22 }
 0x181   : > { %v7538_v5 = vpack.c.bf16 %v1255_v28, %v1247_v27  ;;  %v1262_v47 = vmax.f32 %v1098_v38, 0.0 }
 0x182   : > { %v7540_v32 = vpack.c.bf16 %v1256_v30, %v1248_v29  ;;  %3237 = vmatpush.bf16.msrb.mxu2 %v5966_v26  ;;  %v5419_v26 = vld [vmem:[#allocation8 + $0xa0] sm:$0xf0] }
 0x183   : > { %3050 = vmatmul.bf16.gmra.mxu2 %v7538_v5 }
 0x184   : > { %3099 = vmatmul.bf16.gmra.mxu3 %v7540_v32  ;;  %v1146_v40 = vpop.f32.mrf.mxu2 }
 0x185   : > { %v1195_v42 = vpop.f32.mrf.mxu3  ;;  %v1050_v43 = vpop.f32.mrf.mxu0  ;;  %v1147_v60 = vadd.f32 %v1146_v40, %v7502_v24  ;;  %v6478_v40 = vld [vmem:[#allocation8 + $0xc4] sm:$0xf] }
 0x186   : > { %v1051_v44 = vadd.f32 %v1050_v43, %v7492_v3  ;;  %v1099_v46 = vpop.f32.mrf.mxu1  ;;  %v1196_v62 = vadd.f32 %v1195_v42, %v7506_v58  ;;  %v5454_v42 = vor.u32 %v6478_v40, %v5451_v41  ;;  %v6670_v43 = vld [vmem:[#allocation8 + $0x6c4] sm:$0xf] }
 0x187   : > { %v1100_v48 = vadd.f32 %v1099_v46, %v7495_v6  ;;  %v1263_v7 = vmax.f32 %v1147_v60, 0.0 }
 0x188   : > { %v1269_v49 = vmax.f32 %v1051_v44, 0.0  ;;  %v1264_v12 = vmax.f32 %v1196_v62, 0.0  ;;  %v6222_v44 = vor.u32 %v6670_v43, %v6219_v35  ;;  %3139 = vmatpush.bf16.msrb.mxu0 %v5454_v42  ;;  %v5675_v42 = vld [vmem:[#allocation8 + $0x2a0] sm:$0xf0] }
 0x189   : > { %v1270_v53 = vmax.f32 %v1100_v48, 0.0  ;;  %v6542_v48 = vld [vmem:[#allocation8 + $0x2c4] sm:$0xf] }
 0x18a   : > { %v7548_v57 = vpack.c.bf16 %v1269_v49, %v1261_v45  ;;  %v5707_v49 = vld [vmem:[#allocation8 + $0x2e0] sm:$0xf0]  ;;  %3286 = vmatpush.bf16.msrb.mxu3 %v6222_v44 }
 0x18b   : > { %v7551_v31 = vpack.c.bf16 %v1270_v53, %v1262_v47  ;;  %v5710_v53 = vor.u32 %v6542_v48, %v5707_v49 }
 0x18c   : > { %v1148_v15 = vpop.f32.mrf.mxu2  ;;  %2957 = vmatmul.bf16.gmra.mxu0 %v7548_v57 }
 0x18d   : > { %v1149_v0 = vadd.f32 %v1148_v15, %v7502_v24  ;;  %v1197_v1 = vpop.f32.mrf.mxu3  ;;  %3006 = vmatmul.bf16.gmra.mxu1 %v7551_v31  ;;  %v1053_v2 = vpop.f32.mrf.mxu0 }
 0x18e   : > { %v1198_v8 = vadd.f32 %v1197_v1, %v7506_v58  ;;  %v1102_v4 = vpop.f32.mrf.mxu1  ;;  %v1054_v17 = vadd.f32 %v1053_v2, %v7492_v3  ;;  %3188 = vmatpush.bf16.msrb.mxu1 %v5710_v53 }
 0x18f   : > { %v1271_v10 = vmax.f32 %v1149_v0, 0.0  ;;  %v1103_v19 = vadd.f32 %v1102_v4, %v7495_v6  ;;  %v6598_v4 = vld [vmem:[#allocation8 + $0x484] sm:$0xf] }
 0x190   : > { %v1272_v33 = vmax.f32 %v1198_v8, 0.0  ;;  %v1277_v27 = vmax.f32 %v1054_v17, 0.0 }
 0x191   : > { %v7558_v18 = vpack.c.bf16 %v1271_v10, %v1263_v7  ;;  %v1278_v30 = vmax.f32 %v1103_v19, 0.0  ;;  %v5931_v7 = vld [vmem:[#allocation8 + $0x4a0] sm:$0xf0] }
 0x192   : > { %v7560_v34 = vpack.c.bf16 %v1272_v33, %v1264_v12  ;;  %v5934_v33 = vor.u32 %v6598_v4, %v5931_v7 }
 0x193   : > { %3055 = vmatmul.bf16.gmra.mxu2 %v7558_v18 }
 0x194   : > { %3104 = vmatmul.bf16.gmra.mxu3 %v7560_v34  ;;  %v1151_v20 = vpop.f32.mrf.mxu2  ;;  %3238 = vmatpush.bf16.msrb.mxu2 %v5934_v33 }
 0x195   : > { %v1200_v23 = vpop.f32.mrf.mxu3  ;;  %v1055_v25 = vpop.f32.mrf.mxu0  ;;  %v1152_v46 = vadd.f32 %v1151_v20, %v7502_v24 }
 0x196   : > { %v1056_v28 = vadd.f32 %v1055_v25, %v7492_v3  ;;  %v1104_v29 = vpop.f32.mrf.mxu1  ;;  %v1201_v50 = vadd.f32 %v1200_v23, %v7506_v58  ;;  %v6470_v25 = vld [vmem:[#allocation8 + $0x84] sm:$0xf] }
 0x197   : > { %v1105_v37 = vadd.f32 %v1104_v29, %v7495_v6  ;;  %v1279_v14 = vmax.f32 %v1152_v46, 0.0  ;;  %v6662_v29 = vld [vmem:[#allocation8 + $0x684] sm:$0xf] }
 0x198   : > { %v1285_v38 = vmax.f32 %v1056_v28, 0.0  ;;  %v1280_v62 = vmax.f32 %v1201_v50, 0.0  ;;  %v5422_v28 = vor.u32 %v6470_v25, %v5419_v26  ;;  %v6654_v25 = vld [vmem:[#allocation8 + $0x644] sm:$0xf] }
 0x199   : > { %v1286_v13 = vmax.f32 %v1105_v37, 0.0  ;;  %v6155_v26 = vld [vmem:[#allocation8 + $0x660] sm:$0xf0] }
 0x19a   : > { %v7568_v45 = vpack.c.bf16 %v1285_v38, %v1277_v27  ;;  %3140 = vmatpush.bf16.msrb.mxu0 %v5422_v28  ;;  %v6158_v28 = vor.u32 %v6654_v25, %v6155_v26  ;;  %v5611_v25 = vld [vmem:[#allocation8 + $0x220] sm:$0xf0] }
 0x19b   : > { %v7571_v47 = vpack.c.bf16 %v1286_v13, %v1278_v30  ;;  %v6187_v30 = vld [vmem:[#allocation8 + $0x6a0] sm:$0xf0] }
 0x19c   : > { %8733 = vst [vmem:[#allocation19_spill] sm:$0xff] %v7568_v45  ;;  %v1153_v9 = vpop.f32.mrf.mxu2  ;;  %2962 = vmatmul.bf16.gmra.mxu0 %v7568_v45  ;;  %v6190_v38 = vor.u32 %v6662_v29, %v6187_v30  ;;  %v6534_v13 = vld [vmem:[#allocation8 + $0x284] sm:$0xf] }
 0x19d   : > { %8734 = vst [vmem:[#allocation20_spill] sm:$0xff] %v7571_v47  ;;  %v1154_v54 = vadd.f32 %v1153_v9, %v7502_v24  ;;  %v1202_v55 = vpop.f32.mrf.mxu3  ;;  %3011 = vmatmul.bf16.gmra.mxu1 %v7571_v47  ;;  %v1058_v56 = vpop.f32.mrf.mxu0  ;;  %v5678_v44 = vor.u32 %v6534_v13, %v5675_v42 }
 0x19e   : > { %v1203_v59 = vadd.f32 %v1202_v55, %v7506_v58  ;;  %v1107_v60 = vpop.f32.mrf.mxu1  ;;  %v1059_v1 = vadd.f32 %v1058_v56, %v7492_v3  ;;  %3287 = vmatpush.bf16.msrb.mxu3 %v6190_v38  ;;  %v6526_v38 = vld [vmem:[#allocation8 + $0x244] sm:$0xf] }
 0x19f   : > { %v1287_v61 = vmax.f32 %v1154_v54, 0.0  ;;  %v1108_v2 = vadd.f32 %v1107_v60, %v7495_v6  ;;  %3189 = vmatpush.bf16.msrb.mxu1 %v5678_v44 }
 0x1a0   : > { %v1288_v15 = vmax.f32 %v1203_v59, 0.0  ;;  %v1293_v17 = vmax.f32 %v1059_v1, 0.0  ;;  %v5899_v1 = vld [vmem:[#allocation8 + $0x460] sm:$0xf0] }
 0x1a1   : > { %v7578_v63 = vpack.c.bf16 %v1287_v61, %v1279_v14  ;;  %v1294_v21 = vmax.f32 %v1108_v2, 0.0 }
 0x1a2   : > { %v7580_v0 = vpack.c.bf16 %v1288_v15, %v1280_v62  ;;  %v6590_v15 = vld [vmem:[#allocation8 + $0x444] sm:$0xf]  ;;  %3288 = vmatpush.bf16.msrb.mxu3 %v6158_v28 }
 0x1a3   : > { %8735 = vst [vmem:[#allocation21_spill] sm:$0xff] %v7578_v63  ;;  %3060 = vmatmul.bf16.gmra.mxu2 %v7578_v63  ;;  %v5902_v4 = vor.u32 %v6590_v15, %v5899_v1  ;;  %v6582_v15 = vld [vmem:[#allocation8 + $0x404] sm:$0xf] }
 0x1a4   : > { %8736 = vst [vmem:[#allocation22_spill] sm:$0xff] %v7580_v0  ;;  %3109 = vmatmul.bf16.gmra.mxu3 %v7580_v0  ;;  %v1156_v8 = vpop.f32.mrf.mxu2  ;;  %v5867_v1 = vld [vmem:[#allocation8 + $0x420] sm:$0xf0] }
 0x1a5   : > { %v1205_v10 = vpop.f32.mrf.mxu3  ;;  %v1060_v12 = vpop.f32.mrf.mxu0  ;;  %v1157_v40 = vadd.f32 %v1156_v8, %v7502_v24  ;;  %3239 = vmatpush.bf16.msrb.mxu2 %v5902_v4 }
 0x1a6   : > { %v1061_v19 = vadd.f32 %v1060_v12, %v7492_v3  ;;  %v1109_v20 = vpop.f32.mrf.mxu1  ;;  %v1206_v43 = vadd.f32 %v1205_v10, %v7506_v58 }
 0x1a7   : > { %v1110_v22 = vadd.f32 %v1109_v20, %v7495_v6  ;;  %v1295_v53 = vmax.f32 %v1157_v40, 0.0  ;;  %v6462_v20 = vld [vmem:[#allocation8 + $0x44] sm:$0xf] }
 0x1a8   : > { %v1301_v23 = vmax.f32 %v1061_v19, 0.0  ;;  %v1296_v55 = vmax.f32 %v1206_v43, 0.0  ;;  %v5643_v40 = vld [vmem:[#allocation8 + $0x260] sm:$0xf0] }
 0x1a9   : > { %v1302_v27 = vmax.f32 %v1110_v22, 0.0  ;;  %v5646_v43 = vor.u32 %v6526_v38, %v5643_v40 }
 0x1aa   : > { %v7588_v37 = vpack.c.bf16 %v1301_v23, %v1293_v17 }
 0x1ab   : > { %v7591_v41 = vpack.c.bf16 %v1302_v27, %v1294_v21  ;;  %v5387_v21 = vld [vmem:[#allocation8 + $0x60] sm:$0xf0]  ;;  %3190 = vmatpush.bf16.msrb.mxu1 %v5646_v43 }
 0x1ac   : > { %8737 = vst [vmem:[#allocation23_spill] sm:$0xff] %v7588_v37  ;;  %v1158_v35 = vpop.f32.mrf.mxu2  ;;  %2967 = vmatmul.bf16.gmra.mxu0 %v7588_v37  ;;  %v5390_v23 = vor.u32 %v6462_v20, %v5387_v21 }
 0x1ad   : > { %8738 = vst [vmem:[#allocation24_spill] sm:$0xff] %v7591_v41  ;;  %v1159_v46 = vadd.f32 %v1158_v35, %v7502_v24  ;;  %v1207_v48 = vpop.f32.mrf.mxu3  ;;  %3016 = vmatmul.bf16.gmra.mxu1 %v7591_v41  ;;  %v1063_v49 = vpop.f32.mrf.mxu0 }
 0x1ae   : > { %v1208_v50 = vadd.f32 %v1207_v48, %v7506_v58  ;;  %v1112_v9 = vpop.f32.mrf.mxu1  ;;  %v1064_v14 = vadd.f32 %v1063_v49, %v7492_v3  ;;  %3141 = vmatpush.bf16.msrb.mxu0 %v5390_v23  ;;  %v6518_v23 = vld [vmem:[#allocation8 + $0x204] sm:$0xf] }
 0x1af   : > { %v1303_v54 = vmax.f32 %v1159_v46, 0.0  ;;  %v1113_v61 = vadd.f32 %v1112_v9, %v7495_v6 }
 0x1b0   : > { %v1304_v56 = vmax.f32 %v1208_v50, 0.0  ;;  %v1309_v7 = vmax.f32 %v1064_v14, 0.0 }
 0x1b1   : > { %v7598_v59 = vpack.c.bf16 %v1303_v54, %v1295_v53  ;;  %v1310_v33 = vmax.f32 %v1113_v61, 0.0 }
 0x1b2   : > { %v7600_v60 = vpack.c.bf16 %v1304_v56, %v1296_v55 }
 0x1b3   : > { %8739 = vst [vmem:[#allocation25_spill] sm:$0xff] %v7598_v59  ;;  %3065 = vmatmul.bf16.gmra.mxu2 %v7598_v59 }
 0x1b4   : > { %8740 = vst [vmem:[#allocation26_spill] sm:$0xff] %v7600_v60  ;;  %3114 = vmatmul.bf16.gmra.mxu3 %v7600_v60  ;;  %v1161_v62 = vpop.f32.mrf.mxu2 }
 0x1b5   : > { %v1210_v2 = vpop.f32.mrf.mxu3  ;;  %v1065_v8 = vpop.f32.mrf.mxu0  ;;  %v1162_v29 = vadd.f32 %v1161_v62, %v7502_v24 }
 0x1b6   : > { %v1066_v10 = vadd.f32 %v1065_v8, %v7492_v3  ;;  %v1114_v12 = vpop.f32.mrf.mxu1  ;;  %v1211_v13 = vadd.f32 %v1210_v2, %v7506_v58  ;;  %v6454_v2 = vld [vmem:[#allocation8 + $0x4] sm:$0xf] }
 0x1b7   : > { %v1115_v17 = vadd.f32 %v1114_v12, %v7495_v6  ;;  %v1311_v50 = vmax.f32 %v1162_v29, 0.0  ;;  %v6646_v12 = vld [vmem:[#allocation8 + $0x604] sm:$0xf]  ;;  %v5614_v29 = vor.u32 %v6518_v23, %v5611_v25 }
 0x1b8   : > { %v1317_v19 = vmax.f32 %v1066_v10, 0.0  ;;  %v1312_v53 = vmax.f32 %v1211_v13, 0.0  ;;  %v5355_v10 = vld [vmem:[#allocation8 + $0x20] sm:$0xf0] }
 0x1b9   : > { %v1318_v22 = vmax.f32 %v1115_v17, 0.0  ;;  %v5358_v21 = vor.u32 %v6454_v2, %v5355_v10  ;;  %3191 = vmatpush.bf16.msrb.mxu1 %v5614_v29  ;;  %v5585_v10 = vld [vmem:[#allocation8 + $0x1c8] sm:$0xf] }
 0x1ba   : > { %v7608_v27 = vpack.c.bf16 %v1317_v19, %v1309_v7  ;;  %v5870_v7 = vor.u32 %v6582_v15, %v5867_v1 }
 0x1bb   : > { %v7611_v30 = vpack.c.bf16 %v1318_v22, %v1310_v33  ;;  %v6123_v33 = vld [vmem:[#allocation8 + $0x620] sm:$0xf0]  ;;  %3142 = vmatpush.bf16.msrb.mxu0 %v5358_v21  ;;  %v6707_v21 = vld [vmem:[#allocation8 + $0x7e4] sm:$0xf0] }
 0x1bc   : > { %8741 = vst [vmem:[#allocation27_spill] sm:$0xff] %v7608_v27  ;;  %v1163_v42 = vpop.f32.mrf.mxu2  ;;  %2972 = vmatmul.bf16.gmra.mxu0 %v7608_v27  ;;  %v6126_v22 = vor.u32 %v6646_v12, %v6123_v33  ;;  %3240 = vmatpush.bf16.msrb.mxu2 %v5870_v7  ;;  %v6643_v7 = vld [vmem:[#allocation8 + $0x5e4] sm:$0xf0] }
 0x1bd   : > { %8742 = vst [vmem:[#allocation28_spill] sm:$0xff] %v7611_v30  ;;  %v1164_v35 = vadd.f32 %v1163_v42, %v7502_v24  ;;  %v1212_v44 = vpop.f32.mrf.mxu3  ;;  %3021 = vmatmul.bf16.gmra.mxu1 %v7611_v30  ;;  %v1068_v46 = vpop.f32.mrf.mxu0 }
 0x1be   : > { %v1213_v48 = vadd.f32 %v1212_v44, %v7506_v58  ;;  %v1117_v49 = vpop.f32.mrf.mxu1  ;;  %v1069_v14 = vadd.f32 %v1068_v46, %v7492_v3  ;;  %3289 = vmatpush.bf16.msrb.mxu3 %v6126_v22 }
 0x1bf   : > { %v1319_v9 = vmax.f32 %v1164_v35, 0.0  ;;  %v1118_v61 = vadd.f32 %v1117_v49, %v7495_v6 }
 0x1c0   : > { %v1320_v54 = vmax.f32 %v1213_v48, 0.0  ;;  %v1325_v17 = vmax.f32 %v1069_v14, 0.0 }
 0x1c1   : > { %v7618_v55 = vpack.c.bf16 %v1319_v9, %v1311_v50  ;;  %v1326_v26 = vmax.f32 %v1118_v61, 0.0 }
 0x1c2   : > { %v7620_v56 = vpack.c.bf16 %v1320_v54, %v1312_v53 }
 0x1c3   : > { %8743 = vst [vmem:[#allocation29_spill] sm:$0xff] %v7618_v55  ;;  %3070 = vmatmul.bf16.gmra.mxu2 %v7618_v55 }
 0x1c4   : > { %8744 = vst [vmem:[#allocation30_spill] sm:$0xff] %v7620_v56  ;;  %3119 = vmatmul.bf16.gmra.mxu3 %v7620_v56  ;;  %v1166_v62 = vpop.f32.mrf.mxu2 }
 0x1c5   : > { %v1215_v8 = vpop.f32.mrf.mxu3  ;;  %v1070_v4 = vpop.f32.mrf.mxu0  ;;  %v1167_v42 = vadd.f32 %v1166_v62, %v7502_v24 }
 0x1c6   : > { %v1071_v19 = vadd.f32 %v1070_v4, %v7492_v3  ;;  %v1119_v20 = vpop.f32.mrf.mxu1  ;;  %v1216_v35 = vadd.f32 %v1215_v8, %v7506_v58  ;;  %v6097_v4 = vld [vmem:[#allocation8 + $0x5c8] sm:$0xf] }
 0x1c7   : > { %v1120_v28 = vadd.f32 %v1119_v20, %v7495_v6  ;;  %v1327_v53 = vmax.f32 %v1167_v42, 0.0  ;;  %v6353_v20 = vld [vmem:[#allocation8 + $0x7c8] sm:$0xf] }
 0x1c8   : > { %v1333_v38 = vmax.f32 %v1071_v19, 0.0  ;;  %v1328_v14 = vmax.f32 %v1216_v35, 0.0  ;;  %v6515_v19 = vld [vmem:[#allocation8 + $0x1e4] sm:$0xf0] }
 0x1c9   : > { %v1334_v40 = vmax.f32 %v1120_v28, 0.0  ;;  %v6354_v28 = vor.u32 %v6707_v21, %v6353_v20  ;;  %v6699_v20 = vld [vmem:[#allocation8 + $0x7a4] sm:$0xf0] }
 0x1ca   : > { %v7628_v13 = vpack.c.bf16 %v1333_v38, %v1325_v17  ;;  %v6098_v17 = vor.u32 %v6643_v7, %v6097_v4  ;;  %v7660_v4 = vld [vmem:[#allocation10] sm:$0xff] }
 0x1cb   : > { %v7631_v43 = vpack.c.bf16 %v1334_v40, %v1326_v26  ;;  %v5586_v26 = vor.u32 %v6515_v19, %v5585_v10  ;;  %3478 = vmatpush.bf16.msra.mxu3 %v6354_v28  ;;  %v6065_v10 = vld [vmem:[#allocation8 + $0x588] sm:$0xf] }
 0x1cc   : > { %8745 = vst [vmem:[#allocation31_spill] sm:$0xff] %v7628_v13  ;;  %v1168_v44 = vpop.f32.mrf.mxu2  ;;  %2977 = vmatmul.bf16.gmra.mxu0 %v7628_v13  ;;  %3429 = vmatpush.bf16.msra.mxu2 %v6098_v17  ;;  %v6507_v17 = vld [vmem:[#allocation8 + $0x1a4] sm:$0xf0] }
 0x1cd   : > { %8746 = vst [vmem:[#allocation32_spill] sm:$0xff] %v7631_v43  ;;  %v1169_v46 = vadd.f32 %v1168_v44, %v7502_v24  ;;  %v1217_v48 = vpop.f32.mrf.mxu3  ;;  %3026 = vmatmul.bf16.gmra.mxu1 %v7631_v43  ;;  %v1073_v49 = vpop.f32.mrf.mxu0  ;;  %3331 = vmatpush.bf16.msra.mxu0 %v5586_v26  ;;  %v6321_v19 = vld [vmem:[#allocation8 + $0x788] sm:$0xf] }
 0x1ce   : > { %v1218_v50 = vadd.f32 %v1217_v48, %v7506_v58  ;;  %v1122_v9 = vpop.f32.mrf.mxu1  ;;  %v1074_v1 = vadd.f32 %v1073_v49, %v7492_v3  ;;  %v5841_v48 = vld [vmem:[#allocation8 + $0x3c8] sm:$0xf] }
 0x1cf   : > { %v1335_v54 = vmax.f32 %v1169_v46, 0.0  ;;  %v1123_v2 = vadd.f32 %v1122_v9, %v7495_v6  ;;  %v6579_v49 = vld [vmem:[#allocation8 + $0x3e4] sm:$0xf0] }
 0x1d0   : > { %v1336_v61 = vmax.f32 %v1218_v50, 0.0  ;;  %v1341_v22 = vmax.f32 %v1074_v1, 0.0  ;;  %v5842_v9 = vor.u32 %v6579_v49, %v5841_v48 }
 0x1d1   : > { %v7638_v62 = vpack.c.bf16 %v1335_v54, %v1327_v53  ;;  %v1342_v29 = vmax.f32 %v1123_v2, 0.0 }
 0x1d2   : > { %v7640_v15 = vpack.c.bf16 %v1336_v61, %v1328_v14  ;;  %3380 = vmatpush.bf16.msra.mxu1 %v5842_v9  ;;  %v5521_v9 = vld [vmem:[#allocation8 + $0x148] sm:$0xf] }
 0x1d3   : > { %8747 = vst [vmem:[#allocation33_spill] sm:$0xff] %v7638_v62  ;;  %3075 = vmatmul.bf16.gmra.mxu2 %v7638_v62 }
 0x1d4   : > { %8748 = vst [vmem:[#allocation34_spill] sm:$0xff] %v7640_v15  ;;  %3124 = vmatmul.bf16.gmra.mxu3 %v7640_v15  ;;  %v1171_v8 = vpop.f32.mrf.mxu2 }
 0x1d5   : > { %v1220_v12 = vpop.f32.mrf.mxu3  ;;  %v1075_v33 = vpop.f32.mrf.mxu0  ;;  %v1172_v44 = vadd.f32 %v1171_v8, %v7502_v24 }
 0x1d6   : > { %v1076_v23 = vadd.f32 %v1075_v33, %v7492_v3  ;;  %v1124_v25 = vpop.f32.mrf.mxu1  ;;  %v1221_v3 = vadd.f32 %v1220_v12, %v7506_v58  ;;  %v5553_v12 = vld [vmem:[#allocation8 + $0x188] sm:$0xf] }
 0x1d7   : > { %v1125_v38 = vadd.f32 %v1124_v25, %v7495_v6  ;;  %v1343_v14 = vmax.f32 %v1172_v44, 0.0  ;;  %v5554_v21 = vor.u32 %v6507_v17, %v5553_v12 }
 0x1d8   : > { %v1349_v40 = vmax.f32 %v1076_v23, 0.0  ;;  %v1344_v1 = vmax.f32 %v1221_v3, 0.0  ;;  %v6033_v3 = vld [vmem:[#allocation8 + $0x548] sm:$0xf] }
 0x1d9   : > { %v1350_v42 = vmax.f32 %v1125_v38, 0.0  ;;  %3332 = vmatpush.bf16.msra.mxu0 %v5554_v21  ;;  %v6571_v38 = vld [vmem:[#allocation8 + $0x3a4] sm:$0xf0] }
 0x1da   : > { %v7648_v35 = vpack.c.bf16 %v1349_v40, %v1341_v22  ;;  %v6322_v22 = vor.u32 %v6699_v20, %v6321_v19  ;;  %v5777_v21 = vld [vmem:[#allocation8 + $0x348] sm:$0xf] }
 0x1db   : > { %v7651_v46 = vpack.c.bf16 %v1350_v42, %v1342_v29  ;;  %v5809_v29 = vld [vmem:[#allocation8 + $0x388] sm:$0xf] }
 0x1dc   : > { %v1173_v50 = vpop.f32.mrf.mxu2  ;;  %2982 = vmatmul.bf16.gmra.mxu0 %v7648_v35  ;;  %3479 = vmatpush.bf16.msra.mxu3 %v6322_v22  ;;  %v5810_v40 = vor.u32 %v6571_v38, %v5809_v29  ;;  %v6563_v22 = vld [vmem:[#allocation8 + $0x364] sm:$0xf0] }
 0x1dd   : > { %v1174_v6 = vadd.f32 %v1173_v50, %v7502_v24  ;;  %v1222_v53 = vpop.f32.mrf.mxu3  ;;  %3031 = vmatmul.bf16.gmra.mxu1 %v7651_v46  ;;  %v7667_v24 = vperm.slane %v7660_v4, 0  ;;  %v6627_v50 = vld [vmem:[#allocation8 + $0x564] sm:$0xf0] }
 0x1de   : > { %v1223_v54 = vadd.f32 %v1222_v53, %v7506_v58  ;;  %v6635_v58 = vld [vmem:[#allocation8 + $0x5a4] sm:$0xf0]  ;;  %3381 = vmatpush.bf16.msra.mxu1 %v5810_v40  ;;  %v6034_v53 = vor.u32 %v6627_v50, %v6033_v3 }
 0x1df   : > { %v1351_v61 = vmax.f32 %v1174_v6, 0.0  ;;  %v6066_v33 = vor.u32 %v6635_v58, %v6065_v10 }
 0x1e0   : > { %v1352_v2 = vmax.f32 %v1223_v54, 0.0  ;;  %v6499_v54 = vld [vmem:[#allocation8 + $0x164] sm:$0xf0] }
 0x1e1   : > { %v7658_v8 = vpack.c.bf16 %v1351_v61, %v1343_v14  ;;  %3430 = vmatpush.bf16.msra.mxu2 %v6066_v33  ;;  %v6289_v14 = vld [vmem:[#allocation8 + $0x748] sm:$0xf]  ;;  %v5522_v10 = vor.u32 %v6499_v54, %v5521_v9 }
 0x1e2   : > { %v7662_v7 = vpack.c.bf16 %v1352_v2, %v1344_v1  ;;  %v6691_v61 = vld [vmem:[#allocation8 + $0x764] sm:$0xf0] }
 0x1e3   : > { %3080 = vmatmul.bf16.gmra.mxu2 %v7658_v8  ;;  %v6290_v58 = vor.u32 %v6691_v61, %v6289_v14  ;;  %3333 = vmatpush.bf16.msra.mxu0 %v5522_v10  ;;  %v6001_v9 = vld [vmem:[#allocation8 + $0x508] sm:$0xf] }
 0x1e4   : > { %3129 = vmatmul.bf16.gmra.mxu3 %v7662_v7  ;;  %v6491_v14 = vld [vmem:[#allocation8 + $0x124] sm:$0xf0] }
 0x1e5   : > { %3431 = vmatpush.bf16.msra.mxu2 %v6034_v53  ;;  %3480 = vmatpush.bf16.msra.mxu3 %v6290_v58  ;;  %v5489_v53 = vld [vmem:[#allocation8 + $0x108] sm:$0xf] }
 0x1e6   : > { %v6257_v61 = vld [vmem:[#allocation8 + $0x708] sm:$0xf]  ;;  %v5490_v58 = vor.u32 %v6491_v14, %v5489_v53 }
 0x1e7   : > { %v6611_v53 = vld [vmem:[#allocation8 + $0x4e4] sm:$0xf0] }
 0x1e8   : > { %3334 = vmatpush.bf16.msra.mxu0 %v5490_v58 }
 0x1e9   : > { %v2948_v23 = vpop.f32.mrf.mxu0 }
 0x1ea   : > { %v2949_v25 = vadd.f32 %v2948_v23, %v7667_v24  ;;  %v2997_v26 = vpop.f32.mrf.mxu1 }
 0x1ec   : > { %v2998_v28 = vadd.f32 %v2997_v26, %v2949_v25  ;;  %3143 = vmatmul.bf16.vlgmr.msrb.gmra.mxu0 %v7508_v36  ;;  %v5778_v25 = vor.u32 %v6563_v22, %v5777_v21 }
 0x1ed   : > { %3192 = vmatmul.bf16.vlgmr.msrb.gmra.mxu1 %v7511_v39 }
 0x1ee   : > { %3382 = vmatpush.bf16.msra.mxu1 %v5778_v25 }
 0x1f1   : > { %v2950_v42 = vpop.f32.mrf.mxu0 }
 0x1f2   : > { %v2951_v44 = vadd.f32 %v2950_v42, %v7667_v24  ;;  %v2999_v48 = vpop.f32.mrf.mxu1 }
 0x1f3   : > { %3241 = vmatmul.bf16.vlgmr.msrb.gmra.mxu2 %v7518_v51 }
 0x1f4   : > { %v3000_v49 = vadd.f32 %v2999_v48, %v2951_v44  ;;  %3290 = vmatmul.bf16.vlgmr.msrb.gmra.mxu3 %v7520_v52 }
 0x1f6   : > { %v3046_v6 = vpop.f32.mrf.mxu2 }
 0x1f7   : > { %v3047_v1 = vadd.f32 %v3046_v6, %v2998_v28  ;;  %v3095_v2 = vpop.f32.mrf.mxu3  ;;  %v6619_v6 = vld [vmem:[#allocation8 + $0x524] sm:$0xf0] }
 0x1f9   : > { %v3096_v12 = vadd.f32 %v3095_v2, %v3047_v1  ;;  %v2953_v33 = vpop.f32.mrf.mxu0  ;;  %v6683_v1 = vld [vmem:[#allocation8 + $0x724] sm:$0xf0] }
 0x1fa   : > { %v2954_v17 = vadd.f32 %v2953_v33, %v7667_v24  ;;  %v3002_v19 = vpop.f32.mrf.mxu1  ;;  %v6258_v33 = vor.u32 %v6683_v1, %v6257_v61  ;;  %v6483_v61 = vld [vmem:[#allocation8 + $0xe4] sm:$0xf0] }
 0x1fb   : > { %v4507_v44 = vmax.f32 %v3096_v12, 0.0  ;;  %v6675_v1 = vld [vmem:[#allocation8 + $0x6e4] sm:$0xf0] }
 0x1fc   : > { %v3003_v20 = vadd.f32 %v3002_v19, %v2954_v17  ;;  %3148 = vmatmul.bf16.gmra.mxu0 %v7528_v11  ;;  %3481 = vmatpush.bf16.msra.mxu3 %v6258_v33 }
 0x1fd   : > { %3197 = vmatmul.bf16.gmra.mxu1 %v7531_v16 }
 0x1fe   : > { %v3048_v23 = vpop.f32.mrf.mxu2 }
 0x1ff   : > { %v3049_v26 = vadd.f32 %v3048_v23, %v3000_v49  ;;  %v3097_v28 = vpop.f32.mrf.mxu3  ;;  %v6002_v49 = vor.u32 %v6619_v6, %v6001_v9  ;;  %v5969_v6 = vld [vmem:[#allocation8 + $0x4c8] sm:$0xf] }
 0x200   : > { %v5970_v14 = vor.u32 %v6611_v53, %v5969_v6  ;;  %v6475_v53 = vld [vmem:[#allocation8 + $0xa4] sm:$0xf0] }
 0x201   : > { %v3098_v29 = vadd.f32 %v3097_v28, %v3049_v26  ;;  %v2955_v38 = vpop.f32.mrf.mxu0  ;;  %3432 = vmatpush.bf16.msra.mxu2 %v6002_v49  ;;  %v5745_v26 = vld [vmem:[#allocation8 + $0x308] sm:$0xf] }
 0x202   : > { %v2956_v40 = vadd.f32 %v2955_v38, %v7667_v24  ;;  %v3004_v42 = vpop.f32.mrf.mxu1 }
 0x203   : > { %v4515_v48 = vmax.f32 %v3098_v29, 0.0  ;;  %3246 = vmatmul.bf16.gmra.mxu2 %v7538_v5 }
 0x204   : > { %v3005_v3 = vadd.f32 %v3004_v42, %v2956_v40  ;;  %3295 = vmatmul.bf16.gmra.mxu3 %v7540_v32 }
 0x205   : > { %v4715_v50 = vadd.f32 %v4515_v48, %v4507_v44  ;;  %3433 = vmatpush.bf16.msra.mxu2 %v5970_v14 }
 0x206   : > { %v3051_v54 = vpop.f32.mrf.mxu2 }
 0x207   : > { %v3052_v2 = vadd.f32 %v3051_v54, %v3003_v20  ;;  %v3100_v10 = vpop.f32.mrf.mxu3  ;;  %v6555_v20 = vld [vmem:[#allocation8 + $0x324] sm:$0xf0] }
 0x208   : > { %v5746_v29 = vor.u32 %v6555_v20, %v5745_v26  ;;  %v5457_v54 = vld [vmem:[#allocation8 + $0xc8] sm:$0xf] }
 0x209   : > { %v3101_v12 = vadd.f32 %v3100_v10, %v3052_v2  ;;  %v2958_v17 = vpop.f32.mrf.mxu0  ;;  %v5458_v58 = vor.u32 %v6483_v61, %v5457_v54  ;;  %v6193_v54 = vld [vmem:[#allocation8 + $0x688] sm:$0xf] }
 0x20a   : > { %v2959_v19 = vadd.f32 %v2958_v17, %v7667_v24  ;;  %v3007_v21 = vpop.f32.mrf.mxu1  ;;  %3383 = vmatpush.bf16.msra.mxu1 %v5746_v29 }
 0x20b   : > { %v4523_v22 = vmax.f32 %v3101_v12, 0.0  ;;  %3335 = vmatpush.bf16.msra.mxu0 %v5458_v58  ;;  %v6539_v58 = vld [vmem:[#allocation8 + $0x2a4] sm:$0xf0] }
 0x20c   : > { %v3008_v23 = vadd.f32 %v3007_v21, %v2959_v19  ;;  %3153 = vmatmul.bf16.gmra.mxu0 %v7548_v57 }
 0x20d   : > { %v4716_v25 = vadd.f32 %v4715_v50, %v4523_v22  ;;  %3202 = vmatmul.bf16.gmra.mxu1 %v7551_v31 }
 0x20e   : > { %v3053_v28 = vpop.f32.mrf.mxu2 }
 0x20f   : > { %v3054_v38 = vadd.f32 %v3053_v28, %v3005_v3  ;;  %v3102_v40 = vpop.f32.mrf.mxu3  ;;  %v6225_v3 = vld [vmem:[#allocation8 + $0x6c8] sm:$0xf] }
 0x210   : > { %v6226_v33 = vor.u32 %v6675_v1, %v6225_v3 }
 0x211   : > { %v3103_v42 = vadd.f32 %v3102_v40, %v3054_v38  ;;  %v7684_v44 = vpop.f32.mrf.mxu0  ;;  %v5937_v40 = vld [vmem:[#allocation8 + $0x488] sm:$0xf] }
 0x212   : > { %v7686_v48 = vpop.f32.mrf.mxu1  ;;  %3482 = vmatpush.bf16.msra.mxu3 %v6226_v33 }
 0x213   : > { %v4531_v9 = vmax.f32 %v3103_v42, 0.0  ;;  %3251 = vmatmul.bf16.gmra.mxu2 %v7558_v18  ;;  %v6603_v42 = vld [vmem:[#allocation8 + $0x4a4] sm:$0xf0] }
 0x214   : > { %3300 = vmatmul.bf16.gmra.mxu3 %v7560_v34  ;;  %v5938_v6 = vor.u32 %v6603_v42, %v5937_v40  ;;  %v6595_v40 = vld [vmem:[#allocation8 + $0x464] sm:$0xf0] }
 0x215   : > { %v4717_v50 = vadd.f32 %v4716_v25, %v4531_v9  ;;  %v5713_v25 = vld [vmem:[#allocation8 + $0x2c8] sm:$0xf] }
 0x216   : > { %v3056_v49 = vpop.f32.mrf.mxu2  ;;  %v5425_v9 = vld [vmem:[#allocation8 + $0x88] sm:$0xf]  ;;  %3434 = vmatpush.bf16.msra.mxu2 %v5938_v6 }
 0x217   : > { %v3057_v2 = vadd.f32 %v3056_v49, %v3008_v23  ;;  %v3105_v10 = vpop.f32.mrf.mxu3  ;;  %v6547_v23 = vld [vmem:[#allocation8 + $0x2e4] sm:$0xf0]  ;;  %v5426_v61 = vor.u32 %v6475_v53, %v5425_v9 }
 0x218   : > { %v5714_v20 = vor.u32 %v6547_v23, %v5713_v25  ;;  %v6667_v49 = vld [vmem:[#allocation8 + $0x6a4] sm:$0xf0] }
 0x219   : > { %v3106_v12 = vadd.f32 %v3105_v10, %v3057_v2  ;;  %v7690_v17 = vpop.f32.mrf.mxu0  ;;  %v6194_v3 = vor.u32 %v6667_v49, %v6193_v54  ;;  %3336 = vmatpush.bf16.msra.mxu0 %v5426_v61  ;;  %v5681_v10 = vld [vmem:[#allocation8 + $0x288] sm:$0xf] }
 0x21a   : > { %v7692_v19 = vpop.f32.mrf.mxu1  ;;  %3384 = vmatpush.bf16.msra.mxu1 %v5714_v20  ;;  %v5905_v20 = vld [vmem:[#allocation8 + $0x448] sm:$0xf] }
 0x21b   : > { %v4539_v21 = vmax.f32 %v3106_v12, 0.0  ;;  %3483 = vmatpush.bf16.msra.mxu3 %v6194_v3  ;;  %v5682_v12 = vor.u32 %v6539_v58, %v5681_v10  ;;  %v5393_v42 = vld [vmem:[#allocation8 + $0x48] sm:$0xf]  ;;  %v5906_v6 = vor.u32 %v6595_v40, %v5905_v20 }
 0x21c   : > { %3158 = vmatmul.bf16.gmra.mxu0 %v7568_v45  ;;  %v6467_v53 = vld [vmem:[#allocation8 + $0x64] sm:$0xf0] }
 0x21d   : > { %v7695_v22 = vadd.f32 %v4717_v50, %v4539_v21  ;;  %3207 = vmatmul.bf16.gmra.mxu1 %v7571_v47  ;;  %v6161_v54 = vld [vmem:[#allocation8 + $0x648] sm:$0xf]  ;;  %v5394_v3 = vor.u32 %v6467_v53, %v5393_v42  ;;  %3435 = vmatpush.bf16.msra.mxu2 %v5906_v6 }
 0x21e   : > { %v7698_v26 = vpop.f32.mrf.mxu2  ;;  %3385 = vmatpush.bf16.msra.mxu1 %v5682_v12  ;;  %v6659_v49 = vld [vmem:[#allocation8 + $0x664] sm:$0xf0] }
 0x21f   : > { %v7700_v28 = vpop.f32.mrf.mxu3  ;;  %v6162_v10 = vor.u32 %v6659_v49, %v6161_v54  ;;  %3337 = vmatpush.bf16.msra.mxu0 %v5394_v3  ;;  %v5873_v53 = vld [vmem:[#allocation8 + $0x408] sm:$0xf] }
 0x220   : > { %v6587_v54 = vld [vmem:[#allocation8 + $0x424] sm:$0xf0] }
 0x221   : > { %v7702_v29 = vpop.f32.mrf.mxu0  ;;  %3484 = vmatpush.bf16.msra.mxu3 %v6162_v10  ;;  %v5361_v49 = vld [vmem:[#allocation8 + $0x8] sm:$0xf]  ;;  %v5874_v10 = vor.u32 %v6587_v54, %v5873_v53  ;;  %v2961_v53 = vadd.f32 %v7684_v44, %v7667_v24 }
 0x222   : > { %v7704_v38 = vpop.f32.mrf.mxu1 }
 0x223   : > { %3256 = vmatmul.bf16.gmra.mxu2 %v7578_v63  ;;  %v6523_v63 = vld [vmem:[#allocation8 + $0x224] sm:$0xf0] }
 0x224   : > { %3305 = vmatmul.bf16.gmra.mxu3 %v7580_v0  ;;  %3436 = vmatpush.bf16.msra.mxu2 %v5874_v10  ;;  %v5617_v0 = vld [vmem:[#allocation8 + $0x208] sm:$0xf] }
 0x226   : > { %v7708_v50 = vpop.f32.mrf.mxu2 }
 0x227   : > { %v7710_v14 = vpop.f32.mrf.mxu3 }
 0x229   : > { %v7712_v1 = vpop.f32.mrf.mxu0 }
 0x22a   : > { %v7714_v2 = vpop.f32.mrf.mxu1  ;;  %v2969_v10 = vadd.f32 %v7712_v1, %v7667_v24 }
 0x22c   : > { %3163 = vmatmul.bf16.gmra.mxu0 %v7588_v37  ;;  %v3018_v1 = vadd.f32 %v7714_v2, %v2969_v10  ;;  %v6575_v10 = vld [vmem:[#allocation8 + $0x3cc] sm:$0xf] }
 0x22d   : > { %3212 = vmatmul.bf16.gmra.mxu1 %v7591_v41 }
 0x22e   : > { %v7718_v33 = vpop.f32.mrf.mxu2 }
 0x22f   : > { %v7720_v21 = vpop.f32.mrf.mxu3 }
 0x231   : > { %v7722_v25 = vpop.f32.mrf.mxu0 }
 0x232   : > { %v7724_v23 = vpop.f32.mrf.mxu1 }
 0x233   : > { %3261 = vmatmul.bf16.gmra.mxu2 %v7598_v59  ;;  %v6531_v59 = vld [vmem:[#allocation8 + $0x264] sm:$0xf0] }
 0x234   : > { %3310 = vmatmul.bf16.gmra.mxu3 %v7600_v60  ;;  %v5649_v60 = vld [vmem:[#allocation8 + $0x248] sm:$0xf] }
 0x235   : > { %v5650_v40 = vor.u32 %v6531_v59, %v5649_v60  ;;  %v6651_v59 = vld [vmem:[#allocation8 + $0x624] sm:$0xf0] }
 0x236   : > { %v7728_v9 = vpop.f32.mrf.mxu2 }
 0x237   : > { %v7730_v61 = vpop.f32.mrf.mxu3  ;;  %3386 = vmatpush.bf16.msra.mxu1 %v5650_v40 }
 0x239   : > { %v2973_v58 = vpop.f32.mrf.mxu0 }
 0x23a   : > { %v7732_v12 = vpop.f32.mrf.mxu1 }
 0x23c   : > { %3168 = vmatmul.bf16.gmra.mxu0 %v7608_v27  ;;  %v6129_v27 = vld [vmem:[#allocation8 + $0x608] sm:$0xf] }
 0x23d   : > { %3217 = vmatmul.bf16.gmra.mxu1 %v7611_v30  ;;  %v6459_v30 = vld [vmem:[#allocation8 + $0x24] sm:$0xf0]  ;;  %v6130_v37 = vor.u32 %v6651_v59, %v6129_v27  ;;  %v2964_v27 = vadd.f32 %v7690_v17, %v7667_v24  ;;  %v2971_v59 = vadd.f32 %v7722_v25, %v7667_v24 }
 0x23e   : > { %v7736_v20 = vpop.f32.mrf.mxu2  ;;  %v5362_v40 = vor.u32 %v6459_v30, %v5361_v49  ;;  %v3010_v49 = vadd.f32 %v7686_v48, %v2961_v53 }
 0x23f   : > { %v7738_v41 = vpop.f32.mrf.mxu3  ;;  %3485 = vmatpush.bf16.msra.mxu3 %v6130_v37  ;;  %v3013_v44 = vadd.f32 %v7692_v19, %v2964_v27  ;;  %v6639_v19 = vld [vmem:[#allocation8 + $0x5cc] sm:$0xf] }
 0x240   : > { %3338 = vmatpush.bf16.msra.mxu0 %v5362_v40  ;;  %v6099_v27 = vld [vmem:[#allocation8 + $0x5e8] sm:$0xf0] }
 0x241   : > { %v7740_v42 = vpop.f32.mrf.mxu0  ;;  %v3062_v48 = vadd.f32 %v7708_v50, %v3013_v44  ;;  %v6703_v50 = vld [vmem:[#allocation8 + $0x7cc] sm:$0xf] }
 0x242   : > { %v7742_v6 = vpop.f32.mrf.mxu1  ;;  %v6355_v44 = vld [vmem:[#allocation8 + $0x7e8] sm:$0xf0] }
 0x243   : > { %3266 = vmatmul.bf16.gmra.mxu2 %v7618_v55 }
 0x244   : > { %3315 = vmatmul.bf16.gmra.mxu3 %v7620_v56  ;;  %v5618_v56 = vor.u32 %v6523_v63, %v5617_v0  ;;  %v2966_v63 = vadd.f32 %v7702_v29, %v7667_v24  ;;  %v2974_v29 = vadd.f32 %v2973_v58, %v7667_v24  ;;  %v3111_v58 = vadd.f32 %v7710_v14, %v3062_v48 }
 0x246   : > { %v7746_v3 = vpop.f32.mrf.mxu2  ;;  %3387 = vmatpush.bf16.msra.mxu1 %v5618_v56  ;;  %v3059_v56 = vadd.f32 %v7698_v26, %v3010_v49  ;;  %v3015_v17 = vadd.f32 %v7704_v38, %v2966_v63  ;;  %v6511_v49 = vld [vmem:[#allocation8 + $0x1cc] sm:$0xf]  ;;  %v6102_v38 = vor.u32 %v6639_v19, %v6099_v27  ;;  %v4555_v48 = vmax.f32 %v3111_v58, 0.0 }
 0x247   : > { %v7748_v60 = vpop.f32.mrf.mxu3  ;;  %v5587_v63 = vld [vmem:[#allocation8 + $0x1e8] sm:$0xf0] }
 0x248   : > { %v3108_v26 = vadd.f32 %v7700_v28, %v3059_v56  ;;  %v5590_v25 = vor.u32 %v6511_v49, %v5587_v63  ;;  %v3020_v28 = vadd.f32 %v7724_v23, %v2971_v59  ;;  %v3067_v56 = vadd.f32 %v7728_v9, %v3018_v1  ;;  %3625 = vmatpush.bf16.msrb.mxu2 %v6102_v38 }
 0x249   : > { %v2978_v47 = vpop.f32.mrf.mxu0 }
 0x24a   : > { %v7750_v55 = vpop.f32.mrf.mxu1  ;;  %v4547_v2 = vmax.f32 %v3108_v26, 0.0  ;;  %3527 = vmatpush.bf16.msrb.mxu0 %v5590_v25  ;;  %v3069_v14 = vadd.f32 %v7736_v20, %v3020_v28  ;;  %v6503_v25 = vld [vmem:[#allocation8 + $0x18c] sm:$0xf] }
 0x24b   : > { %v5555_v28 = vld [vmem:[#allocation8 + $0x1a8] sm:$0xf0] }
 0x24c   : > { %3173 = vmatmul.bf16.gmra.mxu0 %v7628_v13  ;;  %v3023_v13 = vadd.f32 %v7732_v12, %v2974_v29  ;;  %v2979_v12 = vadd.f32 %v2978_v47, %v7667_v24  ;;  %v4719_v20 = vadd.f32 %v7695_v22, %v4547_v2  ;;  %v6323_v2 = vld [vmem:[#allocation8 + $0x7a8] sm:$0xf0] }
 0x24d   : > { %3222 = vmatmul.bf16.gmra.mxu1 %v7631_v43  ;;  %v6358_v43 = vor.u32 %v6703_v50, %v6355_v44  ;;  %v6067_v44 = vld [vmem:[#allocation8 + $0x5a8] sm:$0xf0] }
 0x24e   : > { %v3073_v54 = vpop.f32.mrf.mxu2  ;;  %v3072_v23 = vadd.f32 %v7746_v3, %v3023_v13  ;;  %v3118_v3 = vadd.f32 %v7738_v41, %v3069_v14  ;;  %v3028_v47 = vadd.f32 %v7750_v55, %v2979_v12  ;;  %v4720_v49 = vadd.f32 %v4719_v20, %v4555_v48 }
 0x24f   : > { %v7756_v30 = vpop.f32.mrf.mxu3  ;;  %3674 = vmatpush.bf16.msrb.mxu3 %v6358_v43  ;;  %v7802_v41 = vperm.slane %v7660_v4, 1 }
 0x250   : > { %v3121_v29 = vadd.f32 %v7748_v60, %v3072_v23  ;;  %v4579_v22 = vmax.f32 %v3118_v3, 0.0  ;;  %v5811_v3 = vld [vmem:[#allocation8 + $0x3a8] sm:$0xf0] }
 0x251   : > { %v2980_v37 = vpop.f32.mrf.mxu0 }
 0x252   : > { %v3029_v0 = vpop.f32.mrf.mxu1  ;;  %v4587_v50 = vmax.f32 %v3121_v29, 0.0 }
 0x253   : > { %3271 = vmatmul.bf16.gmra.mxu2 %v7638_v62 }
 0x254   : > { %3320 = vmatmul.bf16.gmra.mxu3 %v7640_v15  ;;  %v3064_v15 = vadd.f32 %v7718_v33, %v3015_v17  ;;  %v2976_v33 = vadd.f32 %v7740_v42, %v7667_v24  ;;  %v5843_v17 = vld [vmem:[#allocation8 + $0x3e8] sm:$0xf0]  ;;  %v3116_v42 = vadd.f32 %v7730_v61, %v3067_v56 }
 0x255   : > { %v5846_v9 = vor.u32 %v6575_v10, %v5843_v17  ;;  %v6695_v56 = vld [vmem:[#allocation8 + $0x78c] sm:$0xf] }
 0x256   : > { %v3076_v40 = vpop.f32.mrf.mxu2  ;;  %v3113_v19 = vadd.f32 %v7720_v21, %v3064_v15  ;;  %v3025_v43 = vadd.f32 %v7742_v6, %v2976_v33  ;;  %v2981_v15 = vadd.f32 %v2980_v37, %v7667_v24  ;;  %v4571_v1 = vmax.f32 %v3116_v42, 0.0 }
 0x257   : > { %v7775_v53 = vpop.f32.mrf.mxu3  ;;  %3576 = vmatpush.bf16.msrb.mxu1 %v5846_v9  ;;  %v3077_v63 = vadd.f32 %v3076_v40, %v3028_v47  ;;  %v6326_v4 = vor.u32 %v6695_v56, %v6323_v2 }
 0x258   : > { %v4563_v13 = vmax.f32 %v3113_v19, 0.0  ;;  %v3074_v26 = vadd.f32 %v3073_v54, %v3025_v43  ;;  %v3030_v6 = vadd.f32 %v3029_v0, %v2981_v15  ;;  %v6631_v54 = vld [vmem:[#allocation8 + $0x58c] sm:$0xf]  ;;  %v5558_v19 = vor.u32 %v6503_v25, %v5555_v28 }
 0x259   : > { %v2983_v62 = vpop.f32.mrf.mxu0  ;;  %v6070_v40 = vor.u32 %v6631_v54, %v6067_v44  ;;  %v3126_v33 = vadd.f32 %v7775_v53, %v3077_v63  ;;  %3675 = vmatpush.bf16.msrb.mxu3 %v6326_v4  ;;  %v6495_v54 = vld [vmem:[#allocation8 + $0x14c] sm:$0xf] }
 0x25a   : > { %v3032_v45 = vpop.f32.mrf.mxu1  ;;  %v2984_v27 = vadd.f32 %v2983_v62, %v7667_v24  ;;  %v4721_v37 = vadd.f32 %v4720_v49, %v4563_v13  ;;  %v3123_v55 = vadd.f32 %v7756_v30, %v3074_v26  ;;  %3528 = vmatpush.bf16.msrb.mxu0 %v5558_v19 }
 0x25b   : > { %3626 = vmatpush.bf16.msrb.mxu2 %v6070_v40  ;;  %v6291_v40 = vld [vmem:[#allocation8 + $0x768] sm:$0xf0] }
 0x25c   : > { %3178 = vmatmul.bf16.gmra.mxu0 %v7648_v35  ;;  %v3033_v60 = vadd.f32 %v3032_v45, %v2984_v27  ;;  %v4722_v58 = vadd.f32 %v4721_v37, %v4571_v1  ;;  %v4595_v30 = vmax.f32 %v3123_v55, 0.0 }
 0x25d   : > { %3227 = vmatmul.bf16.gmra.mxu1 %v7651_v46 }
 0x25e   : > { %v3078_v59 = vpop.f32.mrf.mxu2  ;;  %v4723_v14 = vadd.f32 %v4722_v58, %v4579_v22  ;;  %v5523_v58 = vld [vmem:[#allocation8 + $0x168] sm:$0xf0] }
 0x25f   : > { %v3127_v21 = vpop.f32.mrf.mxu3  ;;  %v3079_v62 = vadd.f32 %v3078_v59, %v3030_v6  ;;  %v4603_v59 = vmax.f32 %v3126_v33, 0.0  ;;  %v5526_v2 = vor.u32 %v6495_v54, %v5523_v58 }
 0x260   : > { %v4724_v42 = vadd.f32 %v4723_v14, %v4587_v50 }
 0x261   : > { %v2985_v61 = vpop.f32.mrf.mxu0  ;;  %v3128_v45 = vadd.f32 %v3127_v21, %v3079_v62  ;;  %v6567_v21 = vld [vmem:[#allocation8 + $0x38c] sm:$0xf]  ;;  %3529 = vmatpush.bf16.msrb.mxu0 %v5526_v2 }
 0x262   : > { %v3034_v38 = vpop.f32.mrf.mxu1  ;;  %v2986_v23 = vadd.f32 %v2985_v61, %v7667_v24  ;;  %v4725_v15 = vadd.f32 %v4724_v42, %v4595_v30  ;;  %v5814_v29 = vor.u32 %v6567_v21, %v5811_v3  ;;  %v6035_v62 = vld [vmem:[#allocation8 + $0x568] sm:$0xf0] }
 0x263   : > { %3276 = vmatmul.bf16.gmra.mxu2 %v7658_v8  ;;  %v4611_v20 = vmax.f32 %v3128_v45, 0.0  ;;  %v6559_v30 = vld [vmem:[#allocation8 + $0x34c] sm:$0xf] }
 0x264   : > { %3325 = vmatmul.bf16.gmra.mxu3 %v7662_v7  ;;  %v3035_v13 = vadd.f32 %v3034_v38, %v2986_v23  ;;  %v4726_v47 = vadd.f32 %v4725_v15, %v4603_v59  ;;  %3577 = vmatpush.bf16.msrb.mxu1 %v5814_v29  ;;  %v5779_v45 = vld [vmem:[#allocation8 + $0x368] sm:$0xf0] }
 0x265   : > { %v6615_v3 = vld [vmem:[#allocation8 + $0x50c] sm:$0xf] }
 0x266   : > { %v3081_v0 = vpop.f32.mrf.mxu2  ;;  %v4727_v49 = vadd.f32 %v4726_v47, %v4611_v20  ;;  %v6487_v29 = vld [vmem:[#allocation8 + $0x10c] sm:$0xf] }
 0x267   : > { %v3082_v10 = vadd.f32 %v3081_v0, %v3033_v60  ;;  %v3130_v17 = vpop.f32.mrf.mxu3  ;;  %v6623_v60 = vld [vmem:[#allocation8 + $0x54c] sm:$0xf] }
 0x268   : > { %v6038_v25 = vor.u32 %v6623_v60, %v6035_v62  ;;  %v6687_v0 = vld [vmem:[#allocation8 + $0x74c] sm:$0xf] }
 0x269   : > { %v3144_v9 = vpop.f32.mrf.mxu0  ;;  %v3131_v43 = vadd.f32 %v3130_v17, %v3082_v10  ;;  %v6294_v33 = vor.u32 %v6687_v0, %v6291_v40 }
 0x26a   : > { %v3145_v12 = vadd.f32 %v3144_v9, %v7802_v41  ;;  %v3193_v48 = vpop.f32.mrf.mxu1  ;;  %3627 = vmatpush.bf16.msrb.mxu2 %v6038_v25  ;;  %v5782_v9 = vor.u32 %v6559_v30, %v5779_v45  ;;  %v5747_v25 = vld [vmem:[#allocation8 + $0x328] sm:$0xf0] }
 0x26b   : > { %v4619_v26 = vmax.f32 %v3131_v43, 0.0  ;;  %3676 = vmatpush.bf16.msrb.mxu3 %v6294_v33 }
 0x26c   : > { %v3194_v53 = vadd.f32 %v3193_v48, %v3145_v12  ;;  %3339 = vmatmul.bf16.vlgmr.msra.gmra.mxu0 %v7508_v36  ;;  %3578 = vmatpush.bf16.msrb.mxu1 %v5782_v9  ;;  %v6671_v9 = vld [vmem:[#allocation8 + $0x6cc] sm:$0xf] }
 0x26d   : > { %3388 = vmatmul.bf16.vlgmr.msra.gmra.mxu1 %v7511_v39  ;;  %v4728_v22 = vadd.f32 %v4727_v49, %v4619_v26  ;;  %v6259_v49 = vld [vmem:[#allocation8 + $0x728] sm:$0xf0] }
 0x26e   : > { %v3083_v24 = vpop.f32.mrf.mxu2 }
 0x26f   : > { %v3084_v27 = vadd.f32 %v3083_v24, %v3035_v13  ;;  %v3132_v61 = vpop.f32.mrf.mxu3  ;;  %v6003_v24 = vld [vmem:[#allocation8 + $0x528] sm:$0xf0] }
 0x270   : > { %v6006_v26 = vor.u32 %v6615_v3, %v6003_v24  ;;  %v8750_v24 = vld [vmem:[#allocation20_spill] sm:$0xff] }
 0x271   : > { %v3133_v1 = vadd.f32 %v3132_v61, %v3084_v27  ;;  %v3146_v6 = vpop.f32.mrf.mxu0  ;;  %v5491_v27 = vld [vmem:[#allocation8 + $0x128] sm:$0xf0] }
 0x272   : > { %v3147_v63 = vadd.f32 %v3146_v6, %v7802_v41  ;;  %v3195_v37 = vpop.f32.mrf.mxu1  ;;  %v6679_v61 = vld [vmem:[#allocation8 + $0x70c] sm:$0xf]  ;;  %3628 = vmatpush.bf16.msrb.mxu2 %v6006_v26 }
 0x273   : > { %v4627_v38 = vmax.f32 %v3133_v1, 0.0  ;;  %3437 = vmatmul.bf16.vlgmr.msra.gmra.mxu2 %v7518_v51 }
 0x274   : > { %v3196_v50 = vadd.f32 %v3195_v37, %v3147_v63  ;;  %3486 = vmatmul.bf16.vlgmr.msra.gmra.mxu3 %v7520_v52  ;;  %v5494_v63 = vor.u32 %v6487_v29, %v5491_v27  ;;  %v6262_v37 = vor.u32 %v6679_v61, %v6259_v49  ;;  %v6543_v29 = vld [vmem:[#allocation8 + $0x2cc] sm:$0xf] }
 0x275   : > { %v4729_v55 = vadd.f32 %v4728_v22, %v4627_v38 }
 0x276   : > { %v3242_v44 = vpop.f32.mrf.mxu2  ;;  %3530 = vmatpush.bf16.msrb.mxu0 %v5494_v63  ;;  %3677 = vmatpush.bf16.msrb.mxu3 %v6262_v37  ;;  %v8752_v63 = vld [vmem:[#allocation22_spill] sm:$0xff]  ;;  %v6599_v37 = vld [vmem:[#allocation8 + $0x48c] sm:$0xf] }
 0x277   : > { %4835 = vst [vmem:[%s7815_s4] sm:$0xff] %v4729_v55  ;;  %v3243_v28 = vadd.f32 %v3242_v44, %v3194_v53  ;;  %v3291_v56 = vpop.f32.mrf.mxu3  ;;  %v6551_v44 = vld [vmem:[#allocation8 + $0x30c] sm:$0xf] }
 0x278   : > { %v5750_v0 = vor.u32 %v6551_v44, %v5747_v25 }
 0x279   : > { %v3292_v10 = vadd.f32 %v3291_v56, %v3243_v28  ;;  %v3149_v17 = vpop.f32.mrf.mxu0 }
 0x27a   : > { %v3150_v19 = vadd.f32 %v3149_v17, %v7802_v41  ;;  %v3198_v4 = vpop.f32.mrf.mxu1  ;;  %3579 = vmatpush.bf16.msrb.mxu1 %v5750_v0 }
 0x27b   : > { %v4508_v15 = vmax.f32 %v3292_v10, 0.0 }
 0x27c   : > { %v3199_v14 = vadd.f32 %v3198_v4, %v3150_v19  ;;  %3344 = vmatmul.bf16.gmra.mxu0 %v7528_v11  ;;  %v6607_v19 = vld [vmem:[#allocation8 + $0x4cc] sm:$0xf] }
 0x27d   : > { %3393 = vmatmul.bf16.gmra.mxu1 %v7531_v16  ;;  %v5971_v4 = vld [vmem:[#allocation8 + $0x4e8] sm:$0xf0] }
 0x27e   : > { %v3244_v23 = vpop.f32.mrf.mxu2  ;;  %v5974_v45 = vor.u32 %v6607_v19, %v5971_v4 }
 0x27f   : > { %v3245_v12 = vadd.f32 %v3244_v23, %v3196_v50  ;;  %v3293_v48 = vpop.f32.mrf.mxu3  ;;  %v5459_v23 = vld [vmem:[#allocation8 + $0xe8] sm:$0xf0] }
 0x280   : > { %3629 = vmatpush.bf16.msrb.mxu2 %v5974_v45 }
 0x281   : > { %v3294_v42 = vadd.f32 %v3293_v48, %v3245_v12  ;;  %v3151_v59 = vpop.f32.mrf.mxu0  ;;  %v6227_v12 = vld [vmem:[#allocation8 + $0x6e8] sm:$0xf0] }
 0x282   : > { %v3152_v43 = vadd.f32 %v3151_v59, %v7802_v41  ;;  %v3200_v53 = vpop.f32.mrf.mxu1 }
 0x283   : > { %v4516_v20 = vmax.f32 %v3294_v42, 0.0  ;;  %3442 = vmatmul.bf16.gmra.mxu2 %v7538_v5 }
 0x284   : > { %v3201_v13 = vadd.f32 %v3200_v53, %v3152_v43  ;;  %3491 = vmatmul.bf16.gmra.mxu3 %v7540_v32  ;;  %v6230_v43 = vor.u32 %v6671_v9, %v6227_v12  ;;  %v8756_v9 = vld [vmem:[#allocation26_spill] sm:$0xff]  ;;  %v6591_v12 = vld [vmem:[#allocation8 + $0x44c] sm:$0xf] }
 0x285   : > { %v4730_v21 = vadd.f32 %v4516_v20, %v4508_v15 }
 0x286   : > { %v3247_v47 = vpop.f32.mrf.mxu2  ;;  %3678 = vmatpush.bf16.msrb.mxu3 %v6230_v43 }
 0x287   : > { %v3248_v1 = vadd.f32 %v3247_v47, %v3199_v14  ;;  %v3296_v6 = vpop.f32.mrf.mxu3  ;;  %v6479_v14 = vld [vmem:[#allocation8 + $0xcc] sm:$0xf] }
 0x288   : > { %v5462_v59 = vor.u32 %v6479_v14, %v5459_v23  ;;  %v5715_v47 = vld [vmem:[#allocation8 + $0x2e8] sm:$0xf0]  ;;  %v8755_v23 = vld [vmem:[#allocation25_spill] sm:$0xff] }
 0x289   : > { %v3297_v22 = vadd.f32 %v3296_v6, %v3248_v1  ;;  %v3154_v38 = vpop.f32.mrf.mxu0  ;;  %v5718_v27 = vor.u32 %v6543_v29, %v5715_v47  ;;  %v8751_v6 = vld [vmem:[#allocation21_spill] sm:$0xff]  ;;  %v6163_v29 = vld [vmem:[#allocation8 + $0x668] sm:$0xf0] }
 0x28a   : > { %v3155_v50 = vadd.f32 %v3154_v38, %v7802_v41  ;;  %v3203_v55 = vpop.f32.mrf.mxu1  ;;  %3531 = vmatpush.bf16.msrb.mxu0 %v5462_v59  ;;  %v6471_v38 = vld [vmem:[#allocation8 + $0x8c] sm:$0xf] }
 0x28b   : > { %v4524_v60 = vmax.f32 %v3297_v22, 0.0  ;;  %3580 = vmatpush.bf16.msrb.mxu1 %v5718_v27  ;;  %v5939_v22 = vld [vmem:[#allocation8 + $0x4a8] sm:$0xf0] }
 0x28c   : > { %v3204_v62 = vadd.f32 %v3203_v55, %v3155_v50  ;;  %3349 = vmatmul.bf16.gmra.mxu0 %v7548_v57  ;;  %v5942_v55 = vor.u32 %v6599_v37, %v5939_v22 }
 0x28d   : > { %v4731_v54 = vadd.f32 %v4730_v21, %v4524_v60  ;;  %3398 = vmatmul.bf16.gmra.mxu1 %v7551_v31  ;;  %v8749_v21 = vld [vmem:[#allocation19_spill] sm:$0xff] }
 0x28e   : > { %v3249_v58 = vpop.f32.mrf.mxu2  ;;  %v5427_v60 = vld [vmem:[#allocation8 + $0xa8] sm:$0xf0]  ;;  %3630 = vmatpush.bf16.msrb.mxu2 %v5942_v55 }
 0x28f   : > { %v3250_v40 = vadd.f32 %v3249_v58, %v3201_v13  ;;  %v3298_v28 = vpop.f32.mrf.mxu3  ;;  %v5430_v25 = vor.u32 %v6471_v38, %v5427_v60  ;;  %v8757_v55 = vld [vmem:[#allocation27_spill] sm:$0xff]  ;;  %v8758_v60 = vld [vmem:[#allocation28_spill] sm:$0xff] }
 0x291   : > { %v3299_v56 = vadd.f32 %v3298_v28, %v3250_v40  ;;  %v7827_v2 = vpop.f32.mrf.mxu0  ;;  %3532 = vmatpush.bf16.msrb.mxu0 %v5430_v25  ;;  %v8753_v28 = vld [vmem:[#allocation23_spill] sm:$0xff] }
 0x292   : > { %v7829_v33 = vpop.f32.mrf.mxu1 }
 0x293   : > { %v4532_v10 = vmax.f32 %v3299_v56, 0.0  ;;  %3447 = vmatmul.bf16.gmra.mxu2 %v7558_v18  ;;  %v8754_v56 = vld [vmem:[#allocation24_spill] sm:$0xff] }
 0x294   : > { %3496 = vmatmul.bf16.gmra.mxu3 %v7560_v34 }
 0x295   : > { %v4732_v17 = vadd.f32 %v4731_v54, %v4532_v10  ;;  %v6195_v54 = vld [vmem:[#allocation8 + $0x6a8] sm:$0xf0] }
 0x296   : > { %v3252_v30 = vpop.f32.mrf.mxu2  ;;  %v6535_v10 = vld [vmem:[#allocation8 + $0x28c] sm:$0xf] }
 0x297   : > { %v3253_v48 = vadd.f32 %v3252_v30, %v3204_v62  ;;  %v3301_v42 = vpop.f32.mrf.mxu3  ;;  %v6663_v62 = vld [vmem:[#allocation8 + $0x68c] sm:$0xf] }
 0x298   : > { %v6198_v58 = vor.u32 %v6663_v62, %v6195_v54  ;;  %v6527_v62 = vld [vmem:[#allocation8 + $0x24c] sm:$0xf] }
 0x299   : > { %v3302_v53 = vadd.f32 %v3301_v42, %v3253_v48  ;;  %v7833_v15 = vpop.f32.mrf.mxu0  ;;  %v5907_v48 = vld [vmem:[#allocation8 + $0x468] sm:$0xf0] }
 0x29a   : > { %v7835_v20 = vpop.f32.mrf.mxu1  ;;  %3679 = vmatpush.bf16.msrb.mxu3 %v6198_v58  ;;  %v6463_v42 = vld [vmem:[#allocation8 + $0x4c] sm:$0xf]  ;;  %v5910_v43 = vor.u32 %v6591_v12, %v5907_v48  ;;  %v8759_v12 = vld [vmem:[#allocation29_spill] sm:$0xff]  ;;  %v8760_v48 = vld [vmem:[#allocation30_spill] sm:$0xff] }
 0x29b   : > { %v4540_v13 = vmax.f32 %v3302_v53, 0.0  ;;  %v5395_v53 = vld [vmem:[#allocation8 + $0x68] sm:$0xf0] }
 0x29c   : > { %3354 = vmatmul.bf16.gmra.mxu0 %v8749_v21  ;;  %v5398_v27 = vor.u32 %v6463_v42, %v5395_v53  ;;  %3631 = vmatpush.bf16.msrb.mxu2 %v5910_v43  ;;  %v5651_v54 = vld [vmem:[#allocation8 + $0x268] sm:$0xf0] }
 0x29d   : > { %v7838_v3 = vadd.f32 %v4732_v17, %v4540_v13  ;;  %3403 = vmatmul.bf16.gmra.mxu1 %v8750_v24  ;;  %v5683_v17 = vld [vmem:[#allocation8 + $0x2a8] sm:$0xf0]  ;;  %v5654_v58 = vor.u32 %v6527_v62, %v5651_v54 }
 0x29e   : > { %v7841_v26 = vpop.f32.mrf.mxu2  ;;  %v5686_v4 = vor.u32 %v6535_v10, %v5683_v17  ;;  %v6655_v13 = vld [vmem:[#allocation8 + $0x64c] sm:$0xf]  ;;  %3533 = vmatpush.bf16.msrb.mxu0 %v5398_v27 }
 0x29f   : > { %v7843_v61 = vpop.f32.mrf.mxu3  ;;  %v6166_v37 = vor.u32 %v6655_v13, %v6163_v29  ;;  %v6583_v42 = vld [vmem:[#allocation8 + $0x40c] sm:$0xf] }
 0x2a0   : > { %3581 = vmatpush.bf16.msrb.mxu1 %v5686_v4  ;;  %v5875_v43 = vld [vmem:[#allocation8 + $0x428] sm:$0xf0] }
 0x2a1   : > { %v7845_v49 = vpop.f32.mrf.mxu0  ;;  %3680 = vmatpush.bf16.msrb.mxu3 %v6166_v37  ;;  %v6455_v53 = vld [vmem:[#allocation8 + $0xc] sm:$0xf]  ;;  %v5878_v29 = vor.u32 %v6583_v42, %v5875_v43  ;;  %v3157_v42 = vadd.f32 %v7827_v2, %v7802_v41  ;;  %v8762_v43 = vld [vmem:[#allocation32_spill] sm:$0xff] }
 0x2a2   : > { %v7847_v1 = vpop.f32.mrf.mxu1  ;;  %v5363_v27 = vld [vmem:[#allocation8 + $0x28] sm:$0xf0] }
 0x2a3   : > { %3452 = vmatmul.bf16.gmra.mxu2 %v8751_v6  ;;  %v6647_v37 = vld [vmem:[#allocation8 + $0x60c] sm:$0xf] }
 0x2a4   : > { %3501 = vmatmul.bf16.gmra.mxu3 %v8752_v63  ;;  %3582 = vmatpush.bf16.msrb.mxu1 %v5654_v58  ;;  %v6131_v62 = vld [vmem:[#allocation8 + $0x628] sm:$0xf0]  ;;  %v5366_v58 = vor.u32 %v6455_v53, %v5363_v27  ;;  %v3206_v27 = vadd.f32 %v7829_v33, %v3157_v42 }
 0x2a5   : > { %3632 = vmatpush.bf16.msrb.mxu2 %v5878_v29  ;;  %v3160_v29 = vadd.f32 %v7833_v15, %v7802_v41 }
 0x2a6   : > { %v7851_v50 = vpop.f32.mrf.mxu2  ;;  %3534 = vmatpush.bf16.msrb.mxu0 %v5366_v58  ;;  %v8764_v58 = vld [vmem:[#allocation34_spill] sm:$0xff] }
 0x2a7   : > { %v7853_v44 = vpop.f32.mrf.mxu3  ;;  %v3209_v2 = vadd.f32 %v7835_v20, %v3160_v29  ;;  %v6105_v20 = vld [vmem:[#allocation8 + $0x5d0] sm:$0xf] }
 0x2a8   : > { %v6644_v29 = vld [vmem:[#allocation8 + $0x5ec] sm:$0xf0] }
 0x2a9   : > { %v7855_v0 = vpop.f32.mrf.mxu0  ;;  %v3258_v33 = vadd.f32 %v7851_v50, %v3209_v2  ;;  %v6361_v50 = vld [vmem:[#allocation8 + $0x7d0] sm:$0xf] }
 0x2aa   : > { %v7857_v40 = vpop.f32.mrf.mxu1  ;;  %v6708_v2 = vld [vmem:[#allocation8 + $0x7ec] sm:$0xf0] }
 0x2ab   : > { %v6362_v63 = vor.u32 %v6708_v2, %v6361_v50  ;;  %v6073_v2 = vld [vmem:[#allocation8 + $0x590] sm:$0xf] }
 0x2ac   : > { %3359 = vmatmul.bf16.gmra.mxu0 %v8753_v28 }
 0x2ad   : > { %3408 = vmatmul.bf16.gmra.mxu1 %v8754_v56  ;;  %v8761_v56 = vld [vmem:[#allocation31_spill] sm:$0xff] }
 0x2ae   : > { %v7861_v19 = vpop.f32.mrf.mxu2 }
 0x2af   : > { %v7863_v14 = vpop.f32.mrf.mxu3 }
 0x2b1   : > { %v7865_v30 = vpop.f32.mrf.mxu0 }
 0x2b2   : > { %v7867_v45 = vpop.f32.mrf.mxu1  ;;  %v3167_v42 = vadd.f32 %v7865_v30, %v7802_v41 }
 0x2b3   : > { %3457 = vmatmul.bf16.gmra.mxu2 %v8755_v23 }
 0x2b4   : > { %3506 = vmatmul.bf16.gmra.mxu3 %v8756_v9  ;;  %v5619_v9 = vld [vmem:[#allocation8 + $0x228] sm:$0xf0] }
 0x2b6   : > { %v7871_v59 = vpop.f32.mrf.mxu2 }
 0x2b7   : > { %v7873_v47 = vpop.f32.mrf.mxu3 }
 0x2b9   : > { %v3169_v22 = vpop.f32.mrf.mxu0 }
 0x2ba   : > { %v7875_v38 = vpop.f32.mrf.mxu1 }
 0x2bc   : > { %3364 = vmatmul.bf16.gmra.mxu0 %v8757_v55  ;;  %v6519_v55 = vld [vmem:[#allocation8 + $0x20c] sm:$0xf] }
 0x2bd   : > { %3413 = vmatmul.bf16.gmra.mxu1 %v8758_v60  ;;  %v6134_v60 = vor.u32 %v6647_v37, %v6131_v62  ;;  %v8763_v37 = vld [vmem:[#allocation33_spill] sm:$0xff]  ;;  %v3165_v62 = vadd.f32 %v7855_v0, %v7802_v41 }
 0x2be   : > { %v7879_v25 = vpop.f32.mrf.mxu2 }
 0x2bf   : > { %v7881_v10 = vpop.f32.mrf.mxu3  ;;  %3681 = vmatpush.bf16.msrb.mxu3 %v6134_v60  ;;  %v3214_v0 = vadd.f32 %v7857_v40, %v3165_v62  ;;  %v5849_v62 = vld [vmem:[#allocation8 + $0x3d0] sm:$0xf] }
 0x2c1   : > { %v7883_v17 = vpop.f32.mrf.mxu0 }
 0x2c2   : > { %v7885_v4 = vpop.f32.mrf.mxu1 }
 0x2c3   : > { %3462 = vmatmul.bf16.gmra.mxu2 %v8759_v12  ;;  %3870 = vmatpush.bf16.msra.mxu3 %v6362_v63 }
 0x2c4   : > { %3511 = vmatmul.bf16.gmra.mxu3 %v8760_v48  ;;  %v5622_v48 = vor.u32 %v6519_v55, %v5619_v9  ;;  %v3162_v9 = vadd.f32 %v7845_v49, %v7802_v41  ;;  %v3170_v49 = vadd.f32 %v3169_v22, %v7802_v41  ;;  %v3307_v22 = vadd.f32 %v7853_v44, %v3258_v33 }
 0x2c6   : > { %v7889_v13 = vpop.f32.mrf.mxu2  ;;  %3583 = vmatpush.bf16.msrb.mxu1 %v5622_v48  ;;  %v3255_v48 = vadd.f32 %v7841_v26, %v3206_v27  ;;  %v3211_v15 = vadd.f32 %v7847_v1, %v3162_v9  ;;  %v6106_v1 = vor.u32 %v6644_v29, %v6105_v20  ;;  %v6516_v9 = vld [vmem:[#allocation8 + $0x1ec] sm:$0xf0]  ;;  %v3219_v6 = vadd.f32 %v7875_v38, %v3170_v49 }
 0x2c7   : > { %v7891_v54 = vpop.f32.mrf.mxu3  ;;  %v4556_v33 = vmax.f32 %v3307_v22, 0.0 }
 0x2c8   : > { %v3304_v26 = vadd.f32 %v7843_v61, %v3255_v48  ;;  %v3216_v61 = vadd.f32 %v7867_v45, %v3167_v42  ;;  %v3263_v48 = vadd.f32 %v7871_v59, %v3214_v0  ;;  %3821 = vmatpush.bf16.msra.mxu2 %v6106_v1  ;;  %v3268_v45 = vadd.f32 %v7889_v13, %v3219_v6 }
 0x2c9   : > { %v3174_v23 = vpop.f32.mrf.mxu0 }
 0x2ca   : > { %v7893_v12 = vpop.f32.mrf.mxu1  ;;  %v4548_v40 = vmax.f32 %v3304_v26, 0.0  ;;  %v3265_v44 = vadd.f32 %v7879_v25, %v3216_v61  ;;  %v3175_v38 = vadd.f32 %v3174_v23, %v7802_v41  ;;  %v3317_v49 = vadd.f32 %v7891_v54, %v3268_v45 }
 0x2cc   : > { %3369 = vmatmul.bf16.gmra.mxu0 %v8761_v56  ;;  %v4734_v25 = vadd.f32 %v7838_v3, %v4548_v40  ;;  %v3314_v13 = vadd.f32 %v7881_v10, %v3265_v44  ;;  %v3224_v23 = vadd.f32 %v7893_v12, %v3175_v38  ;;  %v4588_v50 = vmax.f32 %v3317_v49, 0.0  ;;  %v7944_v10 = vld [vmem:[#allocation10] sm:$0xff]  ;;  %v6329_v40 = vld [vmem:[#allocation8 + $0x790] sm:$0xf] }
 0x2cd   : > { %3418 = vmatmul.bf16.gmra.mxu1 %v8762_v43  ;;  %v7947_v12 = vperm.slane %v7944_v10, 2 }
 0x2ce   : > { %v3269_v28 = vpop.f32.mrf.mxu2  ;;  %v4735_v29 = vadd.f32 %v4734_v25, %v4556_v33  ;;  %v4580_v3 = vmax.f32 %v3314_v13, 0.0 }
 0x2cf   : > { %v7899_v53 = vpop.f32.mrf.mxu3 }
 0x2d1   : > { %v3176_v60 = vpop.f32.mrf.mxu0 }
 0x2d2   : > { %v3225_v55 = vpop.f32.mrf.mxu1 }
 0x2d3   : > { %3467 = vmatmul.bf16.gmra.mxu2 %v8763_v37  ;;  %v5593_v37 = vld [vmem:[#allocation8 + $0x1d0] sm:$0xf] }
 0x2d4   : > { %3516 = vmatmul.bf16.gmra.mxu3 %v8764_v58  ;;  %v3260_v58 = vadd.f32 %v7861_v19, %v3211_v15  ;;  %v5594_v30 = vor.u32 %v6516_v9, %v5593_v37  ;;  %v3172_v19 = vadd.f32 %v7883_v17, %v7802_v41  ;;  %v6580_v15 = vld [vmem:[#allocation8 + $0x3ec] sm:$0xf0]  ;;  %v3312_v17 = vadd.f32 %v7873_v47, %v3263_v48 }
 0x2d5   : > { %v5850_v59 = vor.u32 %v6580_v15, %v5849_v62  ;;  %v6508_v48 = vld [vmem:[#allocation8 + $0x1ac] sm:$0xf0] }
 0x2d6   : > { %v3272_v43 = vpop.f32.mrf.mxu2  ;;  %3723 = vmatpush.bf16.msra.mxu0 %v5594_v30  ;;  %v3309_v37 = vadd.f32 %v7863_v14, %v3260_v58  ;;  %v3221_v63 = vadd.f32 %v7885_v4, %v3172_v19  ;;  %v3177_v14 = vadd.f32 %v3176_v60, %v7802_v41  ;;  %v4572_v0 = vmax.f32 %v3312_v17, 0.0  ;;  %v6636_v30 = vld [vmem:[#allocation8 + $0x5ac] sm:$0xf0] }
 0x2d7   : > { %v7918_v27 = vpop.f32.mrf.mxu3  ;;  %3772 = vmatpush.bf16.msra.mxu1 %v5850_v59  ;;  %v3273_v9 = vadd.f32 %v3272_v43, %v3224_v23  ;;  %v6074_v61 = vor.u32 %v6636_v30, %v6073_v2  ;;  %v6700_v19 = vld [vmem:[#allocation8 + $0x7ac] sm:$0xf0] }
 0x2d8   : > { %v4564_v6 = vmax.f32 %v3309_v37, 0.0  ;;  %v3270_v26 = vadd.f32 %v3269_v28, %v3221_v63  ;;  %v3226_v4 = vadd.f32 %v3225_v55, %v3177_v14  ;;  %v5561_v55 = vld [vmem:[#allocation8 + $0x190] sm:$0xf]  ;;  %v6330_v45 = vor.u32 %v6700_v19, %v6329_v40 }
 0x2d9   : > { %v3179_v56 = vpop.f32.mrf.mxu0  ;;  %v3322_v62 = vadd.f32 %v7918_v27, %v3273_v9  ;;  %v5562_v44 = vor.u32 %v6508_v48, %v5561_v55  ;;  %3822 = vmatpush.bf16.msra.mxu2 %v6074_v61  ;;  %v6572_v23 = vld [vmem:[#allocation8 + $0x3ac] sm:$0xf0] }
 0x2da   : > { %v3228_v24 = vpop.f32.mrf.mxu1  ;;  %v3180_v20 = vadd.f32 %v3179_v56, %v7802_v41  ;;  %v4736_v60 = vadd.f32 %v4735_v29, %v4564_v6  ;;  %v3319_v28 = vadd.f32 %v7899_v53, %v3270_v26  ;;  %3871 = vmatpush.bf16.msra.mxu3 %v6330_v45  ;;  %v6041_v2 = vld [vmem:[#allocation8 + $0x550] sm:$0xf] }
 0x2db   : > { %3724 = vmatpush.bf16.msra.mxu0 %v5562_v44  ;;  %v4604_v14 = vmax.f32 %v3322_v62, 0.0  ;;  %v6628_v30 = vld [vmem:[#allocation8 + $0x56c] sm:$0xf0] }
 0x2dc   : > { %3374 = vmatmul.bf16.gmra.mxu0 %v7648_v35  ;;  %v3229_v56 = vadd.f32 %v3228_v24, %v3180_v20  ;;  %v4737_v43 = vadd.f32 %v4736_v60, %v4572_v0  ;;  %v4596_v53 = vmax.f32 %v3319_v28, 0.0  ;;  %v5529_v55 = vld [vmem:[#allocation8 + $0x150] sm:$0xf] }
 0x2dd   : > { %3423 = vmatmul.bf16.gmra.mxu1 %v7651_v46  ;;  %v6500_v61 = vld [vmem:[#allocation8 + $0x16c] sm:$0xf0] }
 0x2de   : > { %v3274_v42 = vpop.f32.mrf.mxu2  ;;  %v4738_v59 = vadd.f32 %v4737_v43, %v4580_v3  ;;  %v6297_v48 = vld [vmem:[#allocation8 + $0x750] sm:$0xf] }
 0x2df   : > { %v3323_v58 = vpop.f32.mrf.mxu3  ;;  %v3275_v54 = vadd.f32 %v3274_v42, %v3226_v4  ;;  %v6692_v40 = vld [vmem:[#allocation8 + $0x76c] sm:$0xf0] }
 0x2e0   : > { %v4739_v63 = vadd.f32 %v4738_v59, %v4588_v50 }
 0x2e1   : > { %v3181_v47 = vpop.f32.mrf.mxu0  ;;  %v3324_v24 = vadd.f32 %v3323_v58, %v3275_v54  ;;  %v5817_v58 = vld [vmem:[#allocation8 + $0x390] sm:$0xf] }
 0x2e2   : > { %v3230_v1 = vpop.f32.mrf.mxu1  ;;  %v3182_v38 = vadd.f32 %v3181_v47, %v7802_v41  ;;  %v4740_v6 = vadd.f32 %v4739_v63, %v4596_v53  ;;  %v5818_v26 = vor.u32 %v6572_v23, %v5817_v58 }
 0x2e3   : > { %3472 = vmatmul.bf16.gmra.mxu2 %v7658_v8  ;;  %v4612_v13 = vmax.f32 %v3324_v24, 0.0 }
 0x2e4   : > { %3521 = vmatmul.bf16.gmra.mxu3 %v7662_v7  ;;  %v3231_v49 = vadd.f32 %v3230_v1, %v3182_v38  ;;  %v4741_v20 = vadd.f32 %v4740_v6, %v4604_v14  ;;  %3773 = vmatpush.bf16.msra.mxu1 %v5818_v26  ;;  %v5785_v38 = vld [vmem:[#allocation8 + $0x350] sm:$0xf] }
 0x2e5   : > { %v6009_v26 = vld [vmem:[#allocation8 + $0x510] sm:$0xf] }
 0x2e6   : > { %v3277_v22 = vpop.f32.mrf.mxu2  ;;  %v4742_v4 = vadd.f32 %v4741_v20, %v4612_v13  ;;  %v6620_v20 = vld [vmem:[#allocation8 + $0x52c] sm:$0xf0] }
 0x2e7   : > { %v3278_v15 = vadd.f32 %v3277_v22, %v3229_v56  ;;  %v3326_v37 = vpop.f32.mrf.mxu3  ;;  %v6042_v22 = vor.u32 %v6628_v30, %v6041_v2 }
 0x2e9   : > { %v3340_v33 = vpop.f32.mrf.mxu0  ;;  %v3327_v25 = vadd.f32 %v3326_v37, %v3278_v15  ;;  %v5530_v15 = vor.u32 %v6500_v61, %v5529_v55  ;;  %v6298_v37 = vor.u32 %v6692_v40, %v6297_v48  ;;  %3823 = vmatpush.bf16.msra.mxu2 %v6042_v22  ;;  %v5753_v61 = vld [vmem:[#allocation8 + $0x310] sm:$0xf] }
 0x2ea   : > { %v3341_v17 = vadd.f32 %v3340_v33, %v7947_v12  ;;  %v3389_v42 = vpop.f32.mrf.mxu1  ;;  %v6564_v33 = vld [vmem:[#allocation8 + $0x36c] sm:$0xf0] }
 0x2eb   : > { %v4620_v47 = vmax.f32 %v3327_v25, 0.0  ;;  %3725 = vmatpush.bf16.msra.mxu0 %v5530_v15  ;;  %3872 = vmatpush.bf16.msra.mxu3 %v6298_v37  ;;  %v6556_v48 = vld [vmem:[#allocation8 + $0x32c] sm:$0xf0] }
 0x2ec   : > { %v3390_v27 = vadd.f32 %v3389_v42, %v3341_v17  ;;  %3535 = vmatmul.bf16.vlgmr.msrb.gmra.mxu0 %v7508_v36  ;;  %v5786_v42 = vor.u32 %v6564_v33, %v5785_v38  ;;  %v6612_v38 = vld [vmem:[#allocation8 + $0x4ec] sm:$0xf0] }
 0x2ed   : > { %3584 = vmatmul.bf16.vlgmr.msrb.gmra.mxu1 %v7511_v39  ;;  %v4743_v28 = vadd.f32 %v4742_v4, %v4620_v47  ;;  %v5497_v47 = vld [vmem:[#allocation8 + $0x110] sm:$0xf] }
 0x2ee   : > { %v3279_v41 = vpop.f32.mrf.mxu2  ;;  %3774 = vmatpush.bf16.msra.mxu1 %v5786_v42  ;;  %v6492_v4 = vld [vmem:[#allocation8 + $0x12c] sm:$0xf0] }
 0x2ef   : > { %v3280_v29 = vadd.f32 %v3279_v41, %v3231_v49  ;;  %v3328_v0 = vpop.f32.mrf.mxu3  ;;  %v5465_v33 = vld [vmem:[#allocation8 + $0xd0] sm:$0xf] }
 0x2f1   : > { %v3329_v9 = vadd.f32 %v3328_v0, %v3280_v29  ;;  %v3342_v60 = vpop.f32.mrf.mxu0  ;;  %v6010_v0 = vor.u32 %v6620_v20, %v6009_v26 }
 0x2f2   : > { %v3343_v3 = vadd.f32 %v3342_v60, %v7947_v12  ;;  %v3391_v50 = vpop.f32.mrf.mxu1  ;;  %v6684_v60 = vld [vmem:[#allocation8 + $0x72c] sm:$0xf0] }
 0x2f3   : > { %v4628_v1 = vmax.f32 %v3329_v9, 0.0  ;;  %3633 = vmatmul.bf16.vlgmr.msrb.gmra.mxu2 %v7518_v51  ;;  %v6265_v9 = vld [vmem:[#allocation8 + $0x710] sm:$0xf] }
 0x2f4   : > { %v3392_v56 = vadd.f32 %v3391_v50, %v3343_v3  ;;  %3682 = vmatmul.bf16.vlgmr.msrb.gmra.mxu3 %v7520_v52  ;;  %3824 = vmatpush.bf16.msra.mxu2 %v6010_v0  ;;  %v6548_v0 = vld [vmem:[#allocation8 + $0x2ec] sm:$0xf0] }
 0x2f5   : > { %v4744_v54 = vadd.f32 %v4743_v28, %v4628_v1  ;;  %v5498_v28 = vor.u32 %v6492_v4, %v5497_v47  ;;  %v6266_v1 = vor.u32 %v6684_v60, %v6265_v9  ;;  %v8765_v47 = vld [vmem:[#allocation20_spill] sm:$0xff] }
 0x2f6   : > { %v3438_v43 = vpop.f32.mrf.mxu2 }
 0x2f7   : > { %4836 = vst [vmem:[%s7815_s4 + $0x8] sm:$0xff] %v4744_v54  ;;  %v3439_v19 = vadd.f32 %v3438_v43, %v3390_v27  ;;  %v3487_v62 = vpop.f32.mrf.mxu3  ;;  %3726 = vmatpush.bf16.msra.mxu0 %v5498_v28  ;;  %3873 = vmatpush.bf16.msra.mxu3 %v6266_v1  ;;  %v8766_v28 = vld [vmem:[#allocation21_spill] sm:$0xff]  ;;  %v8767_v1 = vld [vmem:[#allocation22_spill] sm:$0xff] }
 0x2f9   : > { %v3488_v44 = vadd.f32 %v3487_v62, %v3439_v19  ;;  %v3345_v45 = vpop.f32.mrf.mxu0  ;;  %v5754_v19 = vor.u32 %v6556_v48, %v5753_v61  ;;  %v6668_v61 = vld [vmem:[#allocation8 + $0x6ac] sm:$0xf0] }
 0x2fa   : > { %v3346_v59 = vadd.f32 %v3345_v45, %v7947_v12  ;;  %v3394_v53 = vpop.f32.mrf.mxu1 }
 0x2fb   : > { %v4509_v49 = vmax.f32 %v3488_v44, 0.0  ;;  %3775 = vmatpush.bf16.msra.mxu1 %v5754_v19 }
 0x2fc   : > { %v3395_v24 = vadd.f32 %v3394_v53, %v3346_v59  ;;  %3540 = vmatmul.bf16.gmra.mxu0 %v7528_v11 }
 0x2fd   : > { %3589 = vmatmul.bf16.gmra.mxu1 %v7531_v16 }
 0x2fe   : > { %v3440_v17 = vpop.f32.mrf.mxu2 }
 0x2ff   : > { %v3441_v63 = vadd.f32 %v3440_v17, %v3392_v56  ;;  %v3489_v14 = vpop.f32.mrf.mxu3 }
 0x301   : > { %v3490_v25 = vadd.f32 %v3489_v14, %v3441_v63  ;;  %v3347_v27 = vpop.f32.mrf.mxu0  ;;  %v6484_v63 = vld [vmem:[#allocation8 + $0xec] sm:$0xf0] }
 0x302   : > { %v3348_v6 = vadd.f32 %v3347_v27, %v7947_v12  ;;  %v3396_v13 = vpop.f32.mrf.mxu1  ;;  %v6233_v14 = vld [vmem:[#allocation8 + $0x6d0] sm:$0xf] }
 0x303   : > { %v4517_v58 = vmax.f32 %v3490_v25, 0.0  ;;  %3638 = vmatmul.bf16.gmra.mxu2 %v7538_v5  ;;  %v6676_v25 = vld [vmem:[#allocation8 + $0x6ec] sm:$0xf0] }
 0x304   : > { %v3397_v23 = vadd.f32 %v3396_v13, %v3348_v6  ;;  %3687 = vmatmul.bf16.gmra.mxu3 %v7540_v32  ;;  %v5466_v13 = vor.u32 %v6484_v63, %v5465_v33 }
 0x305   : > { %v4745_v41 = vadd.f32 %v4517_v58, %v4509_v49  ;;  %v6234_v49 = vor.u32 %v6676_v25, %v6233_v14  ;;  %v8770_v14 = vld [vmem:[#allocation25_spill] sm:$0xff]  ;;  %v8771_v25 = vld [vmem:[#allocation26_spill] sm:$0xff] }
 0x306   : > { %v3443_v29 = vpop.f32.mrf.mxu2  ;;  %3727 = vmatpush.bf16.msra.mxu0 %v5466_v13  ;;  %v5401_v13 = vld [vmem:[#allocation8 + $0x50] sm:$0xf] }
 0x307   : > { %v3444_v3 = vadd.f32 %v3443_v29, %v3395_v24  ;;  %v3492_v50 = vpop.f32.mrf.mxu3  ;;  %v5977_v24 = vld [vmem:[#allocation8 + $0x4d0] sm:$0xf]  ;;  %3874 = vmatpush.bf16.msra.mxu3 %v6234_v49 }
 0x308   : > { %v5978_v42 = vor.u32 %v6612_v38, %v5977_v24  ;;  %v5721_v29 = vld [vmem:[#allocation8 + $0x2d0] sm:$0xf] }
 0x309   : > { %v3493_v56 = vadd.f32 %v3492_v50, %v3444_v3  ;;  %v3350_v54 = vpop.f32.mrf.mxu0  ;;  %v5722_v9 = vor.u32 %v6548_v0, %v5721_v29  ;;  %v6540_v24 = vld [vmem:[#allocation8 + $0x2ac] sm:$0xf0] }
 0x30a   : > { %v3351_v2 = vadd.f32 %v3350_v54, %v7947_v12  ;;  %v3399_v30 = vpop.f32.mrf.mxu1  ;;  %3825 = vmatpush.bf16.msra.mxu2 %v5978_v42  ;;  %v6604_v54 = vld [vmem:[#allocation8 + $0x4ac] sm:$0xf0] }
 0x30b   : > { %v4525_v55 = vmax.f32 %v3493_v56, 0.0  ;;  %3776 = vmatpush.bf16.msra.mxu1 %v5722_v9  ;;  %v5945_v56 = vld [vmem:[#allocation8 + $0x490] sm:$0xf] }
 0x30c   : > { %v3400_v43 = vadd.f32 %v3399_v30, %v3351_v2  ;;  %3545 = vmatmul.bf16.gmra.mxu0 %v7548_v57  ;;  %v5433_v2 = vld [vmem:[#allocation8 + $0x90] sm:$0xf] }
 0x30d   : > { %v4746_v22 = vadd.f32 %v4745_v41, %v4525_v55  ;;  %3594 = vmatmul.bf16.gmra.mxu1 %v7551_v31  ;;  %v5946_v55 = vor.u32 %v6604_v54, %v5945_v56  ;;  %v6169_v29 = vld [vmem:[#allocation8 + $0x650] sm:$0xf] }
 0x30e   : > { %v3445_v40 = vpop.f32.mrf.mxu2  ;;  %v6660_v0 = vld [vmem:[#allocation8 + $0x66c] sm:$0xf0] }
 0x30f   : > { %v3446_v62 = vadd.f32 %v3445_v40, %v3397_v23  ;;  %v3494_v15 = vpop.f32.mrf.mxu3  ;;  %3826 = vmatpush.bf16.msra.mxu2 %v5946_v55  ;;  %v6170_v54 = vor.u32 %v6660_v0, %v6169_v29  ;;  %v5369_v29 = vld [vmem:[#allocation8 + $0x10] sm:$0xf] }
 0x311   : > { %v3495_v37 = vadd.f32 %v3494_v15, %v3446_v62  ;;  %v7968_v44 = vpop.f32.mrf.mxu0 }
 0x312   : > { %v7970_v45 = vpop.f32.mrf.mxu1 }
 0x313   : > { %v4533_v59 = vmax.f32 %v3495_v37, 0.0  ;;  %3643 = vmatmul.bf16.gmra.mxu2 %v7558_v18  ;;  %v8768_v37 = vld [vmem:[#allocation23_spill] sm:$0xff] }
 0x314   : > { %3692 = vmatmul.bf16.gmra.mxu3 %v7560_v34 }
 0x315   : > { %v4747_v53 = vadd.f32 %v4746_v22, %v4533_v59  ;;  %v6201_v22 = vld [vmem:[#allocation8 + $0x690] sm:$0xf] }
 0x316   : > { %v3448_v17 = vpop.f32.mrf.mxu2  ;;  %v6202_v19 = vor.u32 %v6668_v61, %v6201_v22  ;;  %v8769_v59 = vld [vmem:[#allocation24_spill] sm:$0xff] }
 0x317   : > { %v3449_v27 = vadd.f32 %v3448_v17, %v3400_v43  ;;  %v3497_v6 = vpop.f32.mrf.mxu3  ;;  %v6476_v43 = vld [vmem:[#allocation8 + $0xac] sm:$0xf0] }
 0x318   : > { %v5434_v40 = vor.u32 %v6476_v43, %v5433_v2  ;;  %3875 = vmatpush.bf16.msra.mxu3 %v6202_v19  ;;  %v8772_v43 = vld [vmem:[#allocation27_spill] sm:$0xff]  ;;  %v8773_v22 = vld [vmem:[#allocation28_spill] sm:$0xff] }
 0x319   : > { %v3498_v58 = vadd.f32 %v3497_v6, %v3449_v27  ;;  %v7974_v23 = vpop.f32.mrf.mxu0  ;;  %v5913_v27 = vld [vmem:[#allocation8 + $0x450] sm:$0xf] }
 0x31a   : > { %v7976_v41 = vpop.f32.mrf.mxu1  ;;  %3728 = vmatpush.bf16.msra.mxu0 %v5434_v40  ;;  %v6596_v6 = vld [vmem:[#allocation8 + $0x46c] sm:$0xf0] }
 0x31b   : > { %v4541_v26 = vmax.f32 %v3498_v58, 0.0  ;;  %v5914_v58 = vor.u32 %v6596_v6, %v5913_v27  ;;  %v5657_v61 = vld [vmem:[#allocation8 + $0x250] sm:$0xf]  ;;  %v8774_v6 = vld [vmem:[#allocation29_spill] sm:$0xff] }
 0x31c   : > { %3550 = vmatmul.bf16.gmra.mxu0 %v8749_v21  ;;  %3876 = vmatpush.bf16.msra.mxu3 %v6170_v54  ;;  %v6532_v40 = vld [vmem:[#allocation8 + $0x26c] sm:$0xf0] }
 0x31d   : > { %v7979_v20 = vadd.f32 %v4747_v53, %v4541_v26  ;;  %3599 = vmatmul.bf16.gmra.mxu1 %v8765_v47  ;;  %v5689_v53 = vld [vmem:[#allocation8 + $0x290] sm:$0xf]  ;;  %3827 = vmatpush.bf16.msra.mxu2 %v5914_v58 }
 0x31e   : > { %v7982_v4 = vpop.f32.mrf.mxu2  ;;  %v5690_v33 = vor.u32 %v6540_v24, %v5689_v53  ;;  %v6468_v26 = vld [vmem:[#allocation8 + $0x6c] sm:$0xf0]  ;;  %v5658_v53 = vor.u32 %v6532_v40, %v5657_v61 }
 0x31f   : > { %v7984_v60 = vpop.f32.mrf.mxu3  ;;  %v5402_v56 = vor.u32 %v6468_v26, %v5401_v13  ;;  %v8775_v13 = vld [vmem:[#allocation30_spill] sm:$0xff]  ;;  %v5881_v58 = vld [vmem:[#allocation8 + $0x410] sm:$0xf] }
 0x320   : > { %3777 = vmatpush.bf16.msra.mxu1 %v5690_v33  ;;  %v6588_v26 = vld [vmem:[#allocation8 + $0x42c] sm:$0xf0] }
 0x321   : > { %v7986_v3 = vpop.f32.mrf.mxu0  ;;  %3729 = vmatpush.bf16.msra.mxu0 %v5402_v56  ;;  %v5882_v56 = vor.u32 %v6588_v26, %v5881_v58  ;;  %v6460_v54 = vld [vmem:[#allocation8 + $0x2c] sm:$0xf0]  ;;  %v3353_v58 = vadd.f32 %v7968_v44, %v7947_v12 }
 0x322   : > { %v7988_v50 = vpop.f32.mrf.mxu1  ;;  %v6652_v61 = vld [vmem:[#allocation8 + $0x62c] sm:$0xf0] }
 0x323   : > { %3648 = vmatmul.bf16.gmra.mxu2 %v8766_v28  ;;  %v8777_v26 = vld [vmem:[#allocation32_spill] sm:$0xff] }
 0x324   : > { %3697 = vmatmul.bf16.gmra.mxu3 %v8767_v1  ;;  %3778 = vmatpush.bf16.msra.mxu1 %v5658_v53  ;;  %v5370_v53 = vor.u32 %v6460_v54, %v5369_v29  ;;  %v8778_v54 = vld [vmem:[#allocation33_spill] sm:$0xff] }
 0x325   : > { %3828 = vmatpush.bf16.msra.mxu2 %v5882_v56  ;;  %v3402_v56 = vadd.f32 %v7970_v45, %v3353_v58 }
 0x326   : > { %v7992_v30 = vpop.f32.mrf.mxu2  ;;  %3730 = vmatpush.bf16.msra.mxu0 %v5370_v53  ;;  %v8779_v53 = vld [vmem:[#allocation34_spill] sm:$0xff] }
 0x327   : > { %v7994_v48 = vpop.f32.mrf.mxu3 }
 0x329   : > { %v7996_v62 = vpop.f32.mrf.mxu0 }
 0x32a   : > { %v7998_v15 = vpop.f32.mrf.mxu1 }
 0x32c   : > { %3555 = vmatmul.bf16.gmra.mxu0 %v8768_v37  ;;  %v8776_v37 = vld [vmem:[#allocation31_spill] sm:$0xff] }
 0x32d   : > { %3604 = vmatmul.bf16.gmra.mxu1 %v8769_v59 }
 0x32e   : > { %v8002_v38 = vpop.f32.mrf.mxu2 }
 0x32f   : > { %v8004_v17 = vpop.f32.mrf.mxu3 }
 0x331   : > { %v8006_v42 = vpop.f32.mrf.mxu0 }
 0x332   : > { %v8008_v63 = vpop.f32.mrf.mxu1  ;;  %v3363_v58 = vadd.f32 %v8006_v42, %v7947_v12 }
 0x333   : > { %3653 = vmatmul.bf16.gmra.mxu2 %v8770_v14  ;;  %v6524_v14 = vld [vmem:[#allocation8 + $0x22c] sm:$0xf0] }
 0x334   : > { %3702 = vmatmul.bf16.gmra.mxu3 %v8771_v25  ;;  %v5625_v25 = vld [vmem:[#allocation8 + $0x210] sm:$0xf] }
 0x336   : > { %v8012_v49 = vpop.f32.mrf.mxu2 }
 0x337   : > { %v8014_v9 = vpop.f32.mrf.mxu3 }
 0x339   : > { %v3365_v2 = vpop.f32.mrf.mxu0 }
 0x33a   : > { %v8016_v55 = vpop.f32.mrf.mxu1 }
 0x33c   : > { %3560 = vmatmul.bf16.gmra.mxu0 %v8772_v43 }
 0x33d   : > { %3609 = vmatmul.bf16.gmra.mxu1 %v8773_v22  ;;  %v6137_v22 = vld [vmem:[#allocation8 + $0x610] sm:$0xf] }
 0x33e   : > { %v8020_v19 = vpop.f32.mrf.mxu2  ;;  %v6138_v43 = vor.u32 %v6652_v61, %v6137_v22  ;;  %v3356_v22 = vadd.f32 %v7974_v23, %v7947_v12  ;;  %v3361_v61 = vadd.f32 %v7996_v62, %v7947_v12 }
 0x33f   : > { %v8022_v24 = vpop.f32.mrf.mxu3 }
 0x340   : > { %3877 = vmatpush.bf16.msra.mxu3 %v6138_v43  ;;  %v3405_v44 = vadd.f32 %v7976_v41, %v3356_v22  ;;  %v6640_v41 = vld [vmem:[#allocation8 + $0x5d4] sm:$0xf]  ;;  %v3410_v62 = vadd.f32 %v7998_v15, %v3361_v61 }
 0x341   : > { %v8024_v33 = vpop.f32.mrf.mxu0  ;;  %v6107_v22 = vld [vmem:[#allocation8 + $0x5f0] sm:$0xf0] }
 0x342   : > { %v8026_v27 = vpop.f32.mrf.mxu1  ;;  %v3454_v45 = vadd.f32 %v7992_v30, %v3405_v44  ;;  %v6704_v30 = vld [vmem:[#allocation8 + $0x7d4] sm:$0xf] }
 0x343   : > { %3658 = vmatmul.bf16.gmra.mxu2 %v8774_v6  ;;  %v6363_v44 = vld [vmem:[#allocation8 + $0x7f0] sm:$0xf0] }
 0x344   : > { %3707 = vmatmul.bf16.gmra.mxu3 %v8775_v13  ;;  %v5626_v13 = vor.u32 %v6524_v14, %v5625_v25  ;;  %v3358_v14 = vadd.f32 %v7986_v3, %v7947_v12  ;;  %v3366_v3 = vadd.f32 %v3365_v2, %v7947_v12  ;;  %v6366_v28 = vor.u32 %v6704_v30, %v6363_v44  ;;  %v6576_v61 = vld [vmem:[#allocation8 + $0x3d4] sm:$0xf] }
 0x345   : > { %v3503_v2 = vadd.f32 %v7994_v48, %v3454_v45  ;;  %v6075_v44 = vld [vmem:[#allocation8 + $0x5b0] sm:$0xf0] }
 0x346   : > { %v8030_v0 = vpop.f32.mrf.mxu2  ;;  %3779 = vmatpush.bf16.msra.mxu1 %v5626_v13  ;;  %v3451_v13 = vadd.f32 %v7982_v4, %v3402_v56  ;;  %v3407_v23 = vadd.f32 %v7988_v50, %v3358_v14  ;;  %v6110_v50 = vor.u32 %v6640_v41, %v6107_v22  ;;  %v5595_v14 = vld [vmem:[#allocation8 + $0x1f0] sm:$0xf0]  ;;  %v3415_v47 = vadd.f32 %v8016_v55, %v3366_v3 }
 0x347   : > { %v8032_v40 = vpop.f32.mrf.mxu3  ;;  %4066 = vmatpush.bf16.msrb.mxu3 %v6366_v28  ;;  %v4557_v45 = vmax.f32 %v3503_v2, 0.0 }
 0x348   : > { %v3500_v4 = vadd.f32 %v7984_v60, %v3451_v13  ;;  %v3412_v60 = vadd.f32 %v8008_v63, %v3363_v58  ;;  %v3459_v13 = vadd.f32 %v8012_v49, %v3410_v62  ;;  %4017 = vmatpush.bf16.msrb.mxu2 %v6110_v50  ;;  %v3464_v63 = vadd.f32 %v8030_v0, %v3415_v47 }
 0x349   : > { %v3370_v59 = vpop.f32.mrf.mxu0 }
 0x34a   : > { %v8034_v6 = vpop.f32.mrf.mxu1  ;;  %v4549_v15 = vmax.f32 %v3500_v4, 0.0  ;;  %v3461_v48 = vadd.f32 %v8020_v19, %v3412_v60  ;;  %v3371_v55 = vadd.f32 %v3370_v59, %v7947_v12  ;;  %v3513_v3 = vadd.f32 %v8032_v40, %v3464_v63  ;;  %v6632_v40 = vld [vmem:[#allocation8 + $0x594] sm:$0xf] }
 0x34b   : > { %v5563_v60 = vld [vmem:[#allocation8 + $0x1b0] sm:$0xf0] }
 0x34c   : > { %3565 = vmatmul.bf16.gmra.mxu0 %v8776_v37  ;;  %v4749_v19 = vadd.f32 %v7979_v20, %v4549_v15  ;;  %v3510_v0 = vadd.f32 %v8022_v24, %v3461_v48  ;;  %v3420_v59 = vadd.f32 %v8034_v6, %v3371_v55  ;;  %v4589_v30 = vmax.f32 %v3513_v3, 0.0  ;;  %v6331_v15 = vld [vmem:[#allocation8 + $0x7b0] sm:$0xf0] }
 0x34d   : > { %3614 = vmatmul.bf16.gmra.mxu1 %v8777_v26  ;;  %v8086_v24 = vperm.slane %v7944_v10, 3 }
 0x34e   : > { %v3465_v1 = vpop.f32.mrf.mxu2  ;;  %v4750_v22 = vadd.f32 %v4749_v19, %v4557_v45  ;;  %v4581_v20 = vmax.f32 %v3510_v0, 0.0  ;;  %v5819_v0 = vld [vmem:[#allocation8 + $0x3b0] sm:$0xf0] }
 0x34f   : > { %v8040_v29 = vpop.f32.mrf.mxu3 }
 0x351   : > { %v3372_v43 = vpop.f32.mrf.mxu0 }
 0x352   : > { %v3421_v25 = vpop.f32.mrf.mxu1 }
 0x353   : > { %3663 = vmatmul.bf16.gmra.mxu2 %v8778_v54  ;;  %v6512_v54 = vld [vmem:[#allocation8 + $0x1d4] sm:$0xf] }
 0x354   : > { %3712 = vmatmul.bf16.gmra.mxu3 %v8779_v53  ;;  %v3456_v53 = vadd.f32 %v8002_v38, %v3407_v23  ;;  %v5598_v42 = vor.u32 %v6512_v54, %v5595_v14  ;;  %v3368_v38 = vadd.f32 %v8024_v33, %v7947_v12  ;;  %v5851_v23 = vld [vmem:[#allocation8 + $0x3f0] sm:$0xf0]  ;;  %v3508_v33 = vadd.f32 %v8014_v9, %v3459_v13 }
 0x355   : > { %v5854_v49 = vor.u32 %v6576_v61, %v5851_v23  ;;  %v6696_v13 = vld [vmem:[#allocation8 + $0x794] sm:$0xf] }
 0x356   : > { %v3468_v26 = vpop.f32.mrf.mxu2  ;;  %3919 = vmatpush.bf16.msrb.mxu0 %v5598_v42  ;;  %v3505_v54 = vadd.f32 %v8004_v17, %v3456_v53  ;;  %v3417_v28 = vadd.f32 %v8026_v27, %v3368_v38  ;;  %v3373_v17 = vadd.f32 %v3372_v43, %v7947_v12  ;;  %v4573_v62 = vmax.f32 %v3508_v33, 0.0  ;;  %v6504_v42 = vld [vmem:[#allocation8 + $0x194] sm:$0xf] }
 0x357   : > { %v8059_v56 = vpop.f32.mrf.mxu3  ;;  %3968 = vmatpush.bf16.msrb.mxu1 %v5854_v49  ;;  %v3469_v14 = vadd.f32 %v3468_v26, %v3420_v59  ;;  %v6078_v26 = vor.u32 %v6632_v40, %v6075_v44  ;;  %v6334_v10 = vor.u32 %v6696_v13, %v6331_v15  ;;  %v6496_v40 = vld [vmem:[#allocation8 + $0x154] sm:$0xf] }
 0x358   : > { %v4565_v47 = vmax.f32 %v3505_v54, 0.0  ;;  %v3466_v4 = vadd.f32 %v3465_v1, %v3417_v28  ;;  %v3422_v27 = vadd.f32 %v3421_v25, %v3373_v17  ;;  %v5566_v54 = vor.u32 %v6504_v42, %v5563_v60 }
 0x359   : > { %v3375_v37 = vpop.f32.mrf.mxu0  ;;  %v3518_v38 = vadd.f32 %v8059_v56, %v3469_v14  ;;  %4018 = vmatpush.bf16.msrb.mxu2 %v6078_v26  ;;  %4067 = vmatpush.bf16.msrb.mxu3 %v6334_v10  ;;  %v6299_v26 = vld [vmem:[#allocation8 + $0x770] sm:$0xf0] }
 0x35a   : > { %v3424_v21 = vpop.f32.mrf.mxu1  ;;  %v3376_v41 = vadd.f32 %v3375_v37, %v7947_v12  ;;  %v4751_v43 = vadd.f32 %v4750_v22, %v4565_v47  ;;  %v3515_v1 = vadd.f32 %v8040_v29, %v3466_v4  ;;  %3920 = vmatpush.bf16.msrb.mxu0 %v5566_v54 }
 0x35c   : > { %3570 = vmatmul.bf16.gmra.mxu0 %v7648_v35  ;;  %v3425_v6 = vadd.f32 %v3424_v21, %v3376_v41  ;;  %v4752_v2 = vadd.f32 %v4751_v43, %v4573_v62  ;;  %v4597_v29 = vmax.f32 %v3515_v1, 0.0 }
 0x35d   : > { %3619 = vmatmul.bf16.gmra.mxu1 %v7651_v46 }
 0x35e   : > { %v3470_v58 = vpop.f32.mrf.mxu2  ;;  %v4753_v48 = vadd.f32 %v4752_v2, %v4581_v20  ;;  %v5531_v2 = vld [vmem:[#allocation8 + $0x170] sm:$0xf0] }
 0x35f   : > { %v3519_v53 = vpop.f32.mrf.mxu3  ;;  %v3471_v37 = vadd.f32 %v3470_v58, %v3422_v27  ;;  %v4605_v58 = vmax.f32 %v3518_v38, 0.0  ;;  %v5534_v15 = vor.u32 %v6496_v40, %v5531_v2 }
 0x360   : > { %v4754_v33 = vadd.f32 %v4753_v48, %v4589_v30 }
 0x361   : > { %v3377_v9 = vpop.f32.mrf.mxu0  ;;  %v3520_v21 = vadd.f32 %v3519_v53, %v3471_v37  ;;  %v6568_v53 = vld [vmem:[#allocation8 + $0x394] sm:$0xf]  ;;  %3921 = vmatpush.bf16.msrb.mxu0 %v5534_v15 }
 0x362   : > { %v3426_v50 = vpop.f32.mrf.mxu1  ;;  %v3378_v63 = vadd.f32 %v3377_v9, %v7947_v12  ;;  %v4755_v17 = vadd.f32 %v4754_v33, %v4597_v29  ;;  %v5822_v3 = vor.u32 %v6568_v53, %v5819_v0  ;;  %v6043_v37 = vld [vmem:[#allocation8 + $0x570] sm:$0xf0] }
 0x363   : > { %3668 = vmatmul.bf16.gmra.mxu2 %v7658_v8  ;;  %v4613_v19 = vmax.f32 %v3520_v21, 0.0  ;;  %v6560_v29 = vld [vmem:[#allocation8 + $0x354] sm:$0xf] }
 0x364   : > { %3717 = vmatmul.bf16.gmra.mxu3 %v7662_v7  ;;  %v3427_v47 = vadd.f32 %v3426_v50, %v3378_v63  ;;  %v4756_v59 = vadd.f32 %v4755_v17, %v4605_v58  ;;  %3969 = vmatpush.bf16.msrb.mxu1 %v5822_v3  ;;  %v5787_v21 = vld [vmem:[#allocation8 + $0x370] sm:$0xf0] }
 0x365   : > { %v6616_v0 = vld [vmem:[#allocation8 + $0x514] sm:$0xf] }
 0x366   : > { %v3473_v25 = vpop.f32.mrf.mxu2  ;;  %v4757_v22 = vadd.f32 %v4756_v59, %v4613_v19  ;;  %v6488_v3 = vld [vmem:[#allocation8 + $0x114] sm:$0xf] }
 0x367   : > { %v3474_v61 = vadd.f32 %v3473_v25, %v3425_v6  ;;  %v3522_v23 = vpop.f32.mrf.mxu3  ;;  %v6624_v6 = vld [vmem:[#allocation8 + $0x554] sm:$0xf] }
 0x368   : > { %v6046_v42 = vor.u32 %v6624_v6, %v6043_v37  ;;  %v6688_v25 = vld [vmem:[#allocation8 + $0x754] sm:$0xf] }
 0x369   : > { %v3536_v49 = vpop.f32.mrf.mxu0  ;;  %v3523_v28 = vadd.f32 %v3522_v23, %v3474_v61  ;;  %v6302_v38 = vor.u32 %v6688_v25, %v6299_v26 }
 0x36a   : > { %v3537_v55 = vadd.f32 %v3536_v49, %v8086_v24  ;;  %v3585_v45 = vpop.f32.mrf.mxu1  ;;  %4019 = vmatpush.bf16.msrb.mxu2 %v6046_v42  ;;  %v5790_v49 = vor.u32 %v6560_v29, %v5787_v21  ;;  %v5755_v42 = vld [vmem:[#allocation8 + $0x330] sm:$0xf0] }
 0x36b   : > { %v4621_v4 = vmax.f32 %v3523_v28, 0.0  ;;  %4068 = vmatpush.bf16.msrb.mxu3 %v6302_v38 }
 0x36c   : > { %v3586_v56 = vadd.f32 %v3585_v45, %v3537_v55  ;;  %3731 = vmatmul.bf16.vlgmr.msra.gmra.mxu0 %v7508_v36  ;;  %3970 = vmatpush.bf16.msrb.mxu1 %v5790_v49  ;;  %v6672_v49 = vld [vmem:[#allocation8 + $0x6d4] sm:$0xf] }
 0x36d   : > { %3780 = vmatmul.bf16.vlgmr.msra.gmra.mxu1 %v7511_v39  ;;  %v4758_v20 = vadd.f32 %v4757_v22, %v4621_v4  ;;  %v6267_v22 = vld [vmem:[#allocation8 + $0x730] sm:$0xf0] }
 0x36e   : > { %v3475_v12 = vpop.f32.mrf.mxu2 }
 0x36f   : > { %v3476_v41 = vadd.f32 %v3475_v12, %v3427_v47  ;;  %v3524_v9 = vpop.f32.mrf.mxu3  ;;  %v6011_v12 = vld [vmem:[#allocation8 + $0x530] sm:$0xf0] }
 0x370   : > { %v6014_v4 = vor.u32 %v6616_v0, %v6011_v12  ;;  %v8781_v12 = vld [vmem:[#allocation20_spill] sm:$0xff] }
 0x371   : > { %v3525_v62 = vadd.f32 %v3524_v9, %v3476_v41  ;;  %v3538_v27 = vpop.f32.mrf.mxu0  ;;  %v5499_v41 = vld [vmem:[#allocation8 + $0x130] sm:$0xf0] }
 0x372   : > { %v3539_v14 = vadd.f32 %v3538_v27, %v8086_v24  ;;  %v3587_v43 = vpop.f32.mrf.mxu1  ;;  %v6680_v9 = vld [vmem:[#allocation8 + $0x714] sm:$0xf]  ;;  %4020 = vmatpush.bf16.msrb.mxu2 %v6014_v4 }
 0x373   : > { %v4629_v50 = vmax.f32 %v3525_v62, 0.0  ;;  %3829 = vmatmul.bf16.vlgmr.msra.gmra.mxu2 %v7518_v51 }
 0x374   : > { %v3588_v30 = vadd.f32 %v3587_v43, %v3539_v14  ;;  %3878 = vmatmul.bf16.vlgmr.msra.gmra.mxu3 %v7520_v52  ;;  %v5502_v14 = vor.u32 %v6488_v3, %v5499_v41  ;;  %v6270_v43 = vor.u32 %v6680_v9, %v6267_v22  ;;  %v6544_v3 = vld [vmem:[#allocation8 + $0x2d4] sm:$0xf] }
 0x375   : > { %v4759_v1 = vadd.f32 %v4758_v20, %v4629_v50 }
 0x376   : > { %v3634_v44 = vpop.f32.mrf.mxu2  ;;  %3922 = vmatpush.bf16.msrb.mxu0 %v5502_v14  ;;  %4069 = vmatpush.bf16.msrb.mxu3 %v6270_v43  ;;  %v8783_v14 = vld [vmem:[#allocation22_spill] sm:$0xff]  ;;  %v6600_v43 = vld [vmem:[#allocation8 + $0x494] sm:$0xf] }
 0x377   : > { %4837 = vst [vmem:[%s7815_s4 + $0x10] sm:$0xff] %v4759_v1  ;;  %v3635_v60 = vadd.f32 %v3634_v44, %v3586_v56  ;;  %v3683_v13 = vpop.f32.mrf.mxu3  ;;  %v6552_v44 = vld [vmem:[#allocation8 + $0x314] sm:$0xf] }
 0x378   : > { %v5758_v25 = vor.u32 %v6552_v44, %v5755_v42 }
 0x379   : > { %v3684_v61 = vadd.f32 %v3683_v13, %v3635_v60  ;;  %v3541_v23 = vpop.f32.mrf.mxu0 }
 0x37a   : > { %v3542_v54 = vadd.f32 %v3541_v23, %v8086_v24  ;;  %v3590_v10 = vpop.f32.mrf.mxu1  ;;  %3971 = vmatpush.bf16.msrb.mxu1 %v5758_v25 }
 0x37b   : > { %v4510_v17 = vmax.f32 %v3684_v61, 0.0 }
 0x37c   : > { %v3591_v48 = vadd.f32 %v3590_v10, %v3542_v54  ;;  %3736 = vmatmul.bf16.gmra.mxu0 %v7528_v11  ;;  %v6608_v54 = vld [vmem:[#allocation8 + $0x4d4] sm:$0xf] }
 0x37d   : > { %3785 = vmatmul.bf16.gmra.mxu1 %v7531_v16  ;;  %v5979_v10 = vld [vmem:[#allocation8 + $0x4f0] sm:$0xf0] }
 0x37e   : > { %v3636_v63 = vpop.f32.mrf.mxu2  ;;  %v5982_v21 = vor.u32 %v6608_v54, %v5979_v10 }
 0x37f   : > { %v3637_v55 = vadd.f32 %v3636_v63, %v3588_v30  ;;  %v3685_v45 = vpop.f32.mrf.mxu3  ;;  %v5467_v63 = vld [vmem:[#allocation8 + $0xf0] sm:$0xf0] }
 0x380   : > { %4021 = vmatpush.bf16.msrb.mxu2 %v5982_v21 }
 0x381   : > { %v3686_v33 = vadd.f32 %v3685_v45, %v3637_v55  ;;  %v3543_v58 = vpop.f32.mrf.mxu0  ;;  %v6235_v55 = vld [vmem:[#allocation8 + $0x6f0] sm:$0xf0] }
 0x382   : > { %v3544_v28 = vadd.f32 %v3543_v58, %v8086_v24  ;;  %v3592_v56 = vpop.f32.mrf.mxu1 }
 0x383   : > { %v4518_v19 = vmax.f32 %v3686_v33, 0.0  ;;  %3834 = vmatmul.bf16.gmra.mxu2 %v7538_v5 }
 0x384   : > { %v3593_v47 = vadd.f32 %v3592_v56, %v3544_v28  ;;  %3883 = vmatmul.bf16.gmra.mxu3 %v7540_v32  ;;  %v6238_v28 = vor.u32 %v6672_v49, %v6235_v55  ;;  %v8787_v49 = vld [vmem:[#allocation26_spill] sm:$0xff]  ;;  %v6592_v55 = vld [vmem:[#allocation8 + $0x454] sm:$0xf] }
 0x385   : > { %v4760_v53 = vadd.f32 %v4518_v19, %v4510_v17 }
 0x386   : > { %v3639_v59 = vpop.f32.mrf.mxu2  ;;  %4070 = vmatpush.bf16.msrb.mxu3 %v6238_v28 }
 0x387   : > { %v3640_v62 = vadd.f32 %v3639_v59, %v3591_v48  ;;  %v3688_v27 = vpop.f32.mrf.mxu3  ;;  %v6480_v48 = vld [vmem:[#allocation8 + $0xd4] sm:$0xf] }
 0x388   : > { %v5470_v58 = vor.u32 %v6480_v48, %v5467_v63  ;;  %v5723_v59 = vld [vmem:[#allocation8 + $0x2f0] sm:$0xf0]  ;;  %v8786_v63 = vld [vmem:[#allocation25_spill] sm:$0xff] }
 0x389   : > { %v3689_v20 = vadd.f32 %v3688_v27, %v3640_v62  ;;  %v3546_v50 = vpop.f32.mrf.mxu0  ;;  %v5726_v41 = vor.u32 %v6544_v3, %v5723_v59  ;;  %v8782_v27 = vld [vmem:[#allocation21_spill] sm:$0xff]  ;;  %v6171_v3 = vld [vmem:[#allocation8 + $0x670] sm:$0xf0] }
 0x38a   : > { %v3547_v30 = vadd.f32 %v3546_v50, %v8086_v24  ;;  %v3595_v1 = vpop.f32.mrf.mxu1  ;;  %3923 = vmatpush.bf16.msrb.mxu0 %v5470_v58  ;;  %v6472_v50 = vld [vmem:[#allocation8 + $0x94] sm:$0xf] }
 0x38b   : > { %v4526_v6 = vmax.f32 %v3689_v20, 0.0  ;;  %3972 = vmatpush.bf16.msrb.mxu1 %v5726_v41  ;;  %v5947_v20 = vld [vmem:[#allocation8 + $0x4b0] sm:$0xf0] }
 0x38c   : > { %v3596_v37 = vadd.f32 %v3595_v1, %v3547_v30  ;;  %3741 = vmatmul.bf16.gmra.mxu0 %v7548_v57  ;;  %v5950_v1 = vor.u32 %v6600_v43, %v5947_v20 }
 0x38d   : > { %v4761_v40 = vadd.f32 %v4760_v53, %v4526_v6  ;;  %3790 = vmatmul.bf16.gmra.mxu1 %v7551_v31  ;;  %v8780_v53 = vld [vmem:[#allocation19_spill] sm:$0xff]  ;;  %v5435_v6 = vld [vmem:[#allocation8 + $0xb0] sm:$0xf0] }
 0x38e   : > { %v3641_v2 = vpop.f32.mrf.mxu2  ;;  %v5438_v42 = vor.u32 %v6472_v50, %v5435_v6  ;;  %4022 = vmatpush.bf16.msrb.mxu2 %v5950_v1  ;;  %v8788_v1 = vld [vmem:[#allocation27_spill] sm:$0xff]  ;;  %v8789_v6 = vld [vmem:[#allocation28_spill] sm:$0xff] }
 0x38f   : > { %v3642_v26 = vadd.f32 %v3641_v2, %v3593_v47  ;;  %v3690_v60 = vpop.f32.mrf.mxu3 }
 0x390   : > { %3924 = vmatpush.bf16.msrb.mxu0 %v5438_v42 }
 0x391   : > { %v3691_v13 = vadd.f32 %v3690_v60, %v3642_v26  ;;  %v8107_v15 = vpop.f32.mrf.mxu0  ;;  %v8784_v60 = vld [vmem:[#allocation23_spill] sm:$0xff] }
 0x392   : > { %v8109_v38 = vpop.f32.mrf.mxu1 }
 0x393   : > { %v4534_v61 = vmax.f32 %v3691_v13, 0.0  ;;  %3839 = vmatmul.bf16.gmra.mxu2 %v7558_v18  ;;  %v8785_v13 = vld [vmem:[#allocation24_spill] sm:$0xff] }
 0x394   : > { %3888 = vmatmul.bf16.gmra.mxu3 %v7560_v34 }
 0x395   : > { %v4762_v23 = vadd.f32 %v4761_v40, %v4534_v61  ;;  %v6203_v40 = vld [vmem:[#allocation8 + $0x6b0] sm:$0xf0] }
 0x396   : > { %v3644_v29 = vpop.f32.mrf.mxu2  ;;  %v6536_v61 = vld [vmem:[#allocation8 + $0x294] sm:$0xf] }
 0x397   : > { %v3645_v45 = vadd.f32 %v3644_v29, %v3596_v37  ;;  %v3693_v33 = vpop.f32.mrf.mxu3  ;;  %v6664_v37 = vld [vmem:[#allocation8 + $0x694] sm:$0xf] }
 0x398   : > { %v6206_v2 = vor.u32 %v6664_v37, %v6203_v40  ;;  %v6528_v37 = vld [vmem:[#allocation8 + $0x254] sm:$0xf] }
 0x399   : > { %v3694_v56 = vadd.f32 %v3693_v33, %v3645_v45  ;;  %v8113_v17 = vpop.f32.mrf.mxu0  ;;  %v5915_v45 = vld [vmem:[#allocation8 + $0x470] sm:$0xf0] }
 0x39a   : > { %v8115_v19 = vpop.f32.mrf.mxu1  ;;  %4071 = vmatpush.bf16.msrb.mxu3 %v6206_v2  ;;  %v6464_v33 = vld [vmem:[#allocation8 + $0x54] sm:$0xf]  ;;  %v5918_v28 = vor.u32 %v6592_v55, %v5915_v45  ;;  %v8790_v55 = vld [vmem:[#allocation29_spill] sm:$0xff]  ;;  %v8791_v45 = vld [vmem:[#allocation30_spill] sm:$0xff] }
 0x39b   : > { %v4542_v47 = vmax.f32 %v3694_v56, 0.0  ;;  %v5403_v56 = vld [vmem:[#allocation8 + $0x70] sm:$0xf0] }
 0x39c   : > { %3746 = vmatmul.bf16.gmra.mxu0 %v8780_v53  ;;  %v5406_v41 = vor.u32 %v6464_v33, %v5403_v56  ;;  %4023 = vmatpush.bf16.msrb.mxu2 %v5918_v28  ;;  %v5659_v40 = vld [vmem:[#allocation8 + $0x270] sm:$0xf0] }
 0x39d   : > { %v8118_v0 = vadd.f32 %v4762_v23, %v4542_v47  ;;  %3795 = vmatmul.bf16.gmra.mxu1 %v8781_v12  ;;  %v5691_v23 = vld [vmem:[#allocation8 + $0x2b0] sm:$0xf0]  ;;  %v5662_v2 = vor.u32 %v6528_v37, %v5659_v40 }
 0x39e   : > { %v8121_v4 = vpop.f32.mrf.mxu2  ;;  %v5694_v10 = vor.u32 %v6536_v61, %v5691_v23  ;;  %v6656_v47 = vld [vmem:[#allocation8 + $0x654] sm:$0xf]  ;;  %3925 = vmatpush.bf16.msrb.mxu0 %v5406_v41 }
 0x39f   : > { %v8123_v9 = vpop.f32.mrf.mxu3  ;;  %v6174_v43 = vor.u32 %v6656_v47, %v6171_v3  ;;  %v6584_v33 = vld [vmem:[#allocation8 + $0x414] sm:$0xf] }
 0x3a0   : > { %3973 = vmatpush.bf16.msrb.mxu1 %v5694_v10  ;;  %v5883_v28 = vld [vmem:[#allocation8 + $0x430] sm:$0xf0] }
 0x3a1   : > { %v8125_v22 = vpop.f32.mrf.mxu0  ;;  %4072 = vmatpush.bf16.msrb.mxu3 %v6174_v43  ;;  %v6456_v56 = vld [vmem:[#allocation8 + $0x14] sm:$0xf]  ;;  %v5886_v3 = vor.u32 %v6584_v33, %v5883_v28  ;;  %v3549_v33 = vadd.f32 %v8107_v15, %v8086_v24 }
 0x3a2   : > { %v8127_v62 = vpop.f32.mrf.mxu1  ;;  %v5371_v41 = vld [vmem:[#allocation8 + $0x30] sm:$0xf0] }
 0x3a3   : > { %3844 = vmatmul.bf16.gmra.mxu2 %v8782_v27  ;;  %v6648_v43 = vld [vmem:[#allocation8 + $0x614] sm:$0xf] }
 0x3a4   : > { %3893 = vmatmul.bf16.gmra.mxu3 %v8783_v14  ;;  %3974 = vmatpush.bf16.msrb.mxu1 %v5662_v2  ;;  %v6139_v37 = vld [vmem:[#allocation8 + $0x630] sm:$0xf0]  ;;  %v5374_v2 = vor.u32 %v6456_v56, %v5371_v41  ;;  %v3598_v41 = vadd.f32 %v8109_v38, %v3549_v33 }
 0x3a5   : > { %4024 = vmatpush.bf16.msrb.mxu2 %v5886_v3  ;;  %v8793_v28 = vld [vmem:[#allocation32_spill] sm:$0xff]  ;;  %v3552_v3 = vadd.f32 %v8113_v17, %v8086_v24 }
 0x3a6   : > { %v8131_v30 = vpop.f32.mrf.mxu2  ;;  %3926 = vmatpush.bf16.msrb.mxu0 %v5374_v2  ;;  %v8795_v2 = vld [vmem:[#allocation34_spill] sm:$0xff] }
 0x3a7   : > { %v8133_v44 = vpop.f32.mrf.mxu3  ;;  %v3601_v15 = vadd.f32 %v8115_v19, %v3552_v3  ;;  %v6113_v19 = vld [vmem:[#allocation8 + $0x5d8] sm:$0xf] }
 0x3a8   : > { %v6645_v3 = vld [vmem:[#allocation8 + $0x5f4] sm:$0xf0] }
 0x3a9   : > { %v8135_v25 = vpop.f32.mrf.mxu0  ;;  %v3650_v38 = vadd.f32 %v8131_v30, %v3601_v15  ;;  %v6369_v30 = vld [vmem:[#allocation8 + $0x7d8] sm:$0xf] }
 0x3aa   : > { %v8137_v26 = vpop.f32.mrf.mxu1  ;;  %v6709_v15 = vld [vmem:[#allocation8 + $0x7f4] sm:$0xf0] }
 0x3ab   : > { %v6370_v14 = vor.u32 %v6709_v15, %v6369_v30  ;;  %v6081_v15 = vld [vmem:[#allocation8 + $0x598] sm:$0xf] }
 0x3ac   : > { %3751 = vmatmul.bf16.gmra.mxu0 %v8784_v60 }
 0x3ad   : > { %3800 = vmatmul.bf16.gmra.mxu1 %v8785_v13  ;;  %v8792_v13 = vld [vmem:[#allocation31_spill] sm:$0xff] }
 0x3ae   : > { %v8141_v54 = vpop.f32.mrf.mxu2 }
 0x3af   : > { %v8143_v48 = vpop.f32.mrf.mxu3 }
 0x3b1   : > { %v8145_v29 = vpop.f32.mrf.mxu0 }
 0x3b2   : > { %v8147_v21 = vpop.f32.mrf.mxu1  ;;  %v3559_v33 = vadd.f32 %v8145_v29, %v8086_v24 }
 0x3b3   : > { %3849 = vmatmul.bf16.gmra.mxu2 %v8786_v63 }
 0x3b4   : > { %3898 = vmatmul.bf16.gmra.mxu3 %v8787_v49  ;;  %v5627_v49 = vld [vmem:[#allocation8 + $0x230] sm:$0xf0] }
 0x3b6   : > { %v8151_v58 = vpop.f32.mrf.mxu2 }
 0x3b7   : > { %v8153_v59 = vpop.f32.mrf.mxu3 }
 0x3b9   : > { %v3561_v20 = vpop.f32.mrf.mxu0 }
 0x3ba   : > { %v8155_v50 = vpop.f32.mrf.mxu1 }
 0x3bc   : > { %3756 = vmatmul.bf16.gmra.mxu0 %v8788_v1  ;;  %v6520_v1 = vld [vmem:[#allocation8 + $0x214] sm:$0xf] }
 0x3bd   : > { %3805 = vmatmul.bf16.gmra.mxu1 %v8789_v6  ;;  %v6142_v6 = vor.u32 %v6648_v43, %v6139_v37  ;;  %v8794_v43 = vld [vmem:[#allocation33_spill] sm:$0xff]  ;;  %v3557_v37 = vadd.f32 %v8135_v25, %v8086_v24 }
 0x3be   : > { %v8159_v42 = vpop.f32.mrf.mxu2 }
 0x3bf   : > { %v8161_v61 = vpop.f32.mrf.mxu3  ;;  %4073 = vmatpush.bf16.msrb.mxu3 %v6142_v6  ;;  %v3606_v25 = vadd.f32 %v8137_v26, %v3557_v37  ;;  %v5857_v37 = vld [vmem:[#allocation8 + $0x3d8] sm:$0xf] }
 0x3c1   : > { %v8163_v23 = vpop.f32.mrf.mxu0 }
 0x3c2   : > { %v8165_v10 = vpop.f32.mrf.mxu1 }
 0x3c3   : > { %3854 = vmatmul.bf16.gmra.mxu2 %v8790_v55  ;;  %4262 = vmatpush.bf16.msra.mxu3 %v6370_v14 }
 0x3c4   : > { %3903 = vmatmul.bf16.gmra.mxu3 %v8791_v45  ;;  %v5630_v45 = vor.u32 %v6520_v1, %v5627_v49  ;;  %v3554_v49 = vadd.f32 %v8125_v22, %v8086_v24  ;;  %v3562_v22 = vadd.f32 %v3561_v20, %v8086_v24  ;;  %v3699_v20 = vadd.f32 %v8133_v44, %v3650_v38 }
 0x3c6   : > { %v8169_v47 = vpop.f32.mrf.mxu2  ;;  %3975 = vmatpush.bf16.msrb.mxu1 %v5630_v45  ;;  %v3647_v45 = vadd.f32 %v8121_v4, %v3598_v41  ;;  %v3603_v17 = vadd.f32 %v8127_v62, %v3554_v49  ;;  %v6114_v62 = vor.u32 %v6645_v3, %v6113_v19  ;;  %v6517_v49 = vld [vmem:[#allocation8 + $0x1f4] sm:$0xf0]  ;;  %v3611_v27 = vadd.f32 %v8155_v50, %v3562_v22 }
 0x3c7   : > { %v8171_v40 = vpop.f32.mrf.mxu3  ;;  %v4558_v38 = vmax.f32 %v3699_v20, 0.0 }
 0x3c8   : > { %v3696_v4 = vadd.f32 %v8123_v9, %v3647_v45  ;;  %v3608_v9 = vadd.f32 %v8147_v21, %v3559_v33  ;;  %v3655_v45 = vadd.f32 %v8151_v58, %v3606_v25  ;;  %4213 = vmatpush.bf16.msra.mxu2 %v6114_v62  ;;  %v3660_v21 = vadd.f32 %v8169_v47, %v3611_v27 }
 0x3c9   : > { %v3566_v63 = vpop.f32.mrf.mxu0 }
 0x3ca   : > { %v8173_v55 = vpop.f32.mrf.mxu1  ;;  %v4550_v26 = vmax.f32 %v3696_v4, 0.0  ;;  %v3657_v44 = vadd.f32 %v8159_v42, %v3608_v9  ;;  %v3567_v50 = vadd.f32 %v3566_v63, %v8086_v24  ;;  %v3709_v22 = vadd.f32 %v8171_v40, %v3660_v21 }
 0x3cc   : > { %3761 = vmatmul.bf16.gmra.mxu0 %v8792_v13  ;;  %v4764_v42 = vadd.f32 %v8118_v0, %v4550_v26  ;;  %v3706_v47 = vadd.f32 %v8161_v61, %v3657_v44  ;;  %v3616_v63 = vadd.f32 %v8173_v55, %v3567_v50  ;;  %v4590_v30 = vmax.f32 %v3709_v22, 0.0  ;;  %v8224_v61 = vld [vmem:[#allocation10] sm:$0xff]  ;;  %v6337_v26 = vld [vmem:[#allocation8 + $0x798] sm:$0xf] }
 0x3cd   : > { %3810 = vmatmul.bf16.gmra.mxu1 %v8793_v28  ;;  %v8227_v55 = vperm.slane %v8224_v61, 4 }
 0x3ce   : > { %v3661_v60 = vpop.f32.mrf.mxu2  ;;  %v4765_v3 = vadd.f32 %v4764_v42, %v4558_v38  ;;  %v4582_v0 = vmax.f32 %v3706_v47, 0.0 }
 0x3cf   : > { %v8179_v56 = vpop.f32.mrf.mxu3 }
 0x3d1   : > { %v3568_v6 = vpop.f32.mrf.mxu0 }
 0x3d2   : > { %v3617_v1 = vpop.f32.mrf.mxu1 }
 0x3d3   : > { %3859 = vmatmul.bf16.gmra.mxu2 %v8794_v43  ;;  %v5601_v43 = vld [vmem:[#allocation8 + $0x1d8] sm:$0xf] }
 0x3d4   : > { %3908 = vmatmul.bf16.gmra.mxu3 %v8795_v2  ;;  %v3652_v2 = vadd.f32 %v8141_v54, %v3603_v17  ;;  %v5602_v29 = vor.u32 %v6517_v49, %v5601_v43  ;;  %v3564_v54 = vadd.f32 %v8163_v23, %v8086_v24  ;;  %v6581_v17 = vld [vmem:[#allocation8 + $0x3f4] sm:$0xf0]  ;;  %v3704_v23 = vadd.f32 %v8153_v59, %v3655_v45 }
 0x3d5   : > { %v5858_v58 = vor.u32 %v6581_v17, %v5857_v37  ;;  %v6509_v45 = vld [vmem:[#allocation8 + $0x1b4] sm:$0xf0] }
 0x3d6   : > { %v3664_v28 = vpop.f32.mrf.mxu2  ;;  %4115 = vmatpush.bf16.msra.mxu0 %v5602_v29  ;;  %v3701_v43 = vadd.f32 %v8143_v48, %v3652_v2  ;;  %v3613_v14 = vadd.f32 %v8165_v10, %v3564_v54  ;;  %v3569_v48 = vadd.f32 %v3568_v6, %v8086_v24  ;;  %v4574_v25 = vmax.f32 %v3704_v23, 0.0  ;;  %v6637_v29 = vld [vmem:[#allocation8 + $0x5b4] sm:$0xf0] }
 0x3d7   : > { %v8198_v41 = vpop.f32.mrf.mxu3  ;;  %4164 = vmatpush.bf16.msra.mxu1 %v5858_v58  ;;  %v3665_v49 = vadd.f32 %v3664_v28, %v3616_v63  ;;  %v6082_v9 = vor.u32 %v6637_v29, %v6081_v15  ;;  %v6701_v54 = vld [vmem:[#allocation8 + $0x7b4] sm:$0xf0] }
 0x3d8   : > { %v4566_v27 = vmax.f32 %v3701_v43, 0.0  ;;  %v3662_v4 = vadd.f32 %v3661_v60, %v3613_v14  ;;  %v3618_v10 = vadd.f32 %v3617_v1, %v3569_v48  ;;  %v5569_v1 = vld [vmem:[#allocation8 + $0x198] sm:$0xf]  ;;  %v6338_v21 = vor.u32 %v6701_v54, %v6337_v26 }
 0x3d9   : > { %v3571_v13 = vpop.f32.mrf.mxu0  ;;  %v3714_v37 = vadd.f32 %v8198_v41, %v3665_v49  ;;  %v5570_v44 = vor.u32 %v6509_v45, %v5569_v1  ;;  %4214 = vmatpush.bf16.msra.mxu2 %v6082_v9  ;;  %v6573_v63 = vld [vmem:[#allocation8 + $0x3b4] sm:$0xf0] }
 0x3da   : > { %v3620_v12 = vpop.f32.mrf.mxu1  ;;  %v3572_v19 = vadd.f32 %v3571_v13, %v8086_v24  ;;  %v4766_v6 = vadd.f32 %v4765_v3, %v4566_v27  ;;  %v3711_v60 = vadd.f32 %v8179_v56, %v3662_v4  ;;  %4263 = vmatpush.bf16.msra.mxu3 %v6338_v21  ;;  %v6049_v15 = vld [vmem:[#allocation8 + $0x558] sm:$0xf] }
 0x3db   : > { %4116 = vmatpush.bf16.msra.mxu0 %v5570_v44  ;;  %v4606_v48 = vmax.f32 %v3714_v37, 0.0  ;;  %v6629_v29 = vld [vmem:[#allocation8 + $0x574] sm:$0xf0] }
 0x3dc   : > { %3766 = vmatmul.bf16.gmra.mxu0 %v7648_v35  ;;  %v3621_v13 = vadd.f32 %v3620_v12, %v3572_v19  ;;  %v4767_v28 = vadd.f32 %v4766_v6, %v4574_v25  ;;  %v4598_v56 = vmax.f32 %v3711_v60, 0.0  ;;  %v5537_v1 = vld [vmem:[#allocation8 + $0x158] sm:$0xf] }
 0x3dd   : > { %3815 = vmatmul.bf16.gmra.mxu1 %v7651_v46  ;;  %v6501_v9 = vld [vmem:[#allocation8 + $0x174] sm:$0xf0] }
 0x3de   : > { %v3666_v33 = vpop.f32.mrf.mxu2  ;;  %v4768_v58 = vadd.f32 %v4767_v28, %v4582_v0  ;;  %v6305_v45 = vld [vmem:[#allocation8 + $0x758] sm:$0xf] }
 0x3df   : > { %v3715_v2 = vpop.f32.mrf.mxu3  ;;  %v3667_v40 = vadd.f32 %v3666_v33, %v3618_v10  ;;  %v6693_v26 = vld [vmem:[#allocation8 + $0x774] sm:$0xf0] }
 0x3e0   : > { %v4769_v14 = vadd.f32 %v4768_v58, %v4590_v30 }
 0x3e1   : > { %v3573_v59 = vpop.f32.mrf.mxu0  ;;  %v3716_v12 = vadd.f32 %v3715_v2, %v3667_v40  ;;  %v5825_v2 = vld [vmem:[#allocation8 + $0x398] sm:$0xf] }
 0x3e2   : > { %v3622_v62 = vpop.f32.mrf.mxu1  ;;  %v3574_v50 = vadd.f32 %v3573_v59, %v8086_v24  ;;  %v4770_v27 = vadd.f32 %v4769_v14, %v4598_v56  ;;  %v5826_v4 = vor.u32 %v6573_v63, %v5825_v2 }
 0x3e3   : > { %3864 = vmatmul.bf16.gmra.mxu2 %v7658_v8  ;;  %v4614_v47 = vmax.f32 %v3716_v12, 0.0 }
 0x3e4   : > { %3913 = vmatmul.bf16.gmra.mxu3 %v7662_v7  ;;  %v3623_v22 = vadd.f32 %v3622_v62, %v3574_v50  ;;  %v4771_v19 = vadd.f32 %v4770_v27, %v4606_v48  ;;  %4165 = vmatpush.bf16.msra.mxu1 %v5826_v4  ;;  %v5793_v50 = vld [vmem:[#allocation8 + $0x358] sm:$0xf] }
 0x3e5   : > { %v6017_v4 = vld [vmem:[#allocation8 + $0x518] sm:$0xf] }
 0x3e6   : > { %v3669_v20 = vpop.f32.mrf.mxu2  ;;  %v4772_v10 = vadd.f32 %v4771_v19, %v4614_v47  ;;  %v6621_v19 = vld [vmem:[#allocation8 + $0x534] sm:$0xf0] }
 0x3e7   : > { %v3670_v17 = vadd.f32 %v3669_v20, %v3621_v13  ;;  %v3718_v43 = vpop.f32.mrf.mxu3  ;;  %v6050_v20 = vor.u32 %v6629_v29, %v6049_v15 }
 0x3e9   : > { %v3732_v38 = vpop.f32.mrf.mxu0  ;;  %v3719_v42 = vadd.f32 %v3718_v43, %v3670_v17  ;;  %v5538_v17 = vor.u32 %v6501_v9, %v5537_v1  ;;  %v6306_v43 = vor.u32 %v6693_v26, %v6305_v45  ;;  %4215 = vmatpush.bf16.msra.mxu2 %v6050_v20  ;;  %v5761_v9 = vld [vmem:[#allocation8 + $0x318] sm:$0xf] }
 0x3ea   : > { %v3733_v23 = vadd.f32 %v3732_v38, %v8227_v55  ;;  %v3781_v33 = vpop.f32.mrf.mxu1  ;;  %v6565_v38 = vld [vmem:[#allocation8 + $0x374] sm:$0xf0] }
 0x3eb   : > { %v4622_v59 = vmax.f32 %v3719_v42, 0.0  ;;  %4117 = vmatpush.bf16.msra.mxu0 %v5538_v17  ;;  %4264 = vmatpush.bf16.msra.mxu3 %v6306_v43  ;;  %v6557_v45 = vld [vmem:[#allocation8 + $0x334] sm:$0xf0] }
 0x3ec   : > { %v3782_v41 = vadd.f32 %v3781_v33, %v3733_v23  ;;  %3927 = vmatmul.bf16.vlgmr.msrb.gmra.mxu0 %v7508_v36  ;;  %v5794_v33 = vor.u32 %v6565_v38, %v5793_v50  ;;  %v6613_v50 = vld [vmem:[#allocation8 + $0x4f4] sm:$0xf0] }
 0x3ed   : > { %3976 = vmatmul.bf16.vlgmr.msrb.gmra.mxu1 %v7511_v39  ;;  %v4773_v60 = vadd.f32 %v4772_v10, %v4622_v59  ;;  %v5505_v59 = vld [vmem:[#allocation8 + $0x118] sm:$0xf] }
 0x3ee   : > { %v3671_v24 = vpop.f32.mrf.mxu2  ;;  %4166 = vmatpush.bf16.msra.mxu1 %v5794_v33  ;;  %v6493_v10 = vld [vmem:[#allocation8 + $0x134] sm:$0xf0] }
 0x3ef   : > { %v3672_v3 = vadd.f32 %v3671_v24, %v3623_v22  ;;  %v3720_v25 = vpop.f32.mrf.mxu3  ;;  %v5473_v38 = vld [vmem:[#allocation8 + $0xd8] sm:$0xf] }
 0x3f1   : > { %v3721_v49 = vadd.f32 %v3720_v25, %v3672_v3  ;;  %v3734_v6 = vpop.f32.mrf.mxu0  ;;  %v6018_v25 = vor.u32 %v6621_v19, %v6017_v4 }
 0x3f2   : > { %v3735_v0 = vadd.f32 %v3734_v6, %v8227_v55  ;;  %v3783_v30 = vpop.f32.mrf.mxu1  ;;  %v6685_v6 = vld [vmem:[#allocation8 + $0x734] sm:$0xf0] }
 0x3f3   : > { %v4630_v62 = vmax.f32 %v3721_v49, 0.0  ;;  %4025 = vmatmul.bf16.vlgmr.msrb.gmra.mxu2 %v7518_v51  ;;  %v6273_v49 = vld [vmem:[#allocation8 + $0x718] sm:$0xf] }
 0x3f4   : > { %v3784_v13 = vadd.f32 %v3783_v30, %v3735_v0  ;;  %4074 = vmatmul.bf16.vlgmr.msrb.gmra.mxu3 %v7520_v52  ;;  %4216 = vmatpush.bf16.msra.mxu2 %v6018_v25  ;;  %v6549_v25 = vld [vmem:[#allocation8 + $0x2f4] sm:$0xf0] }
 0x3f5   : > { %v4774_v40 = vadd.f32 %v4773_v60, %v4630_v62  ;;  %v5506_v60 = vor.u32 %v6493_v10, %v5505_v59  ;;  %v6274_v62 = vor.u32 %v6685_v6, %v6273_v49  ;;  %v8796_v59 = vld [vmem:[#allocation20_spill] sm:$0xff] }
 0x3f6   : > { %v3830_v28 = vpop.f32.mrf.mxu2 }
 0x3f7   : > { %4838 = vst [vmem:[%s7815_s4 + $0x18] sm:$0xff] %v4774_v40  ;;  %v3831_v54 = vadd.f32 %v3830_v28, %v3782_v41  ;;  %v3879_v37 = vpop.f32.mrf.mxu3  ;;  %4118 = vmatpush.bf16.msra.mxu0 %v5506_v60  ;;  %4265 = vmatpush.bf16.msra.mxu3 %v6274_v62  ;;  %v8797_v60 = vld [vmem:[#allocation21_spill] sm:$0xff]  ;;  %v8798_v62 = vld [vmem:[#allocation22_spill] sm:$0xff] }
 0x3f9   : > { %v3880_v44 = vadd.f32 %v3879_v37, %v3831_v54  ;;  %v3737_v21 = vpop.f32.mrf.mxu0  ;;  %v5762_v54 = vor.u32 %v6557_v45, %v5761_v9  ;;  %v6669_v9 = vld [vmem:[#allocation8 + $0x6b4] sm:$0xf0] }
 0x3fa   : > { %v3738_v58 = vadd.f32 %v3737_v21, %v8227_v55  ;;  %v3786_v56 = vpop.f32.mrf.mxu1 }
 0x3fb   : > { %v4511_v22 = vmax.f32 %v3880_v44, 0.0  ;;  %4167 = vmatpush.bf16.msra.mxu1 %v5762_v54 }
 0x3fc   : > { %v3787_v12 = vadd.f32 %v3786_v56, %v3738_v58  ;;  %3932 = vmatmul.bf16.gmra.mxu0 %v7528_v11 }
 0x3fd   : > { %3981 = vmatmul.bf16.gmra.mxu1 %v7531_v16 }
 0x3fe   : > { %v3832_v23 = vpop.f32.mrf.mxu2 }
 0x3ff   : > { %v3833_v14 = vadd.f32 %v3832_v23, %v3784_v13  ;;  %v3881_v48 = vpop.f32.mrf.mxu3 }
 0x401   : > { %v3882_v42 = vadd.f32 %v3881_v48, %v3833_v14  ;;  %v3739_v41 = vpop.f32.mrf.mxu0  ;;  %v6485_v14 = vld [vmem:[#allocation8 + $0xf4] sm:$0xf0] }
 0x402   : > { %v3740_v27 = vadd.f32 %v3739_v41, %v8227_v55  ;;  %v3788_v47 = vpop.f32.mrf.mxu1  ;;  %v6241_v48 = vld [vmem:[#allocation8 + $0x6d8] sm:$0xf] }
 0x403   : > { %v4519_v2 = vmax.f32 %v3882_v42, 0.0  ;;  %4030 = vmatmul.bf16.gmra.mxu2 %v7538_v5  ;;  %v6677_v42 = vld [vmem:[#allocation8 + $0x6f4] sm:$0xf0] }
 0x404   : > { %v3789_v63 = vadd.f32 %v3788_v47, %v3740_v27  ;;  %4079 = vmatmul.bf16.gmra.mxu3 %v7540_v32  ;;  %v5474_v47 = vor.u32 %v6485_v14, %v5473_v38 }
 0x405   : > { %v4775_v24 = vadd.f32 %v4519_v2, %v4511_v22  ;;  %v6242_v22 = vor.u32 %v6677_v42, %v6241_v48  ;;  %v8801_v48 = vld [vmem:[#allocation25_spill] sm:$0xff]  ;;  %v8802_v42 = vld [vmem:[#allocation26_spill] sm:$0xff] }
 0x406   : > { %v3835_v3 = vpop.f32.mrf.mxu2  ;;  %4119 = vmatpush.bf16.msra.mxu0 %v5474_v47  ;;  %v5409_v47 = vld [vmem:[#allocation8 + $0x58] sm:$0xf] }
 0x407   : > { %v3836_v0 = vadd.f32 %v3835_v3, %v3787_v12  ;;  %v3884_v30 = vpop.f32.mrf.mxu3  ;;  %v5985_v12 = vld [vmem:[#allocation8 + $0x4d8] sm:$0xf]  ;;  %4266 = vmatpush.bf16.msra.mxu3 %v6242_v22 }
 0x408   : > { %v5986_v33 = vor.u32 %v6613_v50, %v5985_v12  ;;  %v5729_v3 = vld [vmem:[#allocation8 + $0x2d8] sm:$0xf] }
 0x409   : > { %v3885_v13 = vadd.f32 %v3884_v30, %v3836_v0  ;;  %v3742_v40 = vpop.f32.mrf.mxu0  ;;  %v5730_v49 = vor.u32 %v6549_v25, %v5729_v3  ;;  %v6541_v12 = vld [vmem:[#allocation8 + $0x2b4] sm:$0xf0] }
 0x40a   : > { %v3743_v15 = vadd.f32 %v3742_v40, %v8227_v55  ;;  %v3791_v29 = vpop.f32.mrf.mxu1  ;;  %4217 = vmatpush.bf16.msra.mxu2 %v5986_v33  ;;  %v6605_v40 = vld [vmem:[#allocation8 + $0x4b4] sm:$0xf0] }
 0x40b   : > { %v4527_v1 = vmax.f32 %v3885_v13, 0.0  ;;  %4168 = vmatpush.bf16.msra.mxu1 %v5730_v49  ;;  %v5953_v13 = vld [vmem:[#allocation8 + $0x498] sm:$0xf] }
 0x40c   : > { %v3792_v28 = vadd.f32 %v3791_v29, %v3743_v15  ;;  %3937 = vmatmul.bf16.gmra.mxu0 %v7548_v57  ;;  %v5441_v15 = vld [vmem:[#allocation8 + $0x98] sm:$0xf] }
 0x40d   : > { %v4776_v20 = vadd.f32 %v4775_v24, %v4527_v1  ;;  %3986 = vmatmul.bf16.gmra.mxu1 %v7551_v31  ;;  %v5954_v1 = vor.u32 %v6605_v40, %v5953_v13  ;;  %v6177_v3 = vld [vmem:[#allocation8 + $0x658] sm:$0xf] }
 0x40e   : > { %v3837_v26 = vpop.f32.mrf.mxu2  ;;  %v6661_v25 = vld [vmem:[#allocation8 + $0x674] sm:$0xf0] }
 0x40f   : > { %v3838_v37 = vadd.f32 %v3837_v26, %v3789_v63  ;;  %v3886_v17 = vpop.f32.mrf.mxu3  ;;  %4218 = vmatpush.bf16.msra.mxu2 %v5954_v1  ;;  %v6178_v40 = vor.u32 %v6661_v25, %v6177_v3  ;;  %v5377_v3 = vld [vmem:[#allocation8 + $0x18] sm:$0xf] }
 0x411   : > { %v3887_v43 = vadd.f32 %v3886_v17, %v3838_v37  ;;  %v8248_v44 = vpop.f32.mrf.mxu0 }
 0x412   : > { %v8250_v21 = vpop.f32.mrf.mxu1 }
 0x413   : > { %v4535_v58 = vmax.f32 %v3887_v43, 0.0  ;;  %4035 = vmatmul.bf16.gmra.mxu2 %v7558_v18  ;;  %v8799_v43 = vld [vmem:[#allocation23_spill] sm:$0xff] }
 0x414   : > { %4084 = vmatmul.bf16.gmra.mxu3 %v7560_v34 }
 0x415   : > { %v4777_v56 = vadd.f32 %v4776_v20, %v4535_v58  ;;  %v6209_v20 = vld [vmem:[#allocation8 + $0x698] sm:$0xf]  ;;  %v8800_v58 = vld [vmem:[#allocation24_spill] sm:$0xff] }
 0x416   : > { %v3840_v23 = vpop.f32.mrf.mxu2  ;;  %v6210_v54 = vor.u32 %v6669_v9, %v6209_v20  ;;  %v8804_v20 = vld [vmem:[#allocation28_spill] sm:$0xff]  ;;  %v5665_v9 = vld [vmem:[#allocation8 + $0x258] sm:$0xf] }
 0x417   : > { %v3841_v41 = vadd.f32 %v3840_v23, %v3792_v28  ;;  %v3889_v27 = vpop.f32.mrf.mxu3  ;;  %v6477_v28 = vld [vmem:[#allocation8 + $0xb4] sm:$0xf0] }
 0x418   : > { %v5442_v26 = vor.u32 %v6477_v28, %v5441_v15  ;;  %4267 = vmatpush.bf16.msra.mxu3 %v6210_v54  ;;  %v8803_v28 = vld [vmem:[#allocation27_spill] sm:$0xff] }
 0x419   : > { %v3890_v2 = vadd.f32 %v3889_v27, %v3841_v41  ;;  %v8254_v63 = vpop.f32.mrf.mxu0  ;;  %v5921_v41 = vld [vmem:[#allocation8 + $0x458] sm:$0xf] }
 0x41a   : > { %v8256_v24 = vpop.f32.mrf.mxu1  ;;  %4120 = vmatpush.bf16.msra.mxu0 %v5442_v26  ;;  %v6597_v27 = vld [vmem:[#allocation8 + $0x474] sm:$0xf0] }
 0x41b   : > { %v4543_v4 = vmax.f32 %v3890_v2, 0.0  ;;  %v5922_v2 = vor.u32 %v6597_v27, %v5921_v41  ;;  %v6533_v26 = vld [vmem:[#allocation8 + $0x274] sm:$0xf0] }
 0x41c   : > { %3942 = vmatmul.bf16.gmra.mxu0 %v8780_v53  ;;  %4268 = vmatpush.bf16.msra.mxu3 %v6178_v40  ;;  %v8805_v27 = vld [vmem:[#allocation29_spill] sm:$0xff] }
 0x41d   : > { %v8259_v19 = vadd.f32 %v4777_v56, %v4543_v4  ;;  %3991 = vmatmul.bf16.gmra.mxu1 %v8796_v59  ;;  %v5697_v56 = vld [vmem:[#allocation8 + $0x298] sm:$0xf]  ;;  %4219 = vmatpush.bf16.msra.mxu2 %v5922_v2 }
 0x41e   : > { %v8262_v10 = vpop.f32.mrf.mxu2  ;;  %v5698_v38 = vor.u32 %v6541_v12, %v5697_v56  ;;  %v6469_v4 = vld [vmem:[#allocation8 + $0x74] sm:$0xf0]  ;;  %v5666_v56 = vor.u32 %v6533_v26, %v5665_v9 }
 0x41f   : > { %v8264_v6 = vpop.f32.mrf.mxu3  ;;  %v5410_v13 = vor.u32 %v6469_v4, %v5409_v47  ;;  %v8806_v47 = vld [vmem:[#allocation30_spill] sm:$0xff]  ;;  %v5889_v2 = vld [vmem:[#allocation8 + $0x418] sm:$0xf] }
 0x420   : > { %4169 = vmatpush.bf16.msra.mxu1 %v5698_v38  ;;  %v6589_v4 = vld [vmem:[#allocation8 + $0x434] sm:$0xf0] }
 0x421   : > { %v8266_v0 = vpop.f32.mrf.mxu0  ;;  %4121 = vmatpush.bf16.msra.mxu0 %v5410_v13  ;;  %v5890_v13 = vor.u32 %v6589_v4, %v5889_v2  ;;  %v6461_v40 = vld [vmem:[#allocation8 + $0x34] sm:$0xf0]  ;;  %v3745_v2 = vadd.f32 %v8248_v44, %v8227_v55  ;;  %v8808_v4 = vld [vmem:[#allocation32_spill] sm:$0xff] }
 0x422   : > { %v8268_v30 = vpop.f32.mrf.mxu1  ;;  %v6653_v9 = vld [vmem:[#allocation8 + $0x634] sm:$0xf0] }
 0x423   : > { %4040 = vmatmul.bf16.gmra.mxu2 %v8797_v60 }
 0x424   : > { %4089 = vmatmul.bf16.gmra.mxu3 %v8798_v62  ;;  %4170 = vmatpush.bf16.msra.mxu1 %v5666_v56  ;;  %v5378_v56 = vor.u32 %v6461_v40, %v5377_v3  ;;  %v8809_v40 = vld [vmem:[#allocation33_spill] sm:$0xff] }
 0x425   : > { %4220 = vmatpush.bf16.msra.mxu2 %v5890_v13  ;;  %v3794_v13 = vadd.f32 %v8250_v21, %v3745_v2 }
 0x426   : > { %v8272_v29 = vpop.f32.mrf.mxu2  ;;  %4122 = vmatpush.bf16.msra.mxu0 %v5378_v56  ;;  %v8810_v56 = vld [vmem:[#allocation34_spill] sm:$0xff] }
 0x427   : > { %v8274_v45 = vpop.f32.mrf.mxu3 }
 0x429   : > { %v8276_v37 = vpop.f32.mrf.mxu0 }
 0x42a   : > { %v8278_v17 = vpop.f32.mrf.mxu1 }
 0x42c   : > { %3947 = vmatmul.bf16.gmra.mxu0 %v8799_v43  ;;  %v8807_v43 = vld [vmem:[#allocation31_spill] sm:$0xff] }
 0x42d   : > { %3996 = vmatmul.bf16.gmra.mxu1 %v8800_v58 }
 0x42e   : > { %v8282_v50 = vpop.f32.mrf.mxu2 }
 0x42f   : > { %v8284_v23 = vpop.f32.mrf.mxu3 }
 0x431   : > { %v8286_v33 = vpop.f32.mrf.mxu0 }
 0x432   : > { %v8288_v14 = vpop.f32.mrf.mxu1  ;;  %v3755_v2 = vadd.f32 %v8286_v33, %v8227_v55 }
 0x433   : > { %4045 = vmatmul.bf16.gmra.mxu2 %v8801_v48  ;;  %v6525_v48 = vld [vmem:[#allocation8 + $0x234] sm:$0xf0] }
 0x434   : > { %4094 = vmatmul.bf16.gmra.mxu3 %v8802_v42  ;;  %v5633_v42 = vld [vmem:[#allocation8 + $0x218] sm:$0xf] }
 0x436   : > { %v8292_v22 = vpop.f32.mrf.mxu2 }
 0x437   : > { %v8294_v49 = vpop.f32.mrf.mxu3 }
 0x439   : > { %v3757_v15 = vpop.f32.mrf.mxu0 }
 0x43a   : > { %v8296_v1 = vpop.f32.mrf.mxu1 }
 0x43c   : > { %3952 = vmatmul.bf16.gmra.mxu0 %v8803_v28 }
 0x43d   : > { %4001 = vmatmul.bf16.gmra.mxu1 %v8804_v20  ;;  %v6145_v20 = vld [vmem:[#allocation8 + $0x618] sm:$0xf] }
 0x43e   : > { %v8300_v54 = vpop.f32.mrf.mxu2  ;;  %v6146_v28 = vor.u32 %v6653_v9, %v6145_v20  ;;  %v3748_v20 = vadd.f32 %v8254_v63, %v8227_v55  ;;  %v3753_v9 = vadd.f32 %v8276_v37, %v8227_v55 }
 0x43f   : > { %v8302_v12 = vpop.f32.mrf.mxu3 }
 0x440   : > { %4269 = vmatpush.bf16.msra.mxu3 %v6146_v28  ;;  %v3797_v44 = vadd.f32 %v8256_v24, %v3748_v20  ;;  %v6641_v24 = vld [vmem:[#allocation8 + $0x5dc] sm:$0xf]  ;;  %v3802_v37 = vadd.f32 %v8278_v17, %v3753_v9 }
 0x441   : > { %v8304_v38 = vpop.f32.mrf.mxu0  ;;  %v6115_v20 = vld [vmem:[#allocation8 + $0x5f8] sm:$0xf0] }
 0x442   : > { %v8306_v41 = vpop.f32.mrf.mxu1  ;;  %v3846_v21 = vadd.f32 %v8272_v29, %v3797_v44  ;;  %v6705_v29 = vld [vmem:[#allocation8 + $0x7dc] sm:$0xf] }
 0x443   : > { %4050 = vmatmul.bf16.gmra.mxu2 %v8805_v27  ;;  %v6371_v44 = vld [vmem:[#allocation8 + $0x7f8] sm:$0xf0] }
 0x444   : > { %4099 = vmatmul.bf16.gmra.mxu3 %v8806_v47  ;;  %v5634_v47 = vor.u32 %v6525_v48, %v5633_v42  ;;  %v3750_v48 = vadd.f32 %v8266_v0, %v8227_v55  ;;  %v3758_v0 = vadd.f32 %v3757_v15, %v8227_v55  ;;  %v6374_v60 = vor.u32 %v6705_v29, %v6371_v44  ;;  %v6577_v9 = vld [vmem:[#allocation8 + $0x3dc] sm:$0xf] }
 0x445   : > { %v3895_v15 = vadd.f32 %v8274_v45, %v3846_v21  ;;  %v6083_v44 = vld [vmem:[#allocation8 + $0x5b8] sm:$0xf0] }
 0x446   : > { %v8310_v25 = vpop.f32.mrf.mxu2  ;;  %4171 = vmatpush.bf16.msra.mxu1 %v5634_v47  ;;  %v3843_v47 = vadd.f32 %v8262_v10, %v3794_v13  ;;  %v3799_v63 = vadd.f32 %v8268_v30, %v3750_v48  ;;  %v6118_v30 = vor.u32 %v6641_v24, %v6115_v20  ;;  %v5603_v48 = vld [vmem:[#allocation8 + $0x1f8] sm:$0xf0]  ;;  %v3807_v59 = vadd.f32 %v8296_v1, %v3758_v0 }
 0x447   : > { %v8312_v26 = vpop.f32.mrf.mxu3  ;;  %4458 = vmatpush.bf16.msrb.mxu3 %v6374_v60  ;;  %v4559_v21 = vmax.f32 %v3895_v15, 0.0 }
 0x448   : > { %v3892_v10 = vadd.f32 %v8264_v6, %v3843_v47  ;;  %v3804_v6 = vadd.f32 %v8288_v14, %v3755_v2  ;;  %v3851_v47 = vadd.f32 %v8292_v22, %v3802_v37  ;;  %4409 = vmatpush.bf16.msrb.mxu2 %v6118_v30  ;;  %v3856_v14 = vadd.f32 %v8310_v25, %v3807_v59 }
 0x449   : > { %v3762_v58 = vpop.f32.mrf.mxu0 }
 0x44a   : > { %v8314_v27 = vpop.f32.mrf.mxu1  ;;  %v4551_v17 = vmax.f32 %v3892_v10, 0.0  ;;  %v3853_v45 = vadd.f32 %v8300_v54, %v3804_v6  ;;  %v3763_v1 = vadd.f32 %v3762_v58, %v8227_v55  ;;  %v3905_v0 = vadd.f32 %v8312_v26, %v3856_v14  ;;  %v6633_v26 = vld [vmem:[#allocation8 + $0x59c] sm:$0xf] }
 0x44b   : > { %v5571_v6 = vld [vmem:[#allocation8 + $0x1b8] sm:$0xf0] }
 0x44c   : > { %3957 = vmatmul.bf16.gmra.mxu0 %v8807_v43  ;;  %v4779_v54 = vadd.f32 %v8259_v19, %v4551_v17  ;;  %v3902_v25 = vadd.f32 %v8302_v12, %v3853_v45  ;;  %v3812_v58 = vadd.f32 %v8314_v27, %v3763_v1  ;;  %v4591_v29 = vmax.f32 %v3905_v0, 0.0  ;;  %v6339_v17 = vld [vmem:[#allocation8 + $0x7b8] sm:$0xf0] }
 0x44d   : > { %4006 = vmatmul.bf16.gmra.mxu1 %v8808_v4  ;;  %v8366_v12 = vperm.slane %v8224_v61, 5 }
 0x44e   : > { %v3857_v62 = vpop.f32.mrf.mxu2  ;;  %v4780_v20 = vadd.f32 %v4779_v54, %v4559_v21  ;;  %v4583_v19 = vmax.f32 %v3902_v25, 0.0  ;;  %v5827_v25 = vld [vmem:[#allocation8 + $0x3b8] sm:$0xf0] }
 0x44f   : > { %v8320_v3 = vpop.f32.mrf.mxu3 }
 0x451   : > { %v3764_v28 = vpop.f32.mrf.mxu0 }
 0x452   : > { %v3813_v42 = vpop.f32.mrf.mxu1 }
 0x453   : > { %4055 = vmatmul.bf16.gmra.mxu2 %v8809_v40  ;;  %v6513_v40 = vld [vmem:[#allocation8 + $0x1dc] sm:$0xf] }
 0x454   : > { %4104 = vmatmul.bf16.gmra.mxu3 %v8810_v56  ;;  %v3848_v56 = vadd.f32 %v8282_v50, %v3799_v63  ;;  %v5606_v33 = vor.u32 %v6513_v40, %v5603_v48  ;;  %v3760_v50 = vadd.f32 %v8304_v38, %v8227_v55  ;;  %v5859_v63 = vld [vmem:[#allocation8 + $0x3f8] sm:$0xf0]  ;;  %v3900_v38 = vadd.f32 %v8294_v49, %v3851_v47 }
 0x455   : > { %v5862_v22 = vor.u32 %v6577_v9, %v5859_v63  ;;  %v6697_v47 = vld [vmem:[#allocation8 + $0x79c] sm:$0xf] }
 0x456   : > { %v3860_v4 = vpop.f32.mrf.mxu2  ;;  %4311 = vmatpush.bf16.msrb.mxu0 %v5606_v33  ;;  %v3897_v40 = vadd.f32 %v8284_v23, %v3848_v56  ;;  %v3809_v60 = vadd.f32 %v8306_v41, %v3760_v50  ;;  %v3765_v23 = vadd.f32 %v3764_v28, %v8227_v55  ;;  %v4575_v37 = vmax.f32 %v3900_v38, 0.0  ;;  %v6505_v33 = vld [vmem:[#allocation8 + $0x19c] sm:$0xf] }
 0x457   : > { %v8339_v13 = vpop.f32.mrf.mxu3  ;;  %4360 = vmatpush.bf16.msrb.mxu1 %v5862_v22  ;;  %v3861_v48 = vadd.f32 %v3860_v4, %v3812_v58  ;;  %v6086_v4 = vor.u32 %v6633_v26, %v6083_v44  ;;  %v6342_v61 = vor.u32 %v6697_v47, %v6339_v17  ;;  %v6497_v26 = vld [vmem:[#allocation8 + $0x15c] sm:$0xf] }
 0x458   : > { %v4567_v59 = vmax.f32 %v3897_v40, 0.0  ;;  %v3858_v10 = vadd.f32 %v3857_v62, %v3809_v60  ;;  %v3814_v41 = vadd.f32 %v3813_v42, %v3765_v23  ;;  %v5574_v40 = vor.u32 %v6505_v33, %v5571_v6 }
 0x459   : > { %v3767_v43 = vpop.f32.mrf.mxu0  ;;  %v3910_v50 = vadd.f32 %v8339_v13, %v3861_v48  ;;  %4410 = vmatpush.bf16.msrb.mxu2 %v6086_v4  ;;  %4459 = vmatpush.bf16.msrb.mxu3 %v6342_v61  ;;  %v6307_v4 = vld [vmem:[#allocation8 + $0x778] sm:$0xf0] }
 0x45a   : > { %v3816_v53 = vpop.f32.mrf.mxu1  ;;  %v3768_v24 = vadd.f32 %v3767_v43, %v8227_v55  ;;  %v4781_v28 = vadd.f32 %v4780_v20, %v4567_v59  ;;  %v3907_v62 = vadd.f32 %v8320_v3, %v3858_v10  ;;  %4312 = vmatpush.bf16.msrb.mxu0 %v5574_v40 }
 0x45c   : > { %3962 = vmatmul.bf16.gmra.mxu0 %v7648_v35  ;;  %v3817_v27 = vadd.f32 %v3816_v53, %v3768_v24  ;;  %v4782_v15 = vadd.f32 %v4781_v28, %v4575_v37  ;;  %v4599_v3 = vmax.f32 %v3907_v62, 0.0 }
 0x45d   : > { %4011 = vmatmul.bf16.gmra.mxu1 %v7651_v46 }
 0x45e   : > { %v3862_v2 = vpop.f32.mrf.mxu2  ;;  %v4783_v45 = vadd.f32 %v4782_v15, %v4583_v19  ;;  %v5539_v15 = vld [vmem:[#allocation8 + $0x178] sm:$0xf0] }
 0x45f   : > { %v3911_v56 = vpop.f32.mrf.mxu3  ;;  %v3863_v43 = vadd.f32 %v3862_v2, %v3814_v41  ;;  %v4607_v2 = vmax.f32 %v3910_v50, 0.0  ;;  %v5542_v17 = vor.u32 %v6497_v26, %v5539_v15 }
 0x460   : > { %v4784_v38 = vadd.f32 %v4783_v45, %v4591_v29 }
 0x461   : > { %v3769_v49 = vpop.f32.mrf.mxu0  ;;  %v3912_v53 = vadd.f32 %v3911_v56, %v3863_v43  ;;  %v6569_v56 = vld [vmem:[#allocation8 + $0x39c] sm:$0xf]  ;;  %4313 = vmatpush.bf16.msrb.mxu0 %v5542_v17 }
 0x462   : > { %v3818_v30 = vpop.f32.mrf.mxu1  ;;  %v3770_v14 = vadd.f32 %v3769_v49, %v8227_v55  ;;  %v4785_v23 = vadd.f32 %v4784_v38, %v4599_v3  ;;  %v5830_v0 = vor.u32 %v6569_v56, %v5827_v25  ;;  %v6051_v43 = vld [vmem:[#allocation8 + $0x578] sm:$0xf0] }
 0x463   : > { %4060 = vmatmul.bf16.gmra.mxu2 %v7658_v8  ;;  %v4615_v54 = vmax.f32 %v3912_v53, 0.0  ;;  %v6561_v3 = vld [vmem:[#allocation8 + $0x35c] sm:$0xf] }
 0x464   : > { %4109 = vmatmul.bf16.gmra.mxu3 %v7662_v7  ;;  %v3819_v59 = vadd.f32 %v3818_v30, %v3770_v14  ;;  %v4786_v58 = vadd.f32 %v4785_v23, %v4607_v2  ;;  %4361 = vmatpush.bf16.msrb.mxu1 %v5830_v0  ;;  %v5795_v53 = vld [vmem:[#allocation8 + $0x378] sm:$0xf0] }
 0x465   : > { %v6617_v25 = vld [vmem:[#allocation8 + $0x51c] sm:$0xf] }
 0x466   : > { %v3865_v42 = vpop.f32.mrf.mxu2  ;;  %v4787_v20 = vadd.f32 %v4786_v58, %v4615_v54  ;;  %v6489_v0 = vld [vmem:[#allocation8 + $0x11c] sm:$0xf] }
 0x467   : > { %v3866_v9 = vadd.f32 %v3865_v42, %v3817_v27  ;;  %v3914_v63 = vpop.f32.mrf.mxu3  ;;  %v6625_v27 = vld [vmem:[#allocation8 + $0x55c] sm:$0xf] }
 0x468   : > { %v6054_v33 = vor.u32 %v6625_v27, %v6051_v43  ;;  %v6689_v42 = vld [vmem:[#allocation8 + $0x75c] sm:$0xf] }
 0x469   : > { %v3928_v22 = vpop.f32.mrf.mxu0  ;;  %v3915_v60 = vadd.f32 %v3914_v63, %v3866_v9  ;;  %v6310_v50 = vor.u32 %v6689_v42, %v6307_v4 }
 0x46a   : > { %v3929_v1 = vadd.f32 %v3928_v22, %v8366_v12  ;;  %v3977_v21 = vpop.f32.mrf.mxu1  ;;  %4411 = vmatpush.bf16.msrb.mxu2 %v6054_v33  ;;  %v5798_v22 = vor.u32 %v6561_v3, %v5795_v53  ;;  %v5763_v33 = vld [vmem:[#allocation8 + $0x338] sm:$0xf0] }
 0x46b   : > { %v4623_v10 = vmax.f32 %v3915_v60, 0.0  ;;  %4460 = vmatpush.bf16.msrb.mxu3 %v6310_v50 }
 0x46c   : > { %v3978_v13 = vadd.f32 %v3977_v21, %v3929_v1  ;;  %4123 = vmatmul.bf16.vlgmr.msra.gmra.mxu0 %v7508_v36  ;;  %4362 = vmatpush.bf16.msrb.mxu1 %v5798_v22  ;;  %v6673_v22 = vld [vmem:[#allocation8 + $0x6dc] sm:$0xf] }
 0x46d   : > { %4172 = vmatmul.bf16.vlgmr.msra.gmra.mxu1 %v7511_v39  ;;  %v4788_v19 = vadd.f32 %v4787_v20, %v4623_v10  ;;  %v6275_v20 = vld [vmem:[#allocation8 + $0x738] sm:$0xf0] }
 0x46e   : > { %v3867_v55 = vpop.f32.mrf.mxu2 }
 0x46f   : > { %v3868_v24 = vadd.f32 %v3867_v55, %v3819_v59  ;;  %v3916_v49 = vpop.f32.mrf.mxu3  ;;  %v6019_v55 = vld [vmem:[#allocation8 + $0x538] sm:$0xf0] }
 0x470   : > { %v6022_v10 = vor.u32 %v6617_v25, %v6019_v55  ;;  %v8812_v55 = vld [vmem:[#allocation20_spill] sm:$0xff] }
 0x471   : > { %v3917_v37 = vadd.f32 %v3916_v49, %v3868_v24  ;;  %v3930_v41 = vpop.f32.mrf.mxu0  ;;  %v5507_v24 = vld [vmem:[#allocation8 + $0x138] sm:$0xf0] }
 0x472   : > { %v3931_v48 = vadd.f32 %v3930_v41, %v8366_v12  ;;  %v3979_v28 = vpop.f32.mrf.mxu1  ;;  %v6681_v49 = vld [vmem:[#allocation8 + $0x71c] sm:$0xf]  ;;  %4412 = vmatpush.bf16.msrb.mxu2 %v6022_v10 }
 0x473   : > { %v4631_v30 = vmax.f32 %v3917_v37, 0.0  ;;  %4221 = vmatmul.bf16.vlgmr.msra.gmra.mxu2 %v7518_v51 }
 0x474   : > { %v3980_v29 = vadd.f32 %v3979_v28, %v3931_v48  ;;  %4270 = vmatmul.bf16.vlgmr.msra.gmra.mxu3 %v7520_v52  ;;  %v5510_v48 = vor.u32 %v6489_v0, %v5507_v24  ;;  %v6278_v28 = vor.u32 %v6681_v49, %v6275_v20  ;;  %v6545_v0 = vld [vmem:[#allocation8 + $0x2dc] sm:$0xf] }
 0x475   : > { %v4789_v62 = vadd.f32 %v4788_v19, %v4631_v30 }
 0x476   : > { %v4026_v44 = vpop.f32.mrf.mxu2  ;;  %4314 = vmatpush.bf16.msrb.mxu0 %v5510_v48  ;;  %4461 = vmatpush.bf16.msrb.mxu3 %v6278_v28  ;;  %v8814_v48 = vld [vmem:[#allocation22_spill] sm:$0xff]  ;;  %v6601_v28 = vld [vmem:[#allocation8 + $0x49c] sm:$0xf] }
 0x477   : > { %4839 = vst [vmem:[%s7815_s4 + $0x20] sm:$0xff] %v4789_v62  ;;  %v4027_v6 = vadd.f32 %v4026_v44, %v3978_v13  ;;  %v4075_v47 = vpop.f32.mrf.mxu3  ;;  %v6553_v44 = vld [vmem:[#allocation8 + $0x31c] sm:$0xf] }
 0x478   : > { %v5766_v42 = vor.u32 %v6553_v44, %v5763_v33 }
 0x479   : > { %v4076_v9 = vadd.f32 %v4075_v47, %v4027_v6  ;;  %v3933_v63 = vpop.f32.mrf.mxu0 }
 0x47a   : > { %v3934_v40 = vadd.f32 %v3933_v63, %v8366_v12  ;;  %v3982_v61 = vpop.f32.mrf.mxu1  ;;  %4363 = vmatpush.bf16.msrb.mxu1 %v5766_v42 }
 0x47b   : > { %v4512_v23 = vmax.f32 %v4076_v9, 0.0 }
 0x47c   : > { %v3983_v45 = vadd.f32 %v3982_v61, %v3934_v40  ;;  %4128 = vmatmul.bf16.gmra.mxu0 %v7528_v11  ;;  %v6609_v40 = vld [vmem:[#allocation8 + $0x4dc] sm:$0xf] }
 0x47d   : > { %4177 = vmatmul.bf16.gmra.mxu1 %v7531_v16  ;;  %v5987_v61 = vld [vmem:[#allocation8 + $0x4f8] sm:$0xf0] }
 0x47e   : > { %v4028_v14 = vpop.f32.mrf.mxu2  ;;  %v5990_v53 = vor.u32 %v6609_v40, %v5987_v61 }
 0x47f   : > { %v4029_v1 = vadd.f32 %v4028_v14, %v3980_v29  ;;  %v4077_v21 = vpop.f32.mrf.mxu3  ;;  %v5475_v14 = vld [vmem:[#allocation8 + $0xf8] sm:$0xf0] }
 0x480   : > { %4413 = vmatpush.bf16.msrb.mxu2 %v5990_v53 }
 0x481   : > { %v4078_v38 = vadd.f32 %v4077_v21, %v4029_v1  ;;  %v3935_v2 = vpop.f32.mrf.mxu0  ;;  %v6243_v1 = vld [vmem:[#allocation8 + $0x6f8] sm:$0xf0] }
 0x482   : > { %v3936_v60 = vadd.f32 %v3935_v2, %v8366_v12  ;;  %v3984_v13 = vpop.f32.mrf.mxu1 }
 0x483   : > { %v4520_v54 = vmax.f32 %v4078_v38, 0.0  ;;  %4226 = vmatmul.bf16.gmra.mxu2 %v7538_v5 }
 0x484   : > { %v3985_v59 = vadd.f32 %v3984_v13, %v3936_v60  ;;  %4275 = vmatmul.bf16.gmra.mxu3 %v7540_v32  ;;  %v6246_v60 = vor.u32 %v6673_v22, %v6243_v1  ;;  %v8818_v22 = vld [vmem:[#allocation26_spill] sm:$0xff]  ;;  %v6593_v1 = vld [vmem:[#allocation8 + $0x45c] sm:$0xf] }
 0x485   : > { %v4790_v56 = vadd.f32 %v4520_v54, %v4512_v23 }
 0x486   : > { %v4031_v58 = vpop.f32.mrf.mxu2  ;;  %4462 = vmatpush.bf16.msrb.mxu3 %v6246_v60 }
 0x487   : > { %v4032_v37 = vadd.f32 %v4031_v58, %v3983_v45  ;;  %v4080_v41 = vpop.f32.mrf.mxu3  ;;  %v6481_v45 = vld [vmem:[#allocation8 + $0xdc] sm:$0xf] }
 0x488   : > { %v5478_v2 = vor.u32 %v6481_v45, %v5475_v14  ;;  %v5731_v58 = vld [vmem:[#allocation8 + $0x2f8] sm:$0xf0] }
 0x489   : > { %v4081_v19 = vadd.f32 %v4080_v41, %v4032_v37  ;;  %v3938_v30 = vpop.f32.mrf.mxu0  ;;  %v5734_v24 = vor.u32 %v6545_v0, %v5731_v58  ;;  %v8813_v41 = vld [vmem:[#allocation21_spill] sm:$0xff] }
 0x48a   : > { %v3939_v29 = vadd.f32 %v3938_v30, %v8366_v12  ;;  %v3987_v62 = vpop.f32.mrf.mxu1  ;;  %4315 = vmatpush.bf16.msrb.mxu0 %v5478_v2  ;;  %v6473_v30 = vld [vmem:[#allocation8 + $0x9c] sm:$0xf] }
 0x48b   : > { %v4528_v27 = vmax.f32 %v4081_v19, 0.0  ;;  %4364 = vmatpush.bf16.msrb.mxu1 %v5734_v24  ;;  %v5955_v19 = vld [vmem:[#allocation8 + $0x4b8] sm:$0xf0] }
 0x48c   : > { %v3988_v43 = vadd.f32 %v3987_v62, %v3939_v29  ;;  %4133 = vmatmul.bf16.gmra.mxu0 %v7548_v57  ;;  %v5958_v62 = vor.u32 %v6601_v28, %v5955_v19  ;;  %v8817_v14 = vld [vmem:[#allocation25_spill] sm:$0xff] }
 0x48d   : > { %v4791_v26 = vadd.f32 %v4790_v56, %v4528_v27  ;;  %4182 = vmatmul.bf16.gmra.mxu1 %v7551_v31  ;;  %v8811_v56 = vld [vmem:[#allocation19_spill] sm:$0xff]  ;;  %v5443_v27 = vld [vmem:[#allocation8 + $0xb8] sm:$0xf0] }
 0x48e   : > { %v4033_v15 = vpop.f32.mrf.mxu2  ;;  %v5446_v33 = vor.u32 %v6473_v30, %v5443_v27  ;;  %4414 = vmatpush.bf16.msrb.mxu2 %v5958_v62  ;;  %v6179_v0 = vld [vmem:[#allocation8 + $0x678] sm:$0xf0]  ;;  %v8819_v62 = vld [vmem:[#allocation27_spill] sm:$0xff]  ;;  %v8820_v27 = vld [vmem:[#allocation28_spill] sm:$0xff] }
 0x48f   : > { %v4034_v4 = vadd.f32 %v4033_v15, %v3985_v59  ;;  %v4082_v6 = vpop.f32.mrf.mxu3 }
 0x490   : > { %4316 = vmatpush.bf16.msrb.mxu0 %v5446_v33 }
 0x491   : > { %v4083_v47 = vadd.f32 %v4082_v6, %v4034_v4  ;;  %v8387_v17 = vpop.f32.mrf.mxu0  ;;  %v8815_v6 = vld [vmem:[#allocation23_spill] sm:$0xff] }
 0x492   : > { %v8389_v50 = vpop.f32.mrf.mxu1 }
 0x493   : > { %v4536_v9 = vmax.f32 %v4083_v47, 0.0  ;;  %4231 = vmatmul.bf16.gmra.mxu2 %v7558_v18  ;;  %v8816_v47 = vld [vmem:[#allocation24_spill] sm:$0xff] }
 0x494   : > { %4280 = vmatmul.bf16.gmra.mxu3 %v7560_v34 }
 0x495   : > { %v4792_v63 = vadd.f32 %v4791_v26, %v4536_v9  ;;  %v6211_v26 = vld [vmem:[#allocation8 + $0x6b8] sm:$0xf0] }
 0x496   : > { %v4036_v3 = vpop.f32.mrf.mxu2  ;;  %v6537_v9 = vld [vmem:[#allocation8 + $0x29c] sm:$0xf] }
 0x497   : > { %v4037_v21 = vadd.f32 %v4036_v3, %v3988_v43  ;;  %v4085_v38 = vpop.f32.mrf.mxu3  ;;  %v6665_v43 = vld [vmem:[#allocation8 + $0x69c] sm:$0xf] }
 0x498   : > { %v6214_v15 = vor.u32 %v6665_v43, %v6211_v26  ;;  %v6529_v43 = vld [vmem:[#allocation8 + $0x25c] sm:$0xf] }
 0x499   : > { %v4086_v13 = vadd.f32 %v4085_v38, %v4037_v21  ;;  %v8393_v23 = vpop.f32.mrf.mxu0  ;;  %v5923_v21 = vld [vmem:[#allocation8 + $0x478] sm:$0xf0] }
 0x49a   : > { %v8395_v54 = vpop.f32.mrf.mxu1  ;;  %4463 = vmatpush.bf16.msrb.mxu3 %v6214_v15  ;;  %v6465_v38 = vld [vmem:[#allocation8 + $0x5c] sm:$0xf]  ;;  %v5926_v60 = vor.u32 %v6593_v1, %v5923_v21  ;;  %v8822_v21 = vld [vmem:[#allocation30_spill] sm:$0xff] }
 0x49b   : > { %v4544_v59 = vmax.f32 %v4086_v13, 0.0  ;;  %v5411_v13 = vld [vmem:[#allocation8 + $0x78] sm:$0xf0] }
 0x49c   : > { %4138 = vmatmul.bf16.gmra.mxu0 %v8811_v56  ;;  %v5414_v24 = vor.u32 %v6465_v38, %v5411_v13  ;;  %4415 = vmatpush.bf16.msrb.mxu2 %v5926_v60  ;;  %v5667_v26 = vld [vmem:[#allocation8 + $0x278] sm:$0xf0] }
 0x49d   : > { %v8398_v25 = vadd.f32 %v4792_v63, %v4544_v59  ;;  %4187 = vmatmul.bf16.gmra.mxu1 %v8812_v55  ;;  %v5699_v63 = vld [vmem:[#allocation8 + $0x2b8] sm:$0xf0]  ;;  %v5670_v15 = vor.u32 %v6529_v43, %v5667_v26 }
 0x49e   : > { %v8401_v10 = vpop.f32.mrf.mxu2  ;;  %v5702_v61 = vor.u32 %v6537_v9, %v5699_v63  ;;  %v6657_v59 = vld [vmem:[#allocation8 + $0x65c] sm:$0xf]  ;;  %4317 = vmatpush.bf16.msrb.mxu0 %v5414_v24 }
 0x49f   : > { %v8403_v49 = vpop.f32.mrf.mxu3  ;;  %v6182_v28 = vor.u32 %v6657_v59, %v6179_v0  ;;  %v8821_v1 = vld [vmem:[#allocation29_spill] sm:$0xff] }
 0x4a0   : > { %4365 = vmatpush.bf16.msrb.mxu1 %v5702_v61  ;;  %v6585_v38 = vld [vmem:[#allocation8 + $0x41c] sm:$0xf] }
 0x4a1   : > { %v8405_v20 = vpop.f32.mrf.mxu0  ;;  %4464 = vmatpush.bf16.msrb.mxu3 %v6182_v28  ;;  %v5891_v60 = vld [vmem:[#allocation8 + $0x438] sm:$0xf0] }
 0x4a2   : > { %v8407_v37 = vpop.f32.mrf.mxu1  ;;  %v6457_v13 = vld [vmem:[#allocation8 + $0x1c] sm:$0xf]  ;;  %v5894_v0 = vor.u32 %v6585_v38, %v5891_v60  ;;  %v3941_v38 = vadd.f32 %v8387_v17, %v8366_v12 }
 0x4a3   : > { %4236 = vmatmul.bf16.gmra.mxu2 %v8813_v41  ;;  %v5379_v24 = vld [vmem:[#allocation8 + $0x38] sm:$0xf0] }
 0x4a4   : > { %4285 = vmatmul.bf16.gmra.mxu3 %v8814_v48  ;;  %4366 = vmatpush.bf16.msrb.mxu1 %v5670_v15  ;;  %v6649_v28 = vld [vmem:[#allocation8 + $0x61c] sm:$0xf]  ;;  %v5382_v43 = vor.u32 %v6457_v13, %v5379_v24 }
 0x4a5   : > { %4416 = vmatpush.bf16.msrb.mxu2 %v5894_v0  ;;  %v6521_v15 = vld [vmem:[#allocation8 + $0x21c] sm:$0xf]  ;;  %v3990_v0 = vadd.f32 %v8389_v50, %v3941_v38 }
 0x4a6   : > { %v8411_v29 = vpop.f32.mrf.mxu2  ;;  %4318 = vmatpush.bf16.msrb.mxu0 %v5382_v43 }
 0x4a7   : > { %v8413_v44 = vpop.f32.mrf.mxu3  ;;  %v4039_v43 = vadd.f32 %v8401_v10, %v3990_v0 }
 0x4a9   : > { %v8415_v42 = vpop.f32.mrf.mxu0 }
 0x4aa   : > { %v8417_v4 = vpop.f32.mrf.mxu1  ;;  %v3949_v17 = vadd.f32 %v8415_v42, %v8366_v12 }
 0x4ac   : > { %4143 = vmatmul.bf16.gmra.mxu0 %v8815_v6  ;;  %v8824_v6 = vld [vmem:[#allocation32_spill] sm:$0xff]  ;;  %v3998_v10 = vadd.f32 %v8417_v4, %v3949_v17 }
 0x4ad   : > { %4192 = vmatmul.bf16.gmra.mxu1 %v8816_v47  ;;  %v8823_v47 = vld [vmem:[#allocation31_spill] sm:$0xff] }
 0x4ae   : > { %v8421_v40 = vpop.f32.mrf.mxu2 }
 0x4af   : > { %v8423_v45 = vpop.f32.mrf.mxu3 }
 0x4b1   : > { %v8425_v3 = vpop.f32.mrf.mxu0 }
 0x4b2   : > { %v8427_v53 = vpop.f32.mrf.mxu1 }
 0x4b3   : > { %4241 = vmatmul.bf16.gmra.mxu2 %v8817_v14 }
 0x4b4   : > { %4290 = vmatmul.bf16.gmra.mxu3 %v8818_v22  ;;  %v5635_v22 = vld [vmem:[#allocation8 + $0x238] sm:$0xf0] }
 0x4b6   : > { %v8431_v2 = vpop.f32.mrf.mxu2 }
 0x4b7   : > { %v8433_v58 = vpop.f32.mrf.mxu3 }
 0x4b9   : > { %v3953_v19 = vpop.f32.mrf.mxu0 }
 0x4ba   : > { %v8435_v30 = vpop.f32.mrf.mxu1 }
 0x4bc   : > { %4148 = vmatmul.bf16.gmra.mxu0 %v8819_v62 }
 0x4bd   : > { %4197 = vmatmul.bf16.gmra.mxu1 %v8820_v27  ;;  %v6147_v27 = vld [vmem:[#allocation8 + $0x638] sm:$0xf0] }
 0x4be   : > { %v4048_v33 = vpop.f32.mrf.mxu2  ;;  %v6150_v26 = vor.u32 %v6649_v28, %v6147_v27  ;;  %v3944_v27 = vadd.f32 %v8393_v23, %v8366_v12 }
 0x4bf   : > { %v8439_v9 = vpop.f32.mrf.mxu3 }
 0x4c0   : > { %4465 = vmatpush.bf16.msrb.mxu3 %v6150_v26  ;;  %v3993_v28 = vadd.f32 %v8395_v54, %v3944_v27  ;;  %v8826_v26 = vld [vmem:[#allocation34_spill] sm:$0xff]  ;;  %v3954_v27 = vadd.f32 %v3953_v19, %v8366_v12 }
 0x4c1   : > { %v3955_v63 = vpop.f32.mrf.mxu0 }
 0x4c2   : > { %v8441_v61 = vpop.f32.mrf.mxu1 }
 0x4c3   : > { %4246 = vmatmul.bf16.gmra.mxu2 %v8821_v1  ;;  %v5638_v1 = vor.u32 %v6521_v15, %v5635_v22  ;;  %v3946_v22 = vadd.f32 %v8405_v20, %v8366_v12  ;;  %v4042_v15 = vadd.f32 %v8411_v29, %v3993_v28  ;;  %v3951_v20 = vadd.f32 %v8425_v3, %v8366_v12 }
 0x4c4   : > { %4295 = vmatmul.bf16.gmra.mxu3 %v8822_v21  ;;  %v4047_v29 = vadd.f32 %v8431_v2, %v3998_v10 }
 0x4c5   : > { %4367 = vmatpush.bf16.msrb.mxu1 %v5638_v1  ;;  %v8825_v1 = vld [vmem:[#allocation33_spill] sm:$0xff]  ;;  %v3995_v23 = vadd.f32 %v8407_v37, %v3946_v22  ;;  %v4091_v42 = vadd.f32 %v8413_v44, %v4042_v15  ;;  %v4000_v37 = vadd.f32 %v8427_v53, %v3951_v20  ;;  %v3956_v22 = vadd.f32 %v3955_v63, %v8366_v12 }
 0x4c6   : > { %v4051_v59 = vpop.f32.mrf.mxu2  ;;  %v4096_v53 = vadd.f32 %v8433_v58, %v4047_v29 }
 0x4c7   : > { %v8445_v62 = vpop.f32.mrf.mxu3  ;;  %v4044_v54 = vadd.f32 %v8421_v40, %v3995_v23  ;;  %v4049_v4 = vadd.f32 %v4048_v33, %v4000_v37  ;;  %v4560_v44 = vmax.f32 %v4091_v42, 0.0  ;;  %v4005_v2 = vadd.f32 %v8441_v61, %v3956_v22  ;;  %v8488_v42 = vld [vmem:[#allocation10] sm:$0xff] }
 0x4c8   : > { %v4576_v10 = vmax.f32 %v4096_v53, 0.0 }
 0x4c9   : > { %v3958_v14 = vpop.f32.mrf.mxu0  ;;  %v4093_v28 = vadd.f32 %v8423_v45, %v4044_v54 }
 0x4ca   : > { %v4007_v21 = vpop.f32.mrf.mxu1  ;;  %v3959_v40 = vadd.f32 %v3958_v14, %v8366_v12 }
 0x4cb   : > { %v4568_v17 = vmax.f32 %v4093_v28, 0.0 }
 0x4cc   : > { %4153 = vmatmul.bf16.gmra.mxu0 %v8823_v47  ;;  %v4008_v33 = vadd.f32 %v4007_v21, %v3959_v40 }
 0x4cd   : > { %4202 = vmatmul.bf16.gmra.mxu1 %v8824_v6 }
 0x4ce   : > { %v4053_v60 = vpop.f32.mrf.mxu2 }
 0x4cf   : > { %v4102_v48 = vpop.f32.mrf.mxu3  ;;  %v4054_v23 = vadd.f32 %v4053_v60, %v4005_v2 }
 0x4d1   : > { %v3960_v13 = vpop.f32.mrf.mxu0 }
 0x4d2   : > { %v4009_v24 = vpop.f32.mrf.mxu1  ;;  %v3961_v63 = vadd.f32 %v3960_v13, %v8366_v12 }
 0x4d3   : > { %4251 = vmatmul.bf16.gmra.mxu2 %v8825_v1  ;;  %v4088_v1 = vadd.f32 %v8403_v49, %v4039_v43  ;;  %v4003_v49 = vadd.f32 %v8435_v30, %v3954_v27  ;;  %v4098_v30 = vadd.f32 %v8439_v9, %v4049_v4  ;;  %v4103_v27 = vadd.f32 %v4102_v48, %v4054_v23 }
 0x4d4   : > { %4300 = vmatmul.bf16.gmra.mxu3 %v8826_v26  ;;  %v4010_v61 = vadd.f32 %v4009_v24, %v3961_v63 }
 0x4d5   : > { %v4552_v3 = vmax.f32 %v4088_v1, 0.0  ;;  %v4052_v43 = vadd.f32 %v4051_v59, %v4003_v49 }
 0x4d6   : > { %v4056_v50 = vpop.f32.mrf.mxu2 }
 0x4d7   : > { %v4105_v38 = vpop.f32.mrf.mxu3  ;;  %v4794_v45 = vadd.f32 %v8398_v25, %v4552_v3  ;;  %v4101_v58 = vadd.f32 %v8445_v62, %v4052_v43  ;;  %v4057_v59 = vadd.f32 %v4056_v50, %v4008_v33  ;;  %v4584_v25 = vmax.f32 %v4098_v30, 0.0 }
 0x4d8   : > { %v4600_v3 = vmax.f32 %v4103_v27, 0.0 }
 0x4d9   : > { %v3963_v0 = vpop.f32.mrf.mxu0  ;;  %v4795_v20 = vadd.f32 %v4794_v45, %v4560_v44  ;;  %v4592_v29 = vmax.f32 %v4101_v58, 0.0  ;;  %v4106_v62 = vadd.f32 %v4105_v38, %v4057_v59 }
 0x4da   : > { %v4012_v26 = vpop.f32.mrf.mxu1  ;;  %v3964_v14 = vadd.f32 %v3963_v0, %v8366_v12  ;;  %v8491_v0 = vperm.slane %v8488_v42, 6 }
 0x4db   : > { %v4796_v13 = vadd.f32 %v4795_v20, %v4568_v17  ;;  %v4608_v44 = vmax.f32 %v4106_v62, 0.0 }
 0x4dc   : > { %4158 = vmatmul.bf16.gmra.mxu0 %v7648_v35  ;;  %v4013_v9 = vadd.f32 %v4012_v26, %v3964_v14 }
 0x4dd   : > { %4207 = vmatmul.bf16.gmra.mxu1 %v7651_v46  ;;  %v4797_v37 = vadd.f32 %v4796_v13, %v4576_v10 }
 0x4de   : > { %v4058_v19 = vpop.f32.mrf.mxu2 }
 0x4df   : > { %v4107_v1 = vpop.f32.mrf.mxu3  ;;  %v4059_v21 = vadd.f32 %v4058_v19, %v4010_v61  ;;  %v4798_v22 = vadd.f32 %v4797_v37, %v4584_v25 }
 0x4e1   : > { %v3965_v15 = vpop.f32.mrf.mxu0  ;;  %v4108_v28 = vadd.f32 %v4107_v1, %v4059_v21  ;;  %v4799_v40 = vadd.f32 %v4798_v22, %v4592_v29 }
 0x4e2   : > { %v4014_v54 = vpop.f32.mrf.mxu1  ;;  %v3966_v49 = vadd.f32 %v3965_v15, %v8366_v12 }
 0x4e3   : > { %4256 = vmatmul.bf16.gmra.mxu2 %v7658_v8  ;;  %v4800_v2 = vadd.f32 %v4799_v40, %v4600_v3  ;;  %v4616_v43 = vmax.f32 %v4108_v28, 0.0 }
 0x4e4   : > { %4305 = vmatmul.bf16.gmra.mxu3 %v7662_v7  ;;  %v4015_v38 = vadd.f32 %v4014_v54, %v3966_v49 }
 0x4e5   : > { %v4801_v45 = vadd.f32 %v4800_v2, %v4608_v44 }
 0x4e6   : > { %v4061_v60 = vpop.f32.mrf.mxu2 }
 0x4e7   : > { %v4062_v24 = vadd.f32 %v4061_v60, %v4013_v9  ;;  %v4110_v50 = vpop.f32.mrf.mxu3  ;;  %v4802_v30 = vadd.f32 %v4801_v45, %v4616_v43 }
 0x4e9   : > { %v4124_v4 = vpop.f32.mrf.mxu0  ;;  %v4111_v19 = vadd.f32 %v4110_v50, %v4062_v24 }
 0x4ea   : > { %v4125_v48 = vadd.f32 %v4124_v4, %v8491_v0  ;;  %v4173_v26 = vpop.f32.mrf.mxu1 }
 0x4eb   : > { %v4624_v1 = vmax.f32 %v4111_v19, 0.0 }
 0x4ec   : > { %v4174_v53 = vadd.f32 %v4173_v26, %v4125_v48  ;;  %4319 = vmatmul.bf16.vlgmr.msrb.gmra.mxu0 %v7508_v36 }
 0x4ed   : > { %4368 = vmatmul.bf16.vlgmr.msrb.gmra.mxu1 %v7511_v39  ;;  %v4803_v20 = vadd.f32 %v4802_v30, %v4624_v1 }
 0x4ee   : > { %v4063_v63 = vpop.f32.mrf.mxu2 }
 0x4ef   : > { %v4064_v12 = vadd.f32 %v4063_v63, %v4015_v38  ;;  %v4112_v17 = vpop.f32.mrf.mxu3 }
 0x4f1   : > { %v4113_v33 = vadd.f32 %v4112_v17, %v4064_v12  ;;  %v4126_v23 = vpop.f32.mrf.mxu0 }
 0x4f2   : > { %v4127_v14 = vadd.f32 %v4126_v23, %v8491_v0  ;;  %v4175_v15 = vpop.f32.mrf.mxu1 }
 0x4f3   : > { %v4632_v10 = vmax.f32 %v4113_v33, 0.0  ;;  %4417 = vmatmul.bf16.vlgmr.msrb.gmra.mxu2 %v7518_v51 }
 0x4f4   : > { %v4176_v36 = vadd.f32 %v4175_v15, %v4127_v14  ;;  %4466 = vmatmul.bf16.vlgmr.msrb.gmra.mxu3 %v7520_v52 }
 0x4f5   : > { %v4804_v39 = vadd.f32 %v4803_v20, %v4632_v10 }
 0x4f6   : > { %v4222_v54 = vpop.f32.mrf.mxu2 }
 0x4f7   : > { %4840 = vst [vmem:[%s7815_s4 + $0x28] sm:$0xff] %v4804_v39  ;;  %v4223_v58 = vadd.f32 %v4222_v54, %v4174_v53  ;;  %v4271_v61 = vpop.f32.mrf.mxu3 }
 0x4f9   : > { %v4272_v59 = vadd.f32 %v4271_v61, %v4223_v58  ;;  %v4129_v13 = vpop.f32.mrf.mxu0  ;;  %v8828_v58 = vld [vmem:[#allocation23_spill] sm:$0xff]  ;;  %v8829_v61 = vld [vmem:[#allocation24_spill] sm:$0xff] }
 0x4fa   : > { %v4130_v25 = vadd.f32 %v4129_v13, %v8491_v0  ;;  %v4178_v27 = vpop.f32.mrf.mxu1 }
 0x4fb   : > { %v4513_v24 = vmax.f32 %v4272_v59, 0.0 }
 0x4fc   : > { %v4179_v9 = vadd.f32 %v4178_v27, %v4130_v25  ;;  %4324 = vmatmul.bf16.gmra.mxu0 %v7528_v11  ;;  %v8830_v25 = vld [vmem:[#allocation25_spill] sm:$0xff]  ;;  %v8831_v27 = vld [vmem:[#allocation26_spill] sm:$0xff] }
 0x4fd   : > { %4373 = vmatmul.bf16.gmra.mxu1 %v7531_v16 }
 0x4fe   : > { %v4224_v21 = vpop.f32.mrf.mxu2 }
 0x4ff   : > { %v4225_v51 = vadd.f32 %v4224_v21, %v4176_v36  ;;  %v4273_v60 = vpop.f32.mrf.mxu3 }
 0x501   : > { %v4274_v37 = vadd.f32 %v4273_v60, %v4225_v51  ;;  %v4131_v52 = vpop.f32.mrf.mxu0  ;;  %v8832_v60 = vld [vmem:[#allocation27_spill] sm:$0xff] }
 0x502   : > { %v4132_v29 = vadd.f32 %v4131_v52, %v8491_v0  ;;  %v4180_v62 = vpop.f32.mrf.mxu1 }
 0x503   : > { %v4521_v50 = vmax.f32 %v4274_v37, 0.0  ;;  %4422 = vmatmul.bf16.gmra.mxu2 %v7538_v5  ;;  %v8833_v37 = vld [vmem:[#allocation28_spill] sm:$0xff] }
 0x504   : > { %v4181_v22 = vadd.f32 %v4180_v62, %v4132_v29  ;;  %4471 = vmatmul.bf16.gmra.mxu3 %v7540_v32 }
 0x505   : > { %v4805_v3 = vadd.f32 %v4521_v50, %v4513_v24  ;;  %v8834_v50 = vld [vmem:[#allocation29_spill] sm:$0xff] }
 0x506   : > { %v4227_v28 = vpop.f32.mrf.mxu2 }
 0x507   : > { %v4228_v11 = vadd.f32 %v4227_v28, %v4179_v9  ;;  %v4276_v49 = vpop.f32.mrf.mxu3 }
 0x509   : > { %v4277_v16 = vadd.f32 %v4276_v49, %v4228_v11  ;;  %v4134_v4 = vpop.f32.mrf.mxu0 }
 0x50a   : > { %v4135_v48 = vadd.f32 %v4134_v4, %v8491_v0  ;;  %v4183_v26 = vpop.f32.mrf.mxu1 }
 0x50b   : > { %v4529_v40 = vmax.f32 %v4277_v16, 0.0 }
 0x50c   : > { %v4184_v44 = vadd.f32 %v4183_v26, %v4135_v48  ;;  %4329 = vmatmul.bf16.gmra.mxu0 %v7548_v57 }
 0x50d   : > { %v4806_v19 = vadd.f32 %v4805_v3, %v4529_v40  ;;  %4378 = vmatmul.bf16.gmra.mxu1 %v7551_v31 }
 0x50e   : > { %v4229_v5 = vpop.f32.mrf.mxu2 }
 0x50f   : > { %v4230_v53 = vadd.f32 %v4229_v5, %v4181_v22  ;;  %v4278_v2 = vpop.f32.mrf.mxu3  ;;  %v8835_v22 = vld [vmem:[#allocation30_spill] sm:$0xff] }
 0x511   : > { %v4279_v32 = vadd.f32 %v4278_v2, %v4230_v53  ;;  %v4136_v43 = vpop.f32.mrf.mxu0  ;;  %v8836_v53 = vld [vmem:[#allocation33_spill] sm:$0xff] }
 0x512   : > { %v4185_v38 = vpop.f32.mrf.mxu1  ;;  %v4137_v16 = vadd.f32 %v4136_v43, %v8491_v0 }
 0x513   : > { %v4537_v63 = vmax.f32 %v4279_v32, 0.0  ;;  %4427 = vmatmul.bf16.gmra.mxu2 %v7558_v18 }
 0x514   : > { %4476 = vmatmul.bf16.gmra.mxu3 %v7560_v34  ;;  %v8827_v34 = vld [vmem:[#allocation22_spill] sm:$0xff] }
 0x515   : > { %v4807_v45 = vadd.f32 %v4806_v19, %v4537_v63  ;;  %v8837_v63 = vld [vmem:[#allocation34_spill] sm:$0xff] }
 0x516   : > { %v4232_v1 = vpop.f32.mrf.mxu2 }
 0x517   : > { %v4233_v12 = vadd.f32 %v4232_v1, %v4184_v44  ;;  %v4281_v17 = vpop.f32.mrf.mxu3  ;;  %v4186_v44 = vadd.f32 %v4185_v38, %v4137_v16  ;;  %v8546_v16 = vperm.slane %v8488_v42, 7 }
 0x519   : > { %v4282_v30 = vadd.f32 %v4281_v17, %v4233_v12  ;;  %v4139_v57 = vpop.f32.mrf.mxu0 }
 0x51a   : > { %v4188_v33 = vpop.f32.mrf.mxu1  ;;  %v4140_v26 = vadd.f32 %v4139_v57, %v8491_v0 }
 0x51b   : > { %v4545_v23 = vmax.f32 %v4282_v30, 0.0 }
 0x51c   : > { %4334 = vmatmul.bf16.gmra.mxu0 %v8811_v56  ;;  %v4189_v2 = vadd.f32 %v4188_v33, %v4140_v26 }
 0x51d   : > { %v8513_v31 = vadd.f32 %v4807_v45, %v4545_v23  ;;  %4383 = vmatmul.bf16.gmra.mxu1 %v8812_v55 }
 0x51e   : > { %v4234_v14 = vpop.f32.mrf.mxu2 }
 0x51f   : > { %v4283_v15 = vpop.f32.mrf.mxu3  ;;  %v4235_v32 = vadd.f32 %v4234_v14, %v4186_v44 }
 0x521   : > { %v4141_v20 = vpop.f32.mrf.mxu0  ;;  %v4284_v17 = vadd.f32 %v4283_v15, %v4235_v32 }
 0x522   : > { %v4190_v18 = vpop.f32.mrf.mxu1  ;;  %v4142_v19 = vadd.f32 %v4141_v20, %v8491_v0 }
 0x523   : > { %4432 = vmatmul.bf16.gmra.mxu2 %v8813_v41 }
 0x524   : > { %4481 = vmatmul.bf16.gmra.mxu3 %v8827_v34 }
 0x526   : > { %v4237_v10 = vpop.f32.mrf.mxu2 }
 0x527   : > { %v4286_v36 = vpop.f32.mrf.mxu3  ;;  %v4238_v45 = vadd.f32 %v4237_v10, %v4189_v2 }
 0x529   : > { %v4144_v39 = vpop.f32.mrf.mxu0  ;;  %v4287_v20 = vadd.f32 %v4286_v36, %v4238_v45 }
 0x52a   : > { %v4193_v54 = vpop.f32.mrf.mxu1 }
 0x52b   : > { %v4561_v15 = vmax.f32 %v4287_v20, 0.0 }
 0x52c   : > { %4339 = vmatmul.bf16.gmra.mxu0 %v8828_v58 }
 0x52d   : > { %4388 = vmatmul.bf16.gmra.mxu1 %v8829_v61  ;;  %v4553_v61 = vmax.f32 %v4284_v17, 0.0 }
 0x52e   : > { %v4239_v56 = vpop.f32.mrf.mxu2 }
 0x52f   : > { %v4288_v59 = vpop.f32.mrf.mxu3 }
 0x531   : > { %v4146_v13 = vpop.f32.mrf.mxu0 }
 0x532   : > { %v4195_v55 = vpop.f32.mrf.mxu1  ;;  %v4147_v1 = vadd.f32 %v4146_v13, %v8491_v0 }
 0x533   : > { %4437 = vmatmul.bf16.gmra.mxu2 %v8830_v25 }
 0x534   : > { %4486 = vmatmul.bf16.gmra.mxu3 %v8831_v27  ;;  %v4196_v33 = vadd.f32 %v4195_v55, %v4147_v1 }
 0x536   : > { %v4242_v9 = vpop.f32.mrf.mxu2 }
 0x537   : > { %v4291_v41 = vpop.f32.mrf.mxu3 }
 0x539   : > { %v4149_v21 = vpop.f32.mrf.mxu0 }
 0x53a   : > { %v4198_v51 = vpop.f32.mrf.mxu1  ;;  %v4150_v57 = vadd.f32 %v4149_v21, %v8491_v0 }
 0x53c   : > { %4344 = vmatmul.bf16.gmra.mxu0 %v8832_v60 }
 0x53d   : > { %4393 = vmatmul.bf16.gmra.mxu1 %v8833_v37 }
 0x53e   : > { %v4244_v52 = vpop.f32.mrf.mxu2 }
 0x53f   : > { %v4293_v29 = vpop.f32.mrf.mxu3  ;;  %v4245_v10 = vadd.f32 %v4244_v52, %v4196_v33 }
 0x541   : > { %v4151_v62 = vpop.f32.mrf.mxu0 }
 0x542   : > { %v4200_v24 = vpop.f32.mrf.mxu1  ;;  %v4152_v58 = vadd.f32 %v4151_v62, %v8491_v0 }
 0x543   : > { %4442 = vmatmul.bf16.gmra.mxu2 %v8834_v50 }
 0x544   : > { %4491 = vmatmul.bf16.gmra.mxu3 %v8835_v22  ;;  %v4201_v25 = vadd.f32 %v4200_v24, %v4152_v58 }
 0x546   : > { %v4247_v3 = vpop.f32.mrf.mxu2 }
 0x547   : > { %v4296_v28 = vpop.f32.mrf.mxu3 }
 0x549   : > { %v4154_v11 = vpop.f32.mrf.mxu0 }
 0x54a   : > { %v4203_v49 = vpop.f32.mrf.mxu1  ;;  %v4155_v13 = vadd.f32 %v4154_v11, %v8491_v0 }
 0x54c   : > { %4349 = vmatmul.bf16.gmra.mxu0 %v8823_v47  ;;  %v4145_v47 = vadd.f32 %v4144_v39, %v8491_v0  ;;  %v4204_v60 = vadd.f32 %v4203_v49, %v4155_v13 }
 0x54d   : > { %4398 = vmatmul.bf16.gmra.mxu1 %v8824_v6  ;;  %v4191_v6 = vadd.f32 %v4190_v18, %v4142_v19  ;;  %v4199_v18 = vadd.f32 %v4198_v51, %v4150_v57 }
 0x54e   : > { %v4249_v4 = vpop.f32.mrf.mxu2  ;;  %v4194_v38 = vadd.f32 %v4193_v54, %v4145_v47 }
 0x54f   : > { %v4298_v48 = vpop.f32.mrf.mxu3  ;;  %v4240_v30 = vadd.f32 %v4239_v56, %v4191_v6  ;;  %v4248_v36 = vadd.f32 %v4247_v3, %v4199_v18 }
 0x550   : > { %v4243_v14 = vadd.f32 %v4242_v9, %v4194_v38  ;;  %v4809_v9 = vadd.f32 %v8513_v31, %v4553_v61 }
 0x551   : > { %v4156_v40 = vpop.f32.mrf.mxu0  ;;  %v4289_v39 = vadd.f32 %v4288_v59, %v4240_v30  ;;  %v4294_v59 = vadd.f32 %v4293_v29, %v4245_v10  ;;  %v4297_v50 = vadd.f32 %v4296_v28, %v4248_v36 }
 0x552   : > { %v4205_v5 = vpop.f32.mrf.mxu1  ;;  %v4292_v56 = vadd.f32 %v4291_v41, %v4243_v14  ;;  %v4157_v55 = vadd.f32 %v4156_v40, %v8491_v0  ;;  %v4810_v52 = vadd.f32 %v4809_v9, %v4561_v15 }
 0x553   : > { %4447 = vmatmul.bf16.gmra.mxu2 %v8836_v53  ;;  %v4569_v21 = vmax.f32 %v4289_v39, 0.0  ;;  %v4585_v3 = vmax.f32 %v4294_v59, 0.0  ;;  %v4593_v26 = vmax.f32 %v4297_v50, 0.0 }
 0x554   : > { %4496 = vmatmul.bf16.gmra.mxu3 %v8837_v63  ;;  %v4206_v22 = vadd.f32 %v4205_v5, %v4157_v55 }
 0x555   : > { %v4811_v24 = vadd.f32 %v4810_v52, %v4569_v21 }
 0x556   : > { %v4252_v43 = vpop.f32.mrf.mxu2 }
 0x557   : > { %v4301_v12 = vpop.f32.mrf.mxu3  ;;  %v4253_v41 = vadd.f32 %v4252_v43, %v4204_v60 }
 0x559   : > { %v4159_v23 = vpop.f32.mrf.mxu0  ;;  %v4302_v40 = vadd.f32 %v4301_v12, %v4253_v41 }
 0x55a   : > { %v4208_v34 = vpop.f32.mrf.mxu1  ;;  %v4160_v51 = vadd.f32 %v4159_v23, %v8491_v0 }
 0x55b   : > { %v4609_v63 = vmax.f32 %v4302_v40, 0.0 }
 0x55c   : > { %4354 = vmatmul.bf16.gmra.mxu0 %v7648_v35  ;;  %v4250_v35 = vadd.f32 %v4249_v4, %v4201_v25  ;;  %v4209_v11 = vadd.f32 %v4208_v34, %v4160_v51 }
 0x55d   : > { %4403 = vmatmul.bf16.gmra.mxu1 %v7651_v46  ;;  %v4577_v46 = vmax.f32 %v4292_v56, 0.0 }
 0x55e   : > { %v4254_v54 = vpop.f32.mrf.mxu2  ;;  %v4299_v31 = vadd.f32 %v4298_v48, %v4250_v35 }
 0x55f   : > { %v4303_v27 = vpop.f32.mrf.mxu3  ;;  %v4255_v29 = vadd.f32 %v4254_v54, %v4206_v22  ;;  %v4812_v4 = vadd.f32 %v4811_v24, %v4577_v46 }
 0x560   : > { %v4601_v5 = vmax.f32 %v4299_v31, 0.0 }
 0x561   : > { %v4161_v37 = vpop.f32.mrf.mxu0  ;;  %v4813_v19 = vadd.f32 %v4812_v4, %v4585_v3  ;;  %v4304_v53 = vadd.f32 %v4303_v27, %v4255_v29 }
 0x562   : > { %v4210_v62 = vpop.f32.mrf.mxu1 }
 0x563   : > { %4452 = vmatmul.bf16.gmra.mxu2 %v7658_v8  ;;  %v4162_v8 = vadd.f32 %v4161_v37, %v8491_v0  ;;  %v4814_v32 = vadd.f32 %v4813_v19, %v4593_v26  ;;  %v4617_v45 = vmax.f32 %v4304_v53, 0.0 }
 0x564   : > { %4501 = vmatmul.bf16.gmra.mxu3 %v7662_v7 }
 0x565   : > { %v4815_v42 = vadd.f32 %v4814_v32, %v4601_v5  ;;  %v4211_v43 = vadd.f32 %v4210_v62, %v4162_v8 }
 0x566   : > { %v4257_v49 = vpop.f32.mrf.mxu2 }
 0x567   : > { %v4258_v44 = vadd.f32 %v4257_v49, %v4209_v11  ;;  %v4306_v28 = vpop.f32.mrf.mxu3  ;;  %v4816_v12 = vadd.f32 %v4815_v42, %v4609_v63 }
 0x569   : > { %v4320_v2 = vpop.f32.mrf.mxu0  ;;  %v4307_v47 = vadd.f32 %v4306_v28, %v4258_v44  ;;  %v4817_v57 = vadd.f32 %v4816_v12, %v4617_v45 }
 0x56a   : > { %v4321_v7 = vadd.f32 %v4320_v2, %v8546_v16  ;;  %v4369_v48 = vpop.f32.mrf.mxu1 }
 0x56b   : > { %v4625_v17 = vmax.f32 %v4307_v47, 0.0 }
 0x56c   : > { %v4370_v6 = vadd.f32 %v4369_v48, %v4321_v7 }
 0x56d   : > { %v4818_v33 = vadd.f32 %v4817_v57, %v4625_v17 }
 0x56e   : > { %v4259_v1 = vpop.f32.mrf.mxu2 }
 0x56f   : > { %v4260_v30 = vadd.f32 %v4259_v1, %v4211_v43  ;;  %v4308_v38 = vpop.f32.mrf.mxu3 }
 0x571   : > { %v4309_v23 = vadd.f32 %v4308_v38, %v4260_v30  ;;  %v4322_v0 = vpop.f32.mrf.mxu0 }
 0x572   : > { %v4323_v20 = vadd.f32 %v4322_v0, %v8546_v16  ;;  %v4371_v34 = vpop.f32.mrf.mxu1 }
 0x573   : > { %v4633_v14 = vmax.f32 %v4309_v23, 0.0 }
 0x574   : > { %v4372_v58 = vadd.f32 %v4371_v34, %v4323_v20 }
 0x575   : > { %v4819_v61 = vadd.f32 %v4818_v33, %v4633_v14 }
 0x576   : > { %v4418_v39 = vpop.f32.mrf.mxu2 }
 0x577   : > { %4841 = vst [vmem:[%s7815_s4 + $0x30] sm:$0xff] %v4819_v61  ;;  %v4419_v18 = vadd.f32 %v4418_v39, %v4370_v6  ;;  %v4467_v10 = vpop.f32.mrf.mxu3 }
 0x579   : > { %v4468_v13 = vadd.f32 %v4467_v10, %v4419_v18  ;;  %v4325_v15 = vpop.f32.mrf.mxu0 }
 0x57a   : > { %v4326_v54 = vadd.f32 %v4325_v15, %v8546_v16  ;;  %v4374_v56 = vpop.f32.mrf.mxu1 }
 0x57b   : > { %v4514_v35 = vmax.f32 %v4468_v13, 0.0 }
 0x57c   : > { %v4375_v25 = vadd.f32 %v4374_v56, %v4326_v54 }
 0x57e   : > { %v4420_v36 = vpop.f32.mrf.mxu2 }
 0x57f   : > { %v4421_v55 = vadd.f32 %v4420_v36, %v4372_v58  ;;  %v4469_v27 = vpop.f32.mrf.mxu3 }
 0x581   : > { %v4470_v9 = vadd.f32 %v4469_v27, %v4421_v55  ;;  %v4327_v21 = vpop.f32.mrf.mxu0 }
 0x582   : > { %v4328_v59 = vadd.f32 %v4327_v21, %v8546_v16  ;;  %v4376_v60 = vpop.f32.mrf.mxu1 }
 0x583   : > { %v4522_v51 = vmax.f32 %v4470_v9, 0.0 }
 0x584   : > { %v4377_v37 = vadd.f32 %v4376_v60, %v4328_v59 }
 0x585   : > { %v4820_v52 = vadd.f32 %v4522_v51, %v4514_v35 }
 0x586   : > { %v4423_v62 = vpop.f32.mrf.mxu2 }
 0x587   : > { %v4424_v46 = vadd.f32 %v4423_v62, %v4375_v25  ;;  %v4472_v50 = vpop.f32.mrf.mxu3 }
 0x589   : > { %v4473_v22 = vadd.f32 %v4472_v50, %v4424_v46  ;;  %v4330_v41 = vpop.f32.mrf.mxu0 }
 0x58a   : > { %v4331_v24 = vadd.f32 %v4330_v41, %v8546_v16  ;;  %v4379_v3 = vpop.f32.mrf.mxu1 }
 0x58b   : > { %v4530_v31 = vmax.f32 %v4473_v22, 0.0 }
 0x58c   : > { %v4380_v11 = vadd.f32 %v4379_v3, %v4331_v24  ;;  %v367_v24 = vld [vmem:[%s7277_s20] sm:$0xf] }
 0x58d   : > { %v4821_v29 = vadd.f32 %v4820_v52, %v4530_v31  ;;  %4635 = vst [vmem:[%s7368_s3] sm:$0xf] %v367_v24 }
 0x58e   : > { %v4425_v49 = vpop.f32.mrf.mxu2 }
 0x58f   : > { %v4426_v4 = vadd.f32 %v4425_v49, %v4377_v37  ;;  %v4474_v26 = vpop.f32.mrf.mxu3  ;;  %v369_v49 = vld [vmem:[%s7277_s20 + $0x8] sm:$0xf] }
 0x590   : > { %4637 = vst [vmem:[%s7368_s3 + $0x28] sm:$0xf] %v369_v49 }
 0x591   : > { %v4475_v40 = vadd.f32 %v4474_v26, %v4426_v4  ;;  %v4332_v44 = vpop.f32.mrf.mxu0 }
 0x592   : > { %v4381_v28 = vpop.f32.mrf.mxu1  ;;  %v4333_v54 = vadd.f32 %v4332_v44, %v8546_v16  ;;  %v370_v44 = vld [vmem:[%s7277_s20 + $0xc] sm:$0xf] }
 0x593   : > { %v4538_v19 = vmax.f32 %v4475_v40, 0.0  ;;  %4638 = vst [vmem:[%s7368_s3 + $0x3c] sm:$0xf] %v370_v44 }
 0x594   : > { %v4382_v27 = vadd.f32 %v4381_v28, %v4333_v54 }
 0x595   : > { %v4822_v5 = vadd.f32 %v4821_v29, %v4538_v19 }
 0x596   : > { %v4428_v53 = vpop.f32.mrf.mxu2 }
 0x597   : > { %v4429_v8 = vadd.f32 %v4428_v53, %v4380_v11  ;;  %v4477_v2 = vpop.f32.mrf.mxu3  ;;  %v368_v11 = vld [vmem:[%s7277_s20 + $0x4] sm:$0xf]  ;;  %v371_v53 = vld [vmem:[%s7277_s20 + $0x10] sm:$0xf] }
 0x598   : > { %4636 = vst [vmem:[%s7368_s3 + $0x14] sm:$0xf] %v368_v11 }
 0x599   : > { %v4478_v7 = vadd.f32 %v4477_v2, %v4429_v8  ;;  %v4335_v48 = vpop.f32.mrf.mxu0  ;;  %4639 = vst [vmem:[%s7368_s3 + $0x50] sm:$0xf] %v371_v53 }
 0x59a   : > { %v4384_v32 = vpop.f32.mrf.mxu1  ;;  %v4336_v55 = vadd.f32 %v4335_v48, %v8546_v16  ;;  %v372_v48 = vld [vmem:[%s7277_s20 + $0x14] sm:$0xf] }
 0x59b   : > { %v4546_v63 = vmax.f32 %v4478_v7, 0.0  ;;  %4640 = vst [vmem:[%s7368_s3 + $0x64] sm:$0xf] %v372_v48 }
 0x59c   : > { %v4385_v59 = vadd.f32 %v4384_v32, %v4336_v55 }
 0x59d   : > { %v8555_v47 = vadd.f32 %v4822_v5, %v4546_v63 }
 0x59e   : > { %v4430_v6 = vpop.f32.mrf.mxu2 }
 0x59f   : > { %v4479_v42 = vpop.f32.mrf.mxu3  ;;  %v4431_v60 = vadd.f32 %v4430_v6, %v4382_v27  ;;  %v373_v6 = vld [vmem:[%s7277_s20 + $0x18] sm:$0xf] }
 0x5a0   : > { %4641 = vst [vmem:[%s7368_s3 + $0x78] sm:$0xf] %v373_v6 }
 0x5a1   : > { %v4337_v45 = vpop.f32.mrf.mxu0  ;;  %v4480_v50 = vadd.f32 %v4479_v42, %v4431_v60  ;;  %v381_v60 = vld [vmem:[%s7277_s20 + $0x38] sm:$0xf] }
 0x5a2   : > { %v4386_v43 = vpop.f32.mrf.mxu1  ;;  %v4338_v9 = vadd.f32 %v4337_v45, %v8546_v16  ;;  %4649 = vst [vmem:[%s7368_s3 + $0x118] sm:$0xf] %v381_v60 }
 0x5a3   : > { %v4554_v28 = vmax.f32 %v4480_v50, 0.0  ;;  %v382_v50 = vld [vmem:[%s7277_s20 + $0x3c] sm:$0xf] }
 0x5a4   : > { %v4387_v51 = vadd.f32 %v4386_v43, %v4338_v9  ;;  %4650 = vst [vmem:[%s7368_s3 + $0x12c] sm:$0xf] %v382_v50 }
 0x5a6   : > { %v4433_v1 = vpop.f32.mrf.mxu2 }
 0x5a7   : > { %v4482_v12 = vpop.f32.mrf.mxu3  ;;  %v4434_v37 = vadd.f32 %v4433_v1, %v4385_v59 }
 0x5a9   : > { %v4340_v17 = vpop.f32.mrf.mxu0  ;;  %v4483_v29 = vadd.f32 %v4482_v12, %v4434_v37 }
 0x5aa   : > { %v4389_v30 = vpop.f32.mrf.mxu1  ;;  %v4341_v35 = vadd.f32 %v4340_v17, %v8546_v16  ;;  %v374_v17 = vld [vmem:[%s7277_s20 + $0x1c] sm:$0xf] }
 0x5ab   : > { %v4562_v32 = vmax.f32 %v4483_v29, 0.0  ;;  %4642 = vst [vmem:[%s7368_s3 + $0x8c] sm:$0xf] %v374_v17 }
 0x5ac   : > { %v4390_v3 = vadd.f32 %v4389_v30, %v4341_v35  ;;  %v4824_v30 = vadd.f32 %v8555_v47, %v4554_v28 }
 0x5ae   : > { %v4435_v38 = vpop.f32.mrf.mxu2  ;;  %v4825_v47 = vadd.f32 %v4824_v30, %v4562_v32 }
 0x5af   : > { %v4484_v57 = vpop.f32.mrf.mxu3  ;;  %v4436_v22 = vadd.f32 %v4435_v38, %v4387_v51 }
 0x5b1   : > { %v4342_v23 = vpop.f32.mrf.mxu0  ;;  %v4485_v19 = vadd.f32 %v4484_v57, %v4436_v22  ;;  %v375_v57 = vld [vmem:[%s7277_s20 + $0x20] sm:$0xf] }
 0x5b2   : > { %v4391_v0 = vpop.f32.mrf.mxu1  ;;  %v4343_v62 = vadd.f32 %v4342_v23, %v8546_v16  ;;  %4643 = vst [vmem:[%s7368_s3 + $0xa0] sm:$0xf] %v375_v57 }
 0x5b3   : > { %v4570_v38 = vmax.f32 %v4485_v19, 0.0 }
 0x5b4   : > { %v4392_v4 = vadd.f32 %v4391_v0, %v4343_v62 }
 0x5b5   : > { %v4826_v54 = vadd.f32 %v4825_v47, %v4570_v38 }
 0x5b6   : > { %v4438_v20 = vpop.f32.mrf.mxu2 }
 0x5b7   : > { %v4487_v34 = vpop.f32.mrf.mxu3  ;;  %v4439_v26 = vadd.f32 %v4438_v20, %v4390_v3 }
 0x5b9   : > { %v4345_v33 = vpop.f32.mrf.mxu0  ;;  %v4488_v42 = vadd.f32 %v4487_v34, %v4439_v26 }
 0x5ba   : > { %v4394_v14 = vpop.f32.mrf.mxu1  ;;  %v4346_v31 = vadd.f32 %v4345_v33, %v8546_v16  ;;  %v376_v33 = vld [vmem:[%s7277_s20 + $0x24] sm:$0xf] }
 0x5bb   : > { %4644 = vst [vmem:[%s7368_s3 + $0xb4] sm:$0xf] %v376_v33 }
 0x5bc   : > { %v4395_v8 = vadd.f32 %v4394_v14, %v4346_v31 }
 0x5be   : > { %v4440_v58 = vpop.f32.mrf.mxu2 }
 0x5bf   : > { %v4489_v61 = vpop.f32.mrf.mxu3  ;;  %v4441_v2 = vadd.f32 %v4440_v58, %v4392_v4  ;;  %v377_v58 = vld [vmem:[%s7277_s20 + $0x28] sm:$0xf] }
 0x5c0   : > { %4645 = vst [vmem:[%s7368_s3 + $0xc8] sm:$0xf] %v377_v58 }
 0x5c1   : > { %v4347_v39 = vpop.f32.mrf.mxu0  ;;  %v4490_v23 = vadd.f32 %v4489_v61, %v4441_v2  ;;  %v4578_v61 = vmax.f32 %v4488_v42, 0.0 }
 0x5c2   : > { %v4396_v18 = vpop.f32.mrf.mxu1  ;;  %v4348_v40 = vadd.f32 %v4347_v39, %v8546_v16 }
 0x5c3   : > { %v4827_v35 = vadd.f32 %v4826_v54, %v4578_v61 }
 0x5c4   : > { %v4397_v45 = vadd.f32 %v4396_v18, %v4348_v40 }
 0x5c6   : > { %v4443_v10 = vpop.f32.mrf.mxu2 }
 0x5c7   : > { %v8557_v13 = vpop.f32.mrf.mxu3  ;;  %v4444_v43 = vadd.f32 %v4443_v10, %v4395_v8 }
 0x5c9   : > { %v4350_v15 = vpop.f32.mrf.mxu0  ;;  %v4493_v39 = vadd.f32 %v8557_v13, %v4444_v43  ;;  %v380_v13 = vld [vmem:[%s7277_s20 + $0x34] sm:$0xf] }
 0x5ca   : > { %v4399_v56 = vpop.f32.mrf.mxu1  ;;  %v4351_v7 = vadd.f32 %v4350_v15, %v8546_v16  ;;  %v378_v15 = vld [vmem:[%s7277_s20 + $0x2c] sm:$0xf]  ;;  %4648 = vst [vmem:[%s7368_s3 + $0x104] sm:$0xf] %v380_v13 }
 0x5cb   : > { %4646 = vst [vmem:[%s7368_s3 + $0xdc] sm:$0xf] %v378_v15  ;;  %v4594_v51 = vmax.f32 %v4493_v39, 0.0 }
 0x5cc   : > { %v4400_v0 = vadd.f32 %v4399_v56, %v4351_v7  ;;  %v379_v56 = vld [vmem:[%s7277_s20 + $0x30] sm:$0xf] }
 0x5cd   : > { %4647 = vst [vmem:[%s7368_s3 + $0xf0] sm:$0xf] %v379_v56 }
 0x5ce   : > { %v4445_v25 = vpop.f32.mrf.mxu2 }
 0x5cf   : > { %v8560_v36 = vpop.f32.mrf.mxu3  ;;  %v4446_v20 = vadd.f32 %v4445_v25, %v4397_v45  ;;  %v4586_v25 = vmax.f32 %v4490_v23, 0.0 }
 0x5d1   : > { %v4352_v21 = vpop.f32.mrf.mxu0  ;;  %v4495_v55 = vadd.f32 %v8560_v36, %v4446_v20  ;;  %v4828_v36 = vadd.f32 %v4827_v35, %v4586_v25 }
 0x5d2   : > { %v4401_v41 = vpop.f32.mrf.mxu1  ;;  %v4353_v1 = vadd.f32 %v4352_v21, %v8546_v16 }
 0x5d3   : > { %v4602_v22 = vmax.f32 %v4495_v55, 0.0 }
 0x5d4   : > { %v4402_v18 = vadd.f32 %v4401_v41, %v4353_v1 }
 0x5d6   : > { %v4448_v52 = vpop.f32.mrf.mxu2 }
 0x5d7   : > { %v8566_v46 = vpop.f32.mrf.mxu3  ;;  %v4449_v10 = vadd.f32 %v4448_v52, %v4400_v0 }
 0x5d9   : > { %v4355_v5 = vpop.f32.mrf.mxu0  ;;  %v4498_v37 = vadd.f32 %v8566_v46, %v4449_v10  ;;  %v4829_v46 = vadd.f32 %v4828_v36, %v4594_v51 }
 0x5da   : > { %v4356_v34 = vadd.f32 %v4355_v5, %v8546_v16  ;;  %v4404_v14 = vpop.f32.mrf.mxu1 }
 0x5db   : > { %v4610_v3 = vmax.f32 %v4498_v37, 0.0 }
 0x5dc   : > { %v4405_v27 = vadd.f32 %v4404_v14, %v4356_v34 }
 0x5de   : > { %v4450_v63 = vpop.f32.mrf.mxu2 }
 0x5df   : > { %v4499_v12 = vpop.f32.mrf.mxu3  ;;  %v4451_v9 = vadd.f32 %v4450_v63, %v4402_v18 }
 0x5e1   : > { %v4357_v21 = vpop.f32.mrf.mxu0  ;;  %v4500_v41 = vadd.f32 %v4499_v12, %v4451_v9 }
 0x5e2   : > { %v4358_v24 = vadd.f32 %v4357_v21, %v8546_v16 }
 0x5e6   : > { %v4453_v59 = vpop.f32.mrf.mxu2 }
 0x5e7   : > { %v4454_v52 = vadd.f32 %v4453_v59, %v4405_v27  ;;  %v4502_v62 = vpop.f32.mrf.mxu3 }
 0x5e9   : > { %v4503_v31 = vadd.f32 %v4502_v62, %v4454_v52 }
 0x5ea   : > { %7007 = shalt.err (!%p7004_p0)
}
 0x5eb   : > { %s7112_s2 = smov 320   ;;  %s7113_s3 = smov 20   ;;  %v4406_v16 = vpop.f32.mrf.mxu1  ;;  %v4830_v11 = vadd.f32 %v4829_v46, %v4602_v22  ;;  %v4618_v29 = vmax.f32 %v4500_v41, 0.0  ;;  %v4626_v40 = vmax.f32 %v4503_v31, 0.0 }
 0x5ec   : > { %6731 = dma.vmem_to_hbm [thread:$0]  (%p7250_p7), %s8614_s13, 5120, %s8616_s17, %s4844_s11, %s7112_s2, %s7112_s2, %s7113_s3   ;;  %v4407_v49 = vadd.f32 %v4406_v16, %v4358_v24 }
 0x5ed   : > { %s6710_s29 = sshll.u32 %s7094_s24, 6  ;;  %v4831_v26 = vadd.f32 %v4830_v11, %v4610_v3  ;;  %s4884_s13 = sshll.u32 %s7815_s4, 4  ;;  %s4885_s13 = int_to_ptr.vmem [resolvable:$true] %s4884_s13 }
 0x5ee   : > { %v4455_v4 = vpop.f32.mrf.mxu2  ;;  %s4882_s28 = scalar_lea.hbm %s8682_s6, %s6710_s29  ;;  %s4849_s24 = scalar_lea.sflag [#allocation13], %s7271_s19 }
 0x5ef   : > { %v4456_v44 = vadd.f32 %v4455_v4, %v4407_v49  ;;  %v4504_v28 = vpop.f32.mrf.mxu3  ;;  %v4832_v19 = vadd.f32 %v4831_v26, %v4618_v29  ;;  %s4886_s17 = sshll.u32 %s4882_s28, 4  ;;  %s7028_s30 = scalar_lea.hbm %s8682_s6, 128  ;;  %s4887_s17 = int_to_ptr.hbm [resolvable:$true] %s4886_s17 }
 0x5f0   : > { %s7022_s11 = sshra.s32 %s4887_s17, 4  ;;  %s7023_s11 = int_to_ptr.hbm [resolvable:$true] %s7022_s11 }
 0x5f1   : > { %v4505_v5 = vadd.f32 %v4504_v28, %v4456_v44  ;;  %v4833_v53 = vadd.f32 %v4832_v19, %v4626_v40  ;;  %s7024_s14 = scalar_lea.hbm %s7023_s11, 64  ;;  %p7029_p2 = scmp.lt.s32.totalorder %s7023_s11, %s8682_s6 }
 0x5f2   : > { %p7025_p3 = scmp.ne.s32.totalorder %s7023_s11, %s7024_s14  ;;  %p7030_p1 = scmp.lt.s32.totalorder %s7028_s30, %s7024_s14 }
 0x5f3   : > { %v4634_v8 = vmax.f32 %v4505_v5, 0.0 }
 0x5f4   : > { %p7026_p5 = pnand %p7025_p3, %p7250_p7  ;;  %p7031_p4 = por %p7030_p1, %p7029_p2 }
 0x5f5   : > { %v4834_v2 = vadd.f32 %v4833_v53, %v4634_v8 }
 0x5f6   : > { %p7027_p9 = pneg %p7026_p5 }
 0x5f7   : > { %4842 = vst [vmem:[%s7815_s4 + $0x38] sm:$0xff] %v4834_v2 }
 0x5f8   : > { %p7032_p8 = pnand %p7031_p4, %p7027_p9 }
 0x5fa   : > { %7035 = shalt.err (!%p7032_p8)
}
 0x5fb   : > { %6732 = dma.vmem_to_hbm [thread:$0]  (%p7250_p7), %s4885_s13, 1024, %s4887_s17, %s4849_s24  }
 0x5fc PF: > { %s4898_s19 = sand.u32 1, %s7082_s21   ;;  %p6753_p10 = pnand %p5052_p11, %p7198_p6 }
 0x5fd   : > { %s4899_s4 = scalar_lea.sflag [#allocation4], %s4898_s19 }
 0x5fe   : > { %p6754_p12 = pneg %p6753_p10 }
 0x600   : > { %7073 = dma.done.wait (%p6754_p12), %s4899_s4, 5120  }
 0x601   : > { %7075 = vsyncadd (%p6754_p12), %s4899_s4, 4294962176  ;;  %s4909_s20 = scalar_lea.sflag [#allocation13], %s4898_s19 }
 0x602   : > { %7077 = dma.done.wait (%p6754_p12), %s4909_s20, 1024  }
 0x603   : > { %7079 = vsyncadd (%p6754_p12), %s4909_s20, 4294966272  ;;  %s28_s26 = sadd.s32 1, %s7102_s26   ;;  %s8838_s21 = smov %s7086_s22 }
 0x604   : > { %p25_p13 = scmp.ge.s32.totalorder %s28_s26, 4   ;;  %s8839_s22 = smov %s7090_s23 }
 0x605   : > { %s8840_s23 = smov %s7259_s16  ;;  %s8841_s24 = smov %s7098_s25 }
 0x606   : > { %s8842_s25 = smov %s8844_s18  ;;  %27 = sbr.rel (!%p25_p13) target bundleno = 15 (0xf), region = 118 }
 0x60b   :  { %4915 = vsyncpa [#allocation3], 1 }
 0x60c   :  { %4917 = vsyncpa [#allocation3 + $0x1], 1 }
 0x60d   :  { %4918 = vsyncpa [#allocation6], 1 }
 0x60e   :  { %4919 = vsyncpa [#allocation9], 1 }
 0x60f   :  { %4920 = vsyncpa [#allocation4], 1 }
 0x610   :  { %4922 = vsyncpa [#allocation4 + $0x1], 1 }
 0x611   :  { %4923 = vsyncpa [#allocation13], 1 }
 0x612   :  { %4925 = vsyncpa [#allocation13 + $0x1], 1 }

</bundles_post_ra>
